<compile_context>
chip_gen: v7x
topology: tpu7x:2x2x1
jax: 0.10.0
libtpu: 0.0.40
codegen_flags: <defaults>
</compile_context>

<pallas_src>
import functools

import jax
import jax.numpy as jnp
from jax.experimental import pallas as pl
from jax.experimental.pallas import tpu as pltpu


# ----------------------------------------------------------------------------
# Hardware-aware tiling / VMEM helpers
# ----------------------------------------------------------------------------
try:
    _VMEM_CAP = int(pltpu.get_tpu_info().vmem_capacity_bytes)
except Exception:  # pragma: no cover - conservative fallback (v7x-sized VMEM)
    _VMEM_CAP = 64 * (1 << 20)


def _col_tile(m, k_dim, itemsize):
    """Lane-axis tile for the (K, m) patch / (Cout, m) output layout.

    Full extent when it fits (legal for any m); otherwise 1024 on 128 MiB
    parts (v5e/v6e) and 512 on 64 MiB parts (v7x), shrunk further if the
    double-buffered patch tile would overshoot a conservative VMEM budget.
    """
    cap = 1024 if _VMEM_CAP >= 96 * (1 << 20) else 512
    if m <= cap:
        return m
    while cap > 128 and 2 * k_dim * cap * itemsize > _VMEM_CAP // 4:
        cap //= 2
    return cap


def _vmem_limit_bytes(k_dim, tm, cout, itemsize):
    """Explicit VMEM budget; only passed when it exceeds the scoped default.

    Capped at 0.75x the physical VMEM of the local generation (v7x: 64 MiB).
    """
    a_bytes = k_dim * tm * itemsize          # patch tile
    w_bytes = cout * k_dim * itemsize        # resident weight block
    o_bytes = cout * tm * itemsize           # output tile (same dtype as input)
    est = 2 * (a_bytes + o_bytes) + 2 * w_bytes + (2 << 20)
    if est <= 12 * (1 << 20):                # comfortably under every default
        return None
    return int(min(2 * est, 0.75 * _VMEM_CAP))


# ----------------------------------------------------------------------------
# Pallas kernel: (Cout, K) @ (K, tm) with fused input activation + BN stats
# ----------------------------------------------------------------------------
def _conv_kernel(*refs, pre, with_stats, mask_cols, m_total, tm):
    """One conv layer as a resident-weight matmul.

    Inputs : weight (Cout, K), patch tile (K, tm) [, scale_k, shift_k (K, 1)]
    Outputs: raw conv tile (Cout, tm) [, per-tile sum / sumsq (1, Cout, 1)]

    `pre` is the previous layer's activation fused into this consumer:
      "none"   : patch used as-is (first layer, raw image input)
      "leaky"  : LeakyReLU(0.2) (previous layer had no BatchNorm)
      "affine" : leaky(scale_k * a + shift_k)  (previous layer's BN + leaky)
    """
    if pre == "affine":
        w_ref, a_ref, scale_ref, shift_ref = refs[0], refs[1], refs[2], refs[3]
        rest = refs[4:]
    else:
        w_ref, a_ref = refs[0], refs[1]
        rest = refs[2:]
    if with_stats:
        o_ref, sum_ref, sq_ref = rest
    else:
        (o_ref,) = rest

    a = a_ref[...]
    if pre == "affine":
        a32 = a.astype(jnp.float32) * scale_ref[...] + shift_ref[...]
        a32 = jnp.where(a32 >= 0, a32, 0.2 * a32)
        a = a32.astype(w_ref.dtype)
    elif pre == "leaky":
        a32 = a.astype(jnp.float32)
        a32 = jnp.where(a32 >= 0, a32, 0.2 * a32)
        a = a32.astype(w_ref.dtype)

    acc = jnp.dot(w_ref[...], a, preferred_element_type=jnp.float32)
    o_ref[...] = acc.astype(o_ref.dtype)         # lane-dense (Cout, tm) store

    if with_stats:
        av = acc
        if mask_cols:
            # Only reachable when m % tm != 0 (never for these shapes).
            col = pl.program_id(0) * tm + jax.lax.broadcasted_iota(
                jnp.int32, acc.shape, 1)
            av = jnp.where(col < m_total, acc, 0.0)
        # Per-tile partial sums (own block per grid step -> "parallel" legal).
        sum_ref[...] = jnp.sum(av, axis=1, keepdims=True)[None, :, :]
        sq_ref[...] = jnp.sum(av * av, axis=1, keepdims=True)[None, :, :]


# ----------------------------------------------------------------------------
# Layer wrappers
# ----------------------------------------------------------------------------
def conv2d_cnhw(x, w, stride, pad, *, pre="none", pre_scale=None,
                pre_shift=None, with_stats=False):
    """Conv2d (bias=False) on a channels-major (C, N, H, W) activation.

    The previous layer's BatchNorm-apply + LeakyReLU is fused into this
    consumer kernel (`pre`).  Returns (y_raw, stats): y_raw is the RAW conv
    output (Cout, N, Ho, Wo) in x.dtype; stats is None or a (sum, sumsq) pair
    of per-tile partials with shape (n_tiles, Cout, 1), f32.
    """
    c, n, h, wd = x.shape
    cout, cin, kh, kw = w.shape
    assert cin == c
    ho = (h + 2 * pad - kh) // stride + 1
    wo = (wd + 2 * pad - kw) // stride + 1
    k_dim = kh * kw * c
    m = n * ho * wo
    dt = x.dtype
    itemsize = jnp.dtype(dt).itemsize

    # Padding of the RAW activation: zero-pad when no affine is fused (the
    # fused leaky maps 0 -> 0), otherwise pad with the per-channel neutral
    # value -shift/scale so that the fused affine maps pads to exactly 0.
    if pad:
        if pre == "affine":
            safe = jnp.where(pre_scale == 0, 1.0, pre_scale)  # gamma==0 is degenerate BN
            neutral = (-pre_shift / safe).astype(dt)
            xp = jnp.broadcast_to(neutral[:, None, None, None],
                                  (c, n, h + 2 * pad, wd + 2 * pad))
            xp = jax.lax.dynamic_update_slice(xp, x, (0, 0, pad, pad))
        else:
            xp = jnp.pad(x, ((0, 0), (0, 0), (pad, pad), (pad, pad)))
    else:
        xp = x

    # im2col on the channels-major layout, in the activation dtype (bf16 on
    # the production path: half the HBM bytes of the old f32 patch array and
    # no convert pass).  Reduction-dim order is (kh, kw, Cin).
    # TODO(synk): replace with in-kernel im2col (phase-split inputs + in-kernel
    # unit-stride tap slices) to avoid materializing this ~4x array in HBM.
    taps = [xp[:, :, dy:dy + ho * stride:stride, dx:dx + wo * stride:stride]
            for dy in range(kh) for dx in range(kw)]
    patches = jnp.concatenate(taps, axis=0).reshape(k_dim, m)
    # Reorder / cast the tiny weight instead: OIHW -> (Cout, kh, kw, Cin) -> (Cout, K)
    wmat = jnp.transpose(w, (0, 2, 3, 1)).reshape(cout, k_dim).astype(dt)

    tm = _col_tile(m, k_dim, itemsize)
    n_tiles = -(-m // tm)
    grid = (n_tiles,)

    in_specs = [
        pl.BlockSpec((cout, k_dim), lambda i: (0, 0)),   # resident weights
        pl.BlockSpec((k_dim, tm), lambda i: (0, i)),     # patch column tile
    ]
    args = [wmat, patches]
    if pre == "affine":
        scale_k = jnp.tile(pre_scale.astype(jnp.float32), kh * kw)[:, None]
        shift_k = jnp.tile(pre_shift.astype(jnp.float32), kh * kw)[:, None]
        in_specs += [pl.BlockSpec((k_dim, 1), lambda i: (0, 0)),
                     pl.BlockSpec((k_dim, 1), lambda i: (0, 0))]
        args += [scale_k, shift_k]

    y_spec = pl.BlockSpec((cout, tm), lambda i: (0, i))
    if with_stats:
        out_shape = (jax.ShapeDtypeStruct((cout, m), dt),
                     jax.ShapeDtypeStruct((n_tiles, cout, 1), jnp.float32),
                     jax.ShapeDtypeStruct((n_tiles, cout, 1), jnp.float32))
        out_specs = (y_spec,
                     pl.BlockSpec((1, cout, 1), lambda i: (i, 0, 0)),
                     pl.BlockSpec((1, cout, 1), lambda i: (i, 0, 0)))
    else:
        out_shape = jax.ShapeDtypeStruct((cout, m), dt)
        out_specs = y_spec

    result = pl.pallas_call(
        functools.partial(_conv_kernel, pre=pre, with_stats=with_stats,
                          mask_cols=(m % tm != 0), m_total=m, tm=tm),
        out_shape=out_shape,
        grid=grid,
        in_specs=in_specs,
        out_specs=out_specs,
        compiler_params=pltpu.CompilerParams(
            # Nothing is revisited (stats are per-tile partials), so every
            # conv grid axis is "parallel" (lets v7x megacore split it).
            dimension_semantics=("parallel",),
            vmem_limit_bytes=_vmem_limit_bytes(k_dim, tm, cout, itemsize),
        ),
    )(*args)

    if with_stats:
        y, s, sq = result
        stats = (s, sq)
    else:
        y, stats = result, None
    return y.reshape(cout, n, ho, wo), stats


def bn_scale_shift(stats, gamma, beta, m, eps=1e-5):
    """Fold fused per-tile (sum, sumsq) partials into BN scale/shift vectors.

    Training-mode BatchNorm2d: biased batch statistics over the m = N*H*W
    columns of each channel.  Tiny (Cout-sized) computation in plain jnp.
    """
    s, sq = stats                                  # (n_tiles, C, 1) f32
    s = jnp.sum(s, axis=(0, 2))
    sq = jnp.sum(sq, axis=(0, 2))
    mean = s / m
    var = jnp.maximum(sq / m - mean * mean, 0.0)   # clamp cancellation noise
    scale = gamma * jax.lax.rsqrt(var + eps)
    shift = beta - mean * scale
    return scale, shift


def final_conv_sigmoid(x_raw, w, scale, shift):
    """BN-apply + LeakyReLU(0.2) + Conv2d(Cin -> 1, k=4, s=1, p=0) + Sigmoid.

    Output has a single channel and only `batch` spatial positions; per the
    perf review a pallas_call here is pure launch overhead (1/256 of the MXU
    columns, worst-case masked store), so this stays a plain jnp reduction.
    """
    c, n, h, wd = x_raw.shape
    cout, cin, kh, kw = w.shape
    xf = x_raw.astype(jnp.float32) * scale[:, None, None, None] \
        + shift[:, None, None, None]
    xf = jnp.where(xf >= 0, xf, 0.2 * xf)
    ho, wo = h - kh + 1, wd - kw + 1
    taps = [xf[:, :, dy:dy + ho, dx:dx + wo] for dy in range(kh) for dx in range(kw)]
    patches = jnp.concatenate(taps, axis=0).reshape(kh * kw * c, n * ho * wo)
    wmat = jnp.transpose(w, (0, 2, 3, 1)).reshape(cout, kh * kw * c)
    logits = jnp.dot(wmat, patches, preferred_element_type=jnp.float32)
    return jax.nn.sigmoid(logits).reshape(-1)      # == output.view(-1, 1).squeeze(1)


# ----------------------------------------------------------------------------
# Discriminator forward (Pallas) and pure-JAX reference
# ----------------------------------------------------------------------------
def discriminator_forward(x_nchw, p, mxu_dtype=jnp.bfloat16):
    # Single cheap layout / dtype change at module entry: NCHW f32 ->
    # channels-major CNHW in the activation dtype (bf16 on the fast path).
    x = jnp.transpose(x_nchw, (1, 0, 2, 3)).astype(mxu_dtype)

    # conv1: raw image in, no fused pre-op, no BN on its output.
    h1, _ = conv2d_cnhw(x, p["w1"], 2, 1, pre="none", with_stats=False)

    # conv2 consumes leaky(conv1); its output feeds BN2 (fused stats).
    h2, st2 = conv2d_cnhw(h1, p["w2"], 2, 1, pre="leaky", with_stats=True)
    s2, sh2 = bn_scale_shift(st2, p["g2"], p["b2"], h2.size // h2.shape[0])

    # conv3 consumes leaky(BN2(conv2)) via the fused affine pre-op.
    h3, st3 = conv2d_cnhw(h2, p["w3"], 2, 1, pre="affine",
                          pre_scale=s2, pre_shift=sh2, with_stats=True)
    s3, sh3 = bn_scale_shift(st3, p["g3"], p["b3"], h3.size // h3.shape[0])

    h4, st4 = conv2d_cnhw(h3, p["w4"], 2, 1, pre="affine",
                          pre_scale=s3, pre_shift=sh3, with_stats=True)
    s4, sh4 = bn_scale_shift(st4, p["g4"], p["b4"], h4.size // h4.shape[0])

    return final_conv_sigmoid(h4, p["w5"], s4, sh4)


def reference_forward(x, p):
    def conv(x, w, s, pd):
        return jax.lax.conv_general_dilated(
            x, w, (s, s), ((pd, pd), (pd, pd)),
            dimension_numbers=("NCHW", "OIHW", "NCHW"))

    def bn(x, g, b, eps=1e-5):
        mean = jnp.mean(x, axis=(0, 2, 3), keepdims=True)
        var = jnp.mean((x - mean) ** 2, axis=(0, 2, 3), keepdims=True)
        return (x - mean) / jnp.sqrt(var + eps) * g[None, :, None, None] \
            + b[None, :, None, None]

    def lrelu(x):
        return jnp.where(x >= 0, x, 0.2 * x)

    h = lrelu(conv(x, p["w1"], 2, 1))
    h = lrelu(bn(conv(h, p["w2"], 2, 1), p["g2"], p["b2"]))
    h = lrelu(bn(conv(h, p["w3"], 2, 1), p["g3"], p["b3"]))
    h = lrelu(bn(conv(h, p["w4"], 2, 1), p["g4"], p["b4"]))
    h = jax.nn.sigmoid(conv(h, p["w5"], 1, 0))
    return h.reshape(-1)


def init_params(key, nc, d):
    ks = jax.random.split(key, 8)
    std = 0.05
    return {
        "w1": jax.random.normal(ks[0], (d, nc, 4, 4), jnp.float32) * std,
        "w2": jax.random.normal(ks[1], (2 * d, d, 4, 4), jnp.float32) * std,
        "w3": jax.random.normal(ks[2], (4 * d, 2 * d, 4, 4), jnp.float32) * std,
        "w4": jax.random.normal(ks[3], (8 * d, 4 * d, 4, 4), jnp.float32) * std,
        "w5": jax.random.normal(ks[4], (1, 8 * d, 4, 4), jnp.float32) * std,
        "g2": 1.0 + 0.02 * jax.random.normal(ks[5], (2 * d,), jnp.float32),
        "b2": jnp.zeros((2 * d,), jnp.float32),
        "g3": 1.0 + 0.02 * jax.random.normal(ks[6], (4 * d,), jnp.float32),
        "b3": jnp.zeros((4 * d,), jnp.float32),
        "g4": 1.0 + 0.02 * jax.random.normal(ks[7], (8 * d,), jnp.float32),
        "b4": jnp.zeros((8 * d,), jnp.float32),
    }


if __name__ == "__main__":
    # Spatial must be 64 for the 5-conv DCGAN discriminator to reduce to 1x1;
    # batch / channels / depth kept small.
    batch, nc, d_depth, spatial = 2, 3, 8, 64

    key = jax.random.PRNGKey(0)
    k_x, k_p = jax.random.split(key)
    x = jax.random.normal(k_x, (batch, nc, spatial, spatial), jnp.float32)
    params = init_params(k_p, nc, d_depth)

    fwd_bf16 = jax.jit(functools.partial(discriminator_forward, mxu_dtype=jnp.bfloat16))
    fwd_f32 = jax.jit(functools.partial(discriminator_forward, mxu_dtype=jnp.float32))

    # Production path: bf16 activations / MXU inputs, f32 accumulation & BN.
    out_bf16 = jax.block_until_ready(fwd_bf16(x, params))
    # Same kernels with f32 activations for a tight numerical check.
    out_f32 = jax.block_until_ready(fwd_f32(x, params))
    ref = jax.block_until_ready(reference_forward(x, params))

    assert out_bf16.shape == (batch,), out_bf16.shape
    assert jnp.allclose(out_f32, ref, atol=2e-3, rtol=2e-3), (out_f32, ref)
    assert bool(jnp.all(jnp.isfinite(out_bf16)))
    # Loose check for the reduced-precision (bf16 activation) path.
    assert jnp.allclose(out_bf16, ref, atol=8e-2, rtol=8e-2), (out_bf16, ref)

    print("KERNEL_OK")
</pallas_src>

<mosaic_0001>
module attributes {stable_mosaic.version = 11 : i64} {
  func.func @_conv_kernel(%arg0: i32, %arg1: memref<8x48xbf16, #tpu.memory_space<vmem>>, %arg2: memref<48x512xbf16, #tpu.memory_space<vmem>>, %arg3: memref<8x512xbf16, #tpu.memory_space<vmem>>) attributes {dimension_semantics = [#tpu.dimension_semantics<parallel>], iteration_bounds = array<i64: 4>, scalar_prefetch = 0 : i64, scratch_operands = 0 : i64, tpu.core_type = #tpu.core_type<tc>, window_params = [{pipeline_mode = #tpu.pipeline_mode<synchronous>, transform_indices = @transform_0, window_bounds = array<i64: 8, 48>}, {transform_indices = @transform_1, window_bounds = array<i64: 48, 512>}, {transform_indices = @transform_2, window_bounds = array<i64: 8, 512>}]} {
    %c0 = arith.constant 0 : index
    %c0_0 = arith.constant 0 : index
    %0 = vector.load %arg2[%c0, %c0_0] : memref<48x512xbf16, #tpu.memory_space<vmem>>, vector<48x512xbf16>
    %c0_1 = arith.constant 0 : index
    %c0_2 = arith.constant 0 : index
    %1 = vector.load %arg1[%c0_1, %c0_2] : memref<8x48xbf16, #tpu.memory_space<vmem>>, vector<8x48xbf16>
    %cst = arith.constant dense<0.000000e+00> : vector<8x512xf32>
    %2 = tpu.matmul %1, %0, %cst {dimension_numbers = #tpu.dot_dimension_numbers<[1], [0], [0], [1], [0, 0, 1, 1], [], []>} : vector<8x48xbf16>, vector<48x512xbf16>, vector<8x512xf32> -> vector<8x512xf32>
    %3 = arith.truncf %2 : vector<8x512xf32> to vector<8x512xbf16>
    %c0_3 = arith.constant 0 : index
    %c0_4 = arith.constant 0 : index
    %4 = vector.load %arg3[%c0_3, %c0_4] : memref<8x512xbf16, #tpu.memory_space<vmem>>, vector<8x512xbf16>
    tpu.vector_store %arg3[%c0_3, %c0_4], %3 {strides = array<i32>} : memref<8x512xbf16, #tpu.memory_space<vmem>>, vector<8x512xbf16>,
    return
  }
  func.func @transform_0(%arg0: i32) -> (i32, i32) {
    %c0_i32 = arith.constant 0 : i32
    %c0_i32_0 = arith.constant 0 : i32
    %c0_i32_1 = arith.constant 0 : i32
    return %c0_i32, %c0_i32_0 : i32, i32
  }
  func.func @transform_1(%arg0: i32) -> (i32, i32) {
    %c0_i32 = arith.constant 0 : i32
    %c0_i32_0 = arith.constant 0 : i32
    return %c0_i32, %arg0 : i32, i32
  }
  func.func @transform_2(%arg0: i32) -> (i32, i32) {
    %c0_i32 = arith.constant 0 : i32
    %c0_i32_0 = arith.constant 0 : i32
    return %c0_i32, %arg0 : i32, i32
  }
}

module attributes {stable_mosaic.version = 11 : i64} {
  func.func @_conv_kernel(%arg0: i32, %arg1: memref<16x128xbf16, #tpu.memory_space<vmem>>, %arg2: memref<128x512xbf16, #tpu.memory_space<vmem>>, %arg3: memref<16x512xbf16, #tpu.memory_space<vmem>>, %arg4: memref<1x16x1xf32, #tpu.memory_space<vmem>>, %arg5: memref<1x16x1xf32, #tpu.memory_space<vmem>>) attributes {dimension_semantics = [#tpu.dimension_semantics<parallel>], iteration_bounds = array<i64: 1>, scalar_prefetch = 0 : i64, scratch_operands = 0 : i64, tpu.core_type = #tpu.core_type<tc>, window_params = [{pipeline_mode = #tpu.pipeline_mode<synchronous>, transform_indices = @transform_0, window_bounds = array<i64: 16, 128>}, {transform_indices = @transform_1, window_bounds = array<i64: 128, 512>}, {transform_indices = @transform_2, window_bounds = array<i64: 16, 512>}, {transform_indices = @transform_3, window_bounds = array<i64: 1, 16, 1>}, {transform_indices = @transform_4, window_bounds = array<i64: 1, 16, 1>}]} {
    %c0 = arith.constant 0 : index
    %c0_0 = arith.constant 0 : index
    %0 = vector.load %arg2[%c0, %c0_0] : memref<128x512xbf16, #tpu.memory_space<vmem>>, vector<128x512xbf16>
    %1 = arith.extf %0 : vector<128x512xbf16> to vector<128x512xf32>
    %cst = arith.constant 0.000000e+00 : f32
    %2 = vector.broadcast %cst : f32 to vector<128x512xf32>
    %3 = arith.cmpf oge, %1, %2 : vector<128x512xf32>
    %cst_1 = arith.constant 2.000000e-01 : f32
    %4 = vector.broadcast %cst_1 : f32 to vector<128x512xf32>
    %5 = arith.mulf %4, %1 : vector<128x512xf32>
    %6 = arith.select %3, %1, %5 : vector<128x512xi1>, vector<128x512xf32>
    %7 = arith.truncf %6 : vector<128x512xf32> to vector<128x512xbf16>
    %c0_2 = arith.constant 0 : index
    %c0_3 = arith.constant 0 : index
    %8 = vector.load %arg1[%c0_2, %c0_3] : memref<16x128xbf16, #tpu.memory_space<vmem>>, vector<16x128xbf16>
    %cst_4 = arith.constant dense<0.000000e+00> : vector<16x512xf32>
    %9 = tpu.matmul %8, %7, %cst_4 {dimension_numbers = #tpu.dot_dimension_numbers<[1], [0], [0], [1], [0, 0, 1, 1], [], []>} : vector<16x128xbf16>, vector<128x512xbf16>, vector<16x512xf32> -> vector<16x512xf32>
    %10 = arith.truncf %9 : vector<16x512xf32> to vector<16x512xbf16>
    %c0_5 = arith.constant 0 : index
    %c0_6 = arith.constant 0 : index
    %11 = vector.load %arg3[%c0_5, %c0_6] : memref<16x512xbf16, #tpu.memory_space<vmem>>, vector<16x512xbf16>
    tpu.vector_store %arg3[%c0_5, %c0_6], %10 {strides = array<i32>} : memref<16x512xbf16, #tpu.memory_space<vmem>>, vector<16x512xbf16>,
    %cst_7 = arith.constant dense<0.000000e+00> : vector<16xf32>
    %12 = vector.multi_reduction <add>, %9, %cst_7 [1] : vector<16x512xf32> to vector<16xf32>
    %13 = vector.shape_cast %12 : vector<16xf32> to vector<16x1xf32>
    %14 = vector.shape_cast %13 : vector<16x1xf32> to vector<1x16x1xf32>
    %c0_8 = arith.constant 0 : index
    %c0_9 = arith.constant 0 : index
    %c0_10 = arith.constant 0 : index
    %15 = vector.load %arg4[%c0_8, %c0_9, %c0_10] : memref<1x16x1xf32, #tpu.memory_space<vmem>>, vector<1x16x1xf32>
    tpu.vector_store %arg4[%c0_8, %c0_9, %c0_10], %14 {strides = array<i32>} : memref<1x16x1xf32, #tpu.memory_space<vmem>>, vector<1x16x1xf32>,
    %16 = arith.mulf %9, %9 : vector<16x512xf32>
    %cst_11 = arith.constant dense<0.000000e+00> : vector<16xf32>
    %17 = vector.multi_reduction <add>, %16, %cst_11 [1] : vector<16x512xf32> to vector<16xf32>
    %18 = vector.shape_cast %17 : vector<16xf32> to vector<16x1xf32>
    %19 = vector.shape_cast %18 : vector<16x1xf32> to vector<1x16x1xf32>
    %c0_12 = arith.constant 0 : index
    %c0_13 = arith.constant 0 : index
    %c0_14 = arith.constant 0 : index
    %20 = vector.load %arg5[%c0_12, %c0_13, %c0_14] : memref<1x16x1xf32, #tpu.memory_space<vmem>>, vector<1x16x1xf32>
    tpu.vector_store %arg5[%c0_12, %c0_13, %c0_14], %19 {strides = array<i32>} : memref<1x16x1xf32, #tpu.memory_space<vmem>>, vector<1x16x1xf32>,
    return
  }
  func.func @transform_0(%arg0: i32) -> (i32, i32) {
    %c0_i32 = arith.constant 0 : i32
    %c0_i32_0 = arith.constant 0 : i32
    %c0_i32_1 = arith.constant 0 : i32
    return %c0_i32, %c0_i32_0 : i32, i32
  }
  func.func @transform_1(%arg0: i32) -> (i32, i32) {
    %c0_i32 = arith.constant 0 : i32
    %c0_i32_0 = arith.constant 0 : i32
    return %c0_i32, %arg0 : i32, i32
  }
  func.func @transform_2(%arg0: i32) -> (i32, i32) {
    %c0_i32 = arith.constant 0 : i32
    %c0_i32_0 = arith.constant 0 : i32
    return %c0_i32, %arg0 : i32, i32
  }
  func.func @transform_3(%arg0: i32) -> (i32, i32, i32) {
    %c0_i32 = arith.constant 0 : i32
    %c0_i32_0 = arith.constant 0 : i32
    %c0_i32_1 = arith.constant 0 : i32
    return %arg0, %c0_i32, %c0_i32_0 : i32, i32, i32
  }
  func.func @transform_4(%arg0: i32) -> (i32, i32, i32) {
    %c0_i32 = arith.constant 0 : i32
    %c0_i32_0 = arith.constant 0 : i32
    %c0_i32_1 = arith.constant 0 : i32
    return %arg0, %c0_i32, %c0_i32_0 : i32, i32, i32
  }
}

module attributes {stable_mosaic.version = 11 : i64} {
  func.func @_conv_kernel(%arg0: i32, %arg1: memref<32x256xbf16, #tpu.memory_space<vmem>>, %arg2: memref<256x128xbf16, #tpu.memory_space<vmem>>, %arg3: memref<256x1xf32, #tpu.memory_space<vmem>>, %arg4: memref<256x1xf32, #tpu.memory_space<vmem>>, %arg5: memref<32x128xbf16, #tpu.memory_space<vmem>>, %arg6: memref<1x32x1xf32, #tpu.memory_space<vmem>>, %arg7: memref<1x32x1xf32, #tpu.memory_space<vmem>>) attributes {dimension_semantics = [#tpu.dimension_semantics<parallel>], iteration_bounds = array<i64: 1>, scalar_prefetch = 0 : i64, scratch_operands = 0 : i64, tpu.core_type = #tpu.core_type<tc>, window_params = [{pipeline_mode = #tpu.pipeline_mode<synchronous>, transform_indices = @transform_0, window_bounds = array<i64: 32, 256>}, {transform_indices = @transform_1, window_bounds = array<i64: 256, 128>}, {pipeline_mode = #tpu.pipeline_mode<synchronous>, transform_indices = @transform_2, window_bounds = array<i64: 256, 1>}, {pipeline_mode = #tpu.pipeline_mode<synchronous>, transform_indices = @transform_3, window_bounds = array<i64: 256, 1>}, {transform_indices = @transform_4, window_bounds = array<i64: 32, 128>}, {transform_indices = @transform_5, window_bounds = array<i64: 1, 32, 1>}, {transform_indices = @transform_6, window_bounds = array<i64: 1, 32, 1>}]} {
    %c0 = arith.constant 0 : index
    %c0_0 = arith.constant 0 : index
    %0 = vector.load %arg2[%c0, %c0_0] : memref<256x128xbf16, #tpu.memory_space<vmem>>, vector<256x128xbf16>
    %1 = arith.extf %0 : vector<256x128xbf16> to vector<256x128xf32>
    %c0_1 = arith.constant 0 : index
    %c0_2 = arith.constant 0 : index
    %2 = vector.load %arg3[%c0_1, %c0_2] : memref<256x1xf32, #tpu.memory_space<vmem>>, vector<256x1xf32>
    %3 = vector.broadcast %2 : vector<256x1xf32> to vector<256x128xf32>
    %4 = arith.mulf %1, %3 : vector<256x128xf32>
    %c0_3 = arith.constant 0 : index
    %c0_4 = arith.constant 0 : index
    %5 = vector.load %arg4[%c0_3, %c0_4] : memref<256x1xf32, #tpu.memory_space<vmem>>, vector<256x1xf32>
    %6 = vector.broadcast %5 : vector<256x1xf32> to vector<256x128xf32>
    %7 = arith.addf %4, %6 : vector<256x128xf32>
    %cst = arith.constant 0.000000e+00 : f32
    %8 = vector.broadcast %cst : f32 to vector<256x128xf32>
    %9 = arith.cmpf oge, %7, %8 : vector<256x128xf32>
    %cst_5 = arith.constant 2.000000e-01 : f32
    %10 = vector.broadcast %cst_5 : f32 to vector<256x128xf32>
    %11 = arith.mulf %10, %7 : vector<256x128xf32>
    %12 = arith.select %9, %7, %11 : vector<256x128xi1>, vector<256x128xf32>
    %13 = arith.truncf %12 : vector<256x128xf32> to vector<256x128xbf16>
    %c0_6 = arith.constant 0 : index
    %c0_7 = arith.constant 0 : index
    %14 = vector.load %arg1[%c0_6, %c0_7] : memref<32x256xbf16, #tpu.memory_space<vmem>>, vector<32x256xbf16>
    %cst_8 = arith.constant dense<0.000000e+00> : vector<32x128xf32>
    %15 = tpu.matmul %14, %13, %cst_8 {dimension_numbers = #tpu.dot_dimension_numbers<[1], [0], [0], [1], [0, 0, 1, 1], [], []>} : vector<32x256xbf16>, vector<256x128xbf16>, vector<32x128xf32> -> vector<32x128xf32>
    %16 = arith.truncf %15 : vector<32x128xf32> to vector<32x128xbf16>
    %c0_9 = arith.constant 0 : index
    %c0_10 = arith.constant 0 : index
    %17 = vector.load %arg5[%c0_9, %c0_10] : memref<32x128xbf16, #tpu.memory_space<vmem>>, vector<32x128xbf16>
    tpu.vector_store %arg5[%c0_9, %c0_10], %16 {strides = array<i32>} : memref<32x128xbf16, #tpu.memory_space<vmem>>, vector<32x128xbf16>,
    %cst_11 = arith.constant dense<0.000000e+00> : vector<32xf32>
    %18 = vector.multi_reduction <add>, %15, %cst_11 [1] : vector<32x128xf32> to vector<32xf32>
    %19 = vector.shape_cast %18 : vector<32xf32> to vector<32x1xf32>
    %20 = vector.shape_cast %19 : vector<32x1xf32> to vector<1x32x1xf32>
    %c0_12 = arith.constant 0 : index
    %c0_13 = arith.constant 0 : index
    %c0_14 = arith.constant 0 : index
    %21 = vector.load %arg6[%c0_12, %c0_13, %c0_14] : memref<1x32x1xf32, #tpu.memory_space<vmem>>, vector<1x32x1xf32>
    tpu.vector_store %arg6[%c0_12, %c0_13, %c0_14], %20 {strides = array<i32>} : memref<1x32x1xf32, #tpu.memory_space<vmem>>, vector<1x32x1xf32>,
    %22 = arith.mulf %15, %15 : vector<32x128xf32>
    %cst_15 = arith.constant dense<0.000000e+00> : vector<32xf32>
    %23 = vector.multi_reduction <add>, %22, %cst_15 [1] : vector<32x128xf32> to vector<32xf32>
    %24 = vector.shape_cast %23 : vector<32xf32> to vector<32x1xf32>
    %25 = vector.shape_cast %24 : vector<32x1xf32> to vector<1x32x1xf32>
    %c0_16 = arith.constant 0 : index
    %c0_17 = arith.constant 0 : index
    %c0_18 = arith.constant 0 : index
    %26 = vector.load %arg7[%c0_16, %c0_17, %c0_18] : memref<1x32x1xf32, #tpu.memory_space<vmem>>, vector<1x32x1xf32>
    tpu.vector_store %arg7[%c0_16, %c0_17, %c0_18], %25 {strides = array<i32>} : memref<1x32x1xf32, #tpu.memory_space<vmem>>, vector<1x32x1xf32>,
    return
  }
  func.func @transform_0(%arg0: i32) -> (i32, i32) {
    %c0_i32 = arith.constant 0 : i32
    %c0_i32_0 = arith.constant 0 : i32
    %c0_i32_1 = arith.constant 0 : i32
    return %c0_i32, %c0_i32_0 : i32, i32
  }
  func.func @transform_1(%arg0: i32) -> (i32, i32) {
    %c0_i32 = arith.constant 0 : i32
    %c0_i32_0 = arith.constant 0 : i32
    return %c0_i32, %arg0 : i32, i32
  }
  func.func @transform_2(%arg0: i32) -> (i32, i32) {
    %c0_i32 = arith.constant 0 : i32
    %c0_i32_0 = arith.constant 0 : i32
    %c0_i32_1 = arith.constant 0 : i32
    return %c0_i32, %c0_i32_0 : i32, i32
  }
  func.func @transform_3(%arg0: i32) -> (i32, i32) {
    %c0_i32 = arith.constant 0 : i32
    %c0_i32_0 = arith.constant 0 : i32
    %c0_i32_1 = arith.constant 0 : i32
    return %c0_i32, %c0_i32_0 : i32, i32
  }
  func.func @transform_4(%arg0: i32) -> (i32, i32) {
    %c0_i32 = arith.constant 0 : i32
    %c0_i32_0 = arith.constant 0 : i32
    return %c0_i32, %arg0 : i32, i32
  }
  func.func @transform_5(%arg0: i32) -> (i32, i32, i32) {
    %c0_i32 = arith.constant 0 : i32
    %c0_i32_0 = arith.constant 0 : i32
    %c0_i32_1 = arith.constant 0 : i32
    return %arg0, %c0_i32, %c0_i32_0 : i32, i32, i32
  }
  func.func @transform_6(%arg0: i32) -> (i32, i32, i32) {
    %c0_i32 = arith.constant 0 : i32
    %c0_i32_0 = arith.constant 0 : i32
    %c0_i32_1 = arith.constant 0 : i32
    return %arg0, %c0_i32, %c0_i32_0 : i32, i32, i32
  }
}

module attributes {stable_mosaic.version = 11 : i64} {
  func.func @_conv_kernel(%arg0: i32, %arg1: memref<64x512xbf16, #tpu.memory_space<vmem>>, %arg2: memref<512x32xbf16, #tpu.memory_space<vmem>>, %arg3: memref<512x1xf32, #tpu.memory_space<vmem>>, %arg4: memref<512x1xf32, #tpu.memory_space<vmem>>, %arg5: memref<64x32xbf16, #tpu.memory_space<vmem>>, %arg6: memref<1x64x1xf32, #tpu.memory_space<vmem>>, %arg7: memref<1x64x1xf32, #tpu.memory_space<vmem>>) attributes {dimension_semantics = [#tpu.dimension_semantics<parallel>], iteration_bounds = array<i64: 1>, scalar_prefetch = 0 : i64, scratch_operands = 0 : i64, tpu.core_type = #tpu.core_type<tc>, window_params = [{pipeline_mode = #tpu.pipeline_mode<synchronous>, transform_indices = @transform_0, window_bounds = array<i64: 64, 512>}, {transform_indices = @transform_1, window_bounds = array<i64: 512, 32>}, {pipeline_mode = #tpu.pipeline_mode<synchronous>, transform_indices = @transform_2, window_bounds = array<i64: 512, 1>}, {pipeline_mode = #tpu.pipeline_mode<synchronous>, transform_indices = @transform_3, window_bounds = array<i64: 512, 1>}, {transform_indices = @transform_4, window_bounds = array<i64: 64, 32>}, {transform_indices = @transform_5, window_bounds = array<i64: 1, 64, 1>}, {transform_indices = @transform_6, window_bounds = array<i64: 1, 64, 1>}]} {
    %c0 = arith.constant 0 : index
    %c0_0 = arith.constant 0 : index
    %0 = vector.load %arg2[%c0, %c0_0] : memref<512x32xbf16, #tpu.memory_space<vmem>>, vector<512x32xbf16>
    %1 = arith.extf %0 : vector<512x32xbf16> to vector<512x32xf32>
    %c0_1 = arith.constant 0 : index
    %c0_2 = arith.constant 0 : index
    %2 = vector.load %arg3[%c0_1, %c0_2] : memref<512x1xf32, #tpu.memory_space<vmem>>, vector<512x1xf32>
    %3 = vector.broadcast %2 : vector<512x1xf32> to vector<512x32xf32>
    %4 = arith.mulf %1, %3 : vector<512x32xf32>
    %c0_3 = arith.constant 0 : index
    %c0_4 = arith.constant 0 : index
    %5 = vector.load %arg4[%c0_3, %c0_4] : memref<512x1xf32, #tpu.memory_space<vmem>>, vector<512x1xf32>
    %6 = vector.broadcast %5 : vector<512x1xf32> to vector<512x32xf32>
    %7 = arith.addf %4, %6 : vector<512x32xf32>
    %cst = arith.constant 0.000000e+00 : f32
    %8 = vector.broadcast %cst : f32 to vector<512x32xf32>
    %9 = arith.cmpf oge, %7, %8 : vector<512x32xf32>
    %cst_5 = arith.constant 2.000000e-01 : f32
    %10 = vector.broadcast %cst_5 : f32 to vector<512x32xf32>
    %11 = arith.mulf %10, %7 : vector<512x32xf32>
    %12 = arith.select %9, %7, %11 : vector<512x32xi1>, vector<512x32xf32>
    %13 = arith.truncf %12 : vector<512x32xf32> to vector<512x32xbf16>
    %c0_6 = arith.constant 0 : index
    %c0_7 = arith.constant 0 : index
    %14 = vector.load %arg1[%c0_6, %c0_7] : memref<64x512xbf16, #tpu.memory_space<vmem>>, vector<64x512xbf16>
    %cst_8 = arith.constant dense<0.000000e+00> : vector<64x32xf32>
    %15 = tpu.matmul %14, %13, %cst_8 {dimension_numbers = #tpu.dot_dimension_numbers<[1], [0], [0], [1], [0, 0, 1, 1], [], []>} : vector<64x512xbf16>, vector<512x32xbf16>, vector<64x32xf32> -> vector<64x32xf32>
    %16 = arith.truncf %15 : vector<64x32xf32> to vector<64x32xbf16>
    %c0_9 = arith.constant 0 : index
    %c0_10 = arith.constant 0 : index
    %17 = vector.load %arg5[%c0_9, %c0_10] : memref<64x32xbf16, #tpu.memory_space<vmem>>, vector<64x32xbf16>
    tpu.vector_store %arg5[%c0_9, %c0_10], %16 {strides = array<i32>} : memref<64x32xbf16, #tpu.memory_space<vmem>>, vector<64x32xbf16>,
    %cst_11 = arith.constant dense<0.000000e+00> : vector<64xf32>
    %18 = vector.multi_reduction <add>, %15, %cst_11 [1] : vector<64x32xf32> to vector<64xf32>
    %19 = vector.shape_cast %18 : vector<64xf32> to vector<64x1xf32>
    %20 = vector.shape_cast %19 : vector<64x1xf32> to vector<1x64x1xf32>
    %c0_12 = arith.constant 0 : index
    %c0_13 = arith.constant 0 : index
    %c0_14 = arith.constant 0 : index
    %21 = vector.load %arg6[%c0_12, %c0_13, %c0_14] : memref<1x64x1xf32, #tpu.memory_space<vmem>>, vector<1x64x1xf32>
    tpu.vector_store %arg6[%c0_12, %c0_13, %c0_14], %20 {strides = array<i32>} : memref<1x64x1xf32, #tpu.memory_space<vmem>>, vector<1x64x1xf32>,
    %22 = arith.mulf %15, %15 : vector<64x32xf32>
    %cst_15 = arith.constant dense<0.000000e+00> : vector<64xf32>
    %23 = vector.multi_reduction <add>, %22, %cst_15 [1] : vector<64x32xf32> to vector<64xf32>
    %24 = vector.shape_cast %23 : vector<64xf32> to vector<64x1xf32>
    %25 = vector.shape_cast %24 : vector<64x1xf32> to vector<1x64x1xf32>
    %c0_16 = arith.constant 0 : index
    %c0_17 = arith.constant 0 : index
    %c0_18 = arith.constant 0 : index
    %26 = vector.load %arg7[%c0_16, %c0_17, %c0_18] : memref<1x64x1xf32, #tpu.memory_space<vmem>>, vector<1x64x1xf32>
    tpu.vector_store %arg7[%c0_16, %c0_17, %c0_18], %25 {strides = array<i32>} : memref<1x64x1xf32, #tpu.memory_space<vmem>>, vector<1x64x1xf32>,
    return
  }
  func.func @transform_0(%arg0: i32) -> (i32, i32) {
    %c0_i32 = arith.constant 0 : i32
    %c0_i32_0 = arith.constant 0 : i32
    %c0_i32_1 = arith.constant 0 : i32
    return %c0_i32, %c0_i32_0 : i32, i32
  }
  func.func @transform_1(%arg0: i32) -> (i32, i32) {
    %c0_i32 = arith.constant 0 : i32
    %c0_i32_0 = arith.constant 0 : i32
    return %c0_i32, %arg0 : i32, i32
  }
  func.func @transform_2(%arg0: i32) -> (i32, i32) {
    %c0_i32 = arith.constant 0 : i32
    %c0_i32_0 = arith.constant 0 : i32
    %c0_i32_1 = arith.constant 0 : i32
    return %c0_i32, %c0_i32_0 : i32, i32
  }
  func.func @transform_3(%arg0: i32) -> (i32, i32) {
    %c0_i32 = arith.constant 0 : i32
    %c0_i32_0 = arith.constant 0 : i32
    %c0_i32_1 = arith.constant 0 : i32
    return %c0_i32, %c0_i32_0 : i32, i32
  }
  func.func @transform_4(%arg0: i32) -> (i32, i32) {
    %c0_i32 = arith.constant 0 : i32
    %c0_i32_0 = arith.constant 0 : i32
    return %c0_i32, %arg0 : i32, i32
  }
  func.func @transform_5(%arg0: i32) -> (i32, i32, i32) {
    %c0_i32 = arith.constant 0 : i32
    %c0_i32_0 = arith.constant 0 : i32
    %c0_i32_1 = arith.constant 0 : i32
    return %arg0, %c0_i32, %c0_i32_0 : i32, i32, i32
  }
  func.func @transform_6(%arg0: i32) -> (i32, i32, i32) {
    %c0_i32 = arith.constant 0 : i32
    %c0_i32_0 = arith.constant 0 : i32
    %c0_i32_1 = arith.constant 0 : i32
    return %arg0, %c0_i32, %c0_i32_0 : i32, i32, i32
  }
}

</mosaic_0001>

<bundles_post_ra>
// kernel: discriminator_forward.4
= control target key start
LH: loop header
LB: loop body
LE: loop exit
PB: predicated region body
PF: predicated region fallthrough
CT: control target
= control target key end

     0   :  { %s543_s9 = smov 0   ;;  %s545_s10 = smov 0   ;;  %s598_s0 = inlined_call_operand.vmem [shape: bf16[8,48], index: 0, kind: input, shape index: {}]   ;;  %s599_s1 = inlined_call_operand.vmem [shape: bf16[48,2048], index: 1, kind: input, shape index: {}]   ;;  %s600_s2 = inlined_call_operand.vmem [shape: bf16[8,2048], index: 2, kind: output, shape index: {}]  }
   0x1   :  { %s547_s11 = smov 0  }
   0x2 LB: > { %s428_s12 = sadd.s32 4294967295, %s525_s11   ;;  %s560_s13 = sadd.s32 1, %s525_s11   ;;  %s525_s11 = sphi %s547_s11, %s603_s11   ;;  %s521_s10 = sphi %s545_s10, %s602_s10   ;;  %s517_s9 = sphi %s543_s9, %s601_s9  }
   0x3   : > { %s37_s14 = ssub.s32 %s525_s11, %s560_s13  ;;  %s40_s15 = sadd.s32 1, %s521_s10 }
   0x4   : > { %p38_p0 = scmp.eq.s32.totalorder %s37_s14, 0  ;;  %p47_p1 = scmp.ne.s32.totalorder %s521_s10, %s517_s9 }
   0x5   : > { %p48_p2 = scmp.eq.s32.totalorder %s525_s11, 0  ;;  %p431_p4 = scmp.ge.s32.totalorder %s525_s11, 4 }
   0x6   : > { %s569_s16 = scalar_select %p38_p0, %s521_s10, %s40_s15  }
   0x7   : > { %p49_p3 = por %p48_p2, %p47_p1  ;;  %102 = sbr.rel (%p431_p4) target bundleno = 24 (0x18), region = 20 }
   0xe   : > { %105 = sbr.rel (!%p49_p3) target bundleno = 24 (0x18), region = 24  ;;  %s107_s17 = sand.u32 (%p49_p3), 1, %s521_s10  }
   0xf   : > { %s455_s18 = sshll.u32 (%p49_p3), %s525_s11, 4  ;;  %s458_s19 = smul.u32 (%p49_p3), 96, %s107_s17 }
  0x10   : > { %s112_s22 = scalar_lea.vmem (%p49_p3), %s599_s1, %s455_s18 }
  0x11   : > { %v125_v0 = vld [vmem:[%s112_s22] sm:$0xff] (%p49_p3)  ;;  %v127_v1 = vld [vmem:[%s112_s22 + $0x8] sm:$0xff] (%p49_p3)  ;;  %s109_s23 = scalar_lea.vmem (%p49_p3), [#allocation2], %s458_s19 }
  0x12   : > { %v129_v2 = vld [vmem:[%s112_s22 + $0x40] sm:$0xff] (%p49_p3)  ;;  %v131_v3 = vld [vmem:[%s112_s22 + $0x48] sm:$0xff] (%p49_p3)  ;;  %126 = vst [vmem:[%s109_s23] sm:$0xff] (%p49_p3), %v125_v0  ;;  %128 = vst [vmem:[%s109_s23 + $0x8] sm:$0xff] (%p49_p3), %v127_v1 }
  0x13   : > { %v133_v4 = vld [vmem:[%s112_s22 + $0x80] sm:$0xff] (%p49_p3)  ;;  %v135_v5 = vld [vmem:[%s112_s22 + $0x88] sm:$0xff] (%p49_p3)  ;;  %130 = vst [vmem:[%s109_s23 + $0x10] sm:$0xff] (%p49_p3), %v129_v2  ;;  %132 = vst [vmem:[%s109_s23 + $0x18] sm:$0xff] (%p49_p3), %v131_v3 }
  0x14   : > { %134 = vst [vmem:[%s109_s23 + $0x20] sm:$0xff] (%p49_p3), %v133_v4  ;;  %136 = vst [vmem:[%s109_s23 + $0x28] sm:$0xff] (%p49_p3), %v135_v5  ;;  %v137_v6 = vld [vmem:[%s112_s22 + $0xc0] sm:$0xff] (%p49_p3)  ;;  %v139_v7 = vld [vmem:[%s112_s22 + $0xc8] sm:$0xff] (%p49_p3) }
  0x15   : > { %v141_v8 = vld [vmem:[%s112_s22 + $0x100] sm:$0xff]  ;;  %138 = vst [vmem:[%s109_s23 + $0x30] sm:$0xff] %v137_v6  ;;  %140 = vst [vmem:[%s109_s23 + $0x38] sm:$0xff] %v139_v7  ;;  %v143_v9 = vld [vmem:[%s112_s22 + $0x108] sm:$0xff] }
  0x16   : > { %142 = vst [vmem:[%s109_s23 + $0x40] sm:$0xff] %v141_v8  ;;  %v145_v10 = vld [vmem:[%s112_s22 + $0x140] sm:$0xff]  ;;  %v147_v11 = vld [vmem:[%s112_s22 + $0x148] sm:$0xff]  ;;  %144 = vst [vmem:[%s109_s23 + $0x48] sm:$0xff] %v143_v9 }
  0x17   : > { %146 = vst [vmem:[%s109_s23 + $0x50] sm:$0xff] %v145_v10  ;;  %148 = vst [vmem:[%s109_s23 + $0x58] sm:$0xff] %v147_v11 }
  0x18 PF: > { %p434_p5 = scmp.ge.s32.totalorder %s525_s11, 1  ;;  %p153_p6 = scmp.lt.s32.totalorder %s525_s11, 5 }
  0x1a   : > { %p154_p7 = pnand %p434_p5, %p153_p6 }
  0x1b   : > { %s160_s24 = sand.u32 (!%p154_p7), 1, %s517_s9   ;;  %v527_v12 = vmov (!%p154_p7), 0   ;;  %v201_v25 = vld [vmem:[%s598_s0] sm:$0xf] (!%p154_p7)  ;;  %vm262_vm0 = vcmask (!%p154_p7), 392192   ;;  %s435_s29 = sshll.u32 (!%p154_p7), %s428_s12, 2 }
  0x1c   : > { %157 = sbr.rel (%p154_p7) target bundleno = 261 (0x105), region = 47  ;;  %298 = vmatprep.mubr.bf16.mxu0 (!%p154_p7), %v527_v12  ;;  %339 = vmatprep.mubr.bf16.mxu1 (!%p154_p7), %v527_v12  ;;  %p183_p8 = scmp.lt.s32.totalorder (!%p154_p7), %s435_s29, 15 }
  0x1d   : > { %s459_s25 = smul.u32 (!%p154_p7), 96, %s160_s24 }
  0x1f   : > { %s162_s26 = scalar_lea.vmem (!%p154_p7), [#allocation2], %s459_s25 }
  0x20   : > { %v485_v13 = vld [vmem:[%s162_s26 + $0x4] ss:$16 sps:$4 sm:$0xff] (!%p154_p7)   ;;  %v487_v14 = vld [vmem:[%s162_s26 + $0xc] ss:$16 sps:$4 sm:$0xff] (!%p154_p7)   ;;  %v489_v15 = vld [vmem:[%s162_s26] ss:$16 sps:$4 sm:$0xff] (!%p154_p7)  }
  0x21   : > { %266 = vmatprep.subr.bf16.mxu0 (!%p154_p7), %v485_v13  ;;  %v490_v16 = vld [vmem:[%s162_s26 + $0x8] ss:$16 sps:$4 sm:$0xff] (!%p154_p7)   ;;  %307 = vmatprep.subr.bf16.mxu1 (!%p154_p7), %v487_v14  ;;  %v491_v17 = vld [vmem:[%s162_s26 + $0x24] ss:$16 sps:$4 sm:$0xff] (!%p154_p7)   ;;  %v493_v18 = vld [vmem:[%s162_s26 + $0x2c] ss:$16 sps:$4 sm:$0xff] (!%p154_p7)  }
  0x22   : > { %267 = vmatpush1.bf16.msra.mxu0 (!%p154_p7), %v489_v15  ;;  %308 = vmatpush1.bf16.msra.mxu1 (!%p154_p7), %v490_v16  ;;  %v495_v19 = vld [vmem:[%s162_s26 + $0x20] ss:$16 sps:$4 sm:$0xff] (!%p154_p7)   ;;  %v496_v20 = vld [vmem:[%s162_s26 + $0x28] ss:$16 sps:$4 sm:$0xff] (!%p154_p7)   ;;  %v497_v21 = vld [vmem:[%s162_s26 + $0x44] ss:$16 sps:$4 sm:$0xff] (!%p154_p7)  }
  0x23   : > { %268 = vmatprep.subr.bf16.mxu0 %v491_v17  ;;  %309 = vmatprep.subr.bf16.mxu1 %v493_v18  ;;  %v499_v22 = vld [vmem:[%s162_s26 + $0x4c] ss:$16 sps:$4 sm:$0xff]   ;;  %v501_v23 = vld [vmem:[%s162_s26 + $0x40] ss:$16 sps:$4 sm:$0xff]   ;;  %v502_v24 = vld [vmem:[%s162_s26 + $0x48] ss:$16 sps:$4 sm:$0xff]  }
  0x24   : > { %s605_s29 = smov (!%p183_p8, %s435_s29), 15 }
  0x25   : > { %s436_s30 = sshll.u32 %s605_s29, 2 }
  0x26   : > { %269 = vmatpush1.bf16.msra.mxu0 %v495_v19  ;;  %310 = vmatpush1.bf16.msra.mxu1 %v496_v20  ;;  %s186_s5 = scalar_lea.vmem %s600_s2, %s436_s30 }
  0x27   : > { %270 = vmatprep.subr.bf16.mxu0 %v497_v21  ;;  %311 = vmatprep.subr.bf16.mxu1 %v499_v22 }
  0x2a   : > { %271 = vmatpush1.bf16.msra.mxu0 %v501_v23  ;;  %312 = vmatpush1.bf16.msra.mxu1 %v502_v24 }
  0x2d   : > { %449 = vmatmul.mubr.msk.bf16.vlgmr.msra.gmra.mrb[0].mxu0 %vm262_vm0, %v201_v25  ;;  %450 = vmatmul.mubr.msk.bf16.vlgmr.msra.gmra.mrb[0].mxu1 %vm262_vm0, %v201_v25 }
 0x100   : > { %v300_v26 = vpop.f32.mrb[0].mxu0  ;;  %v341_v27 = vpop.f32.mrb[0].mxu1 }
 0x101   : > { %v302_v28 = vpop.f32.mrb[1].mxu0  ;;  %v343_v29 = vpop.f32.mrb[1].mxu1 }
 0x102   : > { %v456_v30 = vpack.c.bf16 %v302_v28, %v300_v26  ;;  %v457_v31 = vpack.c.bf16 %v343_v29, %v341_v27  ;;  %v304_v32 = vpop.f32.mrb[2].mxu0  ;;  %v345_v33 = vpop.f32.mrb[2].mxu1 }
 0x103   : > { %v305_v34 = vpop.f32.mrb[3].mxu0  ;;  %v346_v35 = vpop.f32.mrb[3].mxu1 }
 0x104   : > { %364 = vst [vmem:[%s186_s5] sm:$0xff] %v456_v30  ;;  %365 = vst [vmem:[%s186_s5 + $0x8] sm:$0xff] %v457_v31 }
 0x105 PF: > { %p9_p9 = scmp.ge.s32.totalorder %s560_s13, 6   ;;  %s601_s9 = smov %s521_s10 }
 0x106   : > { %s602_s10 = smov %s569_s16  ;;  %s603_s11 = smov %s560_s13 }
 0x107   :  { %11 = sbr.rel (!%p9_p9) target bundleno = 2 (0x2), region = 86 }

// kernel: discriminator_forward.5
= control target key start
LH: loop header
LB: loop body
LE: loop exit
PB: predicated region body
PF: predicated region fallthrough
CT: control target
= control target key end

     0   :  { %v513_v3 = vmov 0   ;;  %s663_s1 = inlined_call_operand.vmem [shape: bf16[128,512], index: 1, kind: input, shape index: {}]   ;;  %s664_s0 = inlined_call_operand.vmem [shape: bf16[16,128], index: 0, kind: input, shape index: {}]   ;;  %s665_s2 = inlined_call_operand.vmem [shape: bf16[16,512], index: 2, kind: output, shape index: {0}]   ;;  %s666_s3 = inlined_call_operand.vmem [shape: f32[1,16,1], index: 3, kind: output, shape index: {1}]   ;;  %s667_s4 = inlined_call_operand.vmem [shape: f32[1,16,1], index: 4, kind: output, shape index: {2}]  }
   0x1   :  { %v15_v0 = vld [vmem:[%s663_s1] sm:$0xff]  ;;  %v17_v1 = vld [vmem:[%s663_s1 + $0x10] sm:$0xff]  ;;  %v16_v2 = vld [vmem:[%s663_s1 + $0x8] sm:$0xff]  ;;  %375 = vmatprep.mubr.bf16.mxu0 %v513_v3  ;;  %418 = vmatprep.mubr.bf16.mxu1 %v513_v3 }
   0x2   :  { %v48_v4 = vunpack.c.h.bf16 %v15_v0  ;;  %v52_v5 = vunpack.c.h.bf16 %v17_v1  ;;  %v18_v6 = vld [vmem:[%s663_s1 + $0x18] sm:$0xff]  ;;  %v50_v7 = vunpack.c.h.bf16 %v16_v2  ;;  %v47_v8 = vunpack.c.l.bf16 %v15_v0  ;;  %v19_v19 = vld [vmem:[%s663_s1 + $0x20] sm:$0xff]  ;;  %v21_v24 = vld [vmem:[%s663_s1 + $0x30] sm:$0xff] }
   0x3   :  { %v54_v9 = vunpack.c.h.bf16 %v18_v6  ;;  %v51_v10 = vunpack.c.l.bf16 %v17_v1  ;;  %v49_v11 = vunpack.c.l.bf16 %v16_v2  ;;  %v53_v12 = vunpack.c.l.bf16 %v18_v6  ;;  %v20_v25 = vld [vmem:[%s663_s1 + $0x28] sm:$0xff]  ;;  %v22_v26 = vld [vmem:[%s663_s1 + $0x38] sm:$0xff]  ;;  %v23_v53 = vld [vmem:[%s663_s1 + $0x40] sm:$0xff] }
   0x4   :  { %vm112_vm0 = vcmp.ge.f32.partialorder %v48_v4, 0.0  ;;  %vm116_vm1 = vcmp.ge.f32.partialorder %v52_v5, 0.0  ;;  %v176_v13 = vmul.f32 0.2, %v48_v4  ;;  %v180_v14 = vmul.f32 0.2, %v52_v5 }
   0x5   :  { %vm114_vm2 = vcmp.ge.f32.partialorder %v50_v7, 0.0  ;;  %vm118_vm3 = vcmp.ge.f32.partialorder %v54_v9, 0.0  ;;  %v178_v15 = vmul.f32 0.2, %v50_v7  ;;  %v182_v16 = vmul.f32 0.2, %v54_v9 }
   0x6   :  { %v240_v17 = vsel %vm112_vm0, %v48_v4, %v176_v13  ;;  %v244_v18 = vsel %vm116_vm1, %v52_v5, %v180_v14  ;;  %vm111_vm4 = vcmp.ge.f32.partialorder %v47_v8, 0.0  ;;  %vm115_vm5 = vcmp.ge.f32.partialorder %v51_v10, 0.0  ;;  %v25_v54 = vld [vmem:[%s663_s1 + $0x50] sm:$0xff]  ;;  %v24_v55 = vld [vmem:[%s663_s1 + $0x48] sm:$0xff]  ;;  %v26_v0 = vld [vmem:[%s663_s1 + $0x58] sm:$0xff] }
   0x7   :  { %v304_v20 = vpack.c.bf16 %v244_v18, %v240_v17  ;;  %v242_v21 = vsel %vm114_vm2, %v50_v7, %v178_v15  ;;  %v246_v22 = vsel %vm118_vm3, %v54_v9, %v182_v16  ;;  %v175_v23 = vmul.f32 0.2, %v47_v8  ;;  %v27_v17 = vld [vmem:[%s663_s1 + $0x60] sm:$0xff] }
   0x8   :  { %v306_v27 = vpack.c.bf16 %v246_v22, %v242_v21  ;;  %v179_v28 = vmul.f32 0.2, %v51_v10  ;;  %vm113_vm6 = vcmp.ge.f32.partialorder %v49_v11, 0.0  ;;  %vm117_vm7 = vcmp.ge.f32.partialorder %v53_v12, 0.0  ;;  %v29_v21 = vld [vmem:[%s663_s1 + $0x70] sm:$0xff] }
   0x9   :  { %343 = vmatprep.subr.bf16.mxu0 %v304_v20  ;;  %v239_v29 = vsel %vm111_vm4, %v47_v8, %v175_v23  ;;  %v177_v30 = vmul.f32 0.2, %v49_v11  ;;  %v181_v31 = vmul.f32 0.2, %v53_v12  ;;  %v56_v32 = vunpack.c.h.bf16 %v19_v19 }
   0xa   :  { %386 = vmatprep.subr.bf16.mxu1 %v306_v27  ;;  %v243_v33 = vsel %vm115_vm5, %v51_v10, %v179_v28  ;;  %v60_v34 = vunpack.c.h.bf16 %v21_v24  ;;  %v58_v35 = vunpack.c.h.bf16 %v20_v25  ;;  %v62_v36 = vunpack.c.h.bf16 %v22_v26 }
   0xb   :  { %v303_v37 = vpack.c.bf16 %v243_v33, %v239_v29  ;;  %v241_v38 = vsel %vm113_vm6, %v49_v11, %v177_v30  ;;  %v245_v39 = vsel %vm117_vm7, %v53_v12, %v181_v31  ;;  %vm120_vm8 = vcmp.ge.f32.partialorder %v56_v32, 0.0  ;;  %v30_v33 = vld [vmem:[%s663_s1 + $0x78] sm:$0xff] }
   0xc   :  { %v305_v40 = vpack.c.bf16 %v245_v39, %v241_v38  ;;  %vm124_vm9 = vcmp.ge.f32.partialorder %v60_v34, 0.0  ;;  %v184_v41 = vmul.f32 0.2, %v56_v32  ;;  %v188_v42 = vmul.f32 0.2, %v60_v34 }
   0xd   :  { %344 = vmatpush1.bf16.msra.mxu0 %v303_v37  ;;  %vm122_vm10 = vcmp.ge.f32.partialorder %v58_v35, 0.0  ;;  %vm126_vm11 = vcmp.ge.f32.partialorder %v62_v36, 0.0  ;;  %v186_v43 = vmul.f32 0.2, %v58_v35  ;;  %v190_v44 = vmul.f32 0.2, %v62_v36 }
   0xe   :  { %387 = vmatpush1.bf16.msra.mxu1 %v305_v40  ;;  %v248_v45 = vsel %vm120_vm8, %v56_v32, %v184_v41  ;;  %v252_v46 = vsel %vm124_vm9, %v60_v34, %v188_v42  ;;  %v55_v47 = vunpack.c.l.bf16 %v19_v19  ;;  %v59_v48 = vunpack.c.l.bf16 %v21_v24  ;;  %v28_v32 = vld [vmem:[%s663_s1 + $0x68] sm:$0xff] }
   0xf   :  { %v308_v49 = vpack.c.bf16 %v252_v46, %v248_v45  ;;  %v250_v50 = vsel %vm122_vm10, %v58_v35, %v186_v43  ;;  %v254_v51 = vsel %vm126_vm11, %v62_v36, %v190_v44  ;;  %v57_v52 = vunpack.c.l.bf16 %v20_v25 }
  0x10   :  { %v310_v56 = vpack.c.bf16 %v254_v51, %v250_v50  ;;  %vm119_vm12 = vcmp.ge.f32.partialorder %v55_v47, 0.0  ;;  %vm123_vm13 = vcmp.ge.f32.partialorder %v59_v48, 0.0  ;;  %v183_v57 = vmul.f32 0.2, %v55_v47  ;;  %v33_v50 = vld [vmem:[%s663_s1 + $0x90] sm:$0xff] }
  0x11   :  { %345 = vmatprep.subr.bf16.mxu0 %v308_v49  ;;  %v187_v58 = vmul.f32 0.2, %v59_v48  ;;  %v61_v59 = vunpack.c.l.bf16 %v22_v26  ;;  %vm121_vm14 = vcmp.ge.f32.partialorder %v57_v52, 0.0  ;;  %v185_v60 = vmul.f32 0.2, %v57_v52  ;;  %v31_v49 = vld [vmem:[%s663_s1 + $0x80] sm:$0xff] }
  0x12   :  { %388 = vmatprep.subr.bf16.mxu1 %v310_v56  ;;  %v247_v61 = vsel %vm119_vm12, %v55_v47, %v183_v57  ;;  %v64_v62 = vunpack.c.h.bf16 %v23_v53  ;;  %v68_v63 = vunpack.c.h.bf16 %v25_v54  ;;  %v66_v1 = vunpack.c.h.bf16 %v24_v55 }
  0x13   :  { %v251_v2 = vsel %vm123_vm13, %v59_v48, %v187_v58  ;;  %vm125_vm15 = vcmp.ge.f32.partialorder %v61_v59, 0.0  ;;  %v189_v3 = vmul.f32 0.2, %v61_v59  ;;  %v249_v4 = vsel %vm121_vm14, %v57_v52, %v185_v60 }
  0x14   :  { %v307_v5 = vpack.c.bf16 %v251_v2, %v247_v61  ;;  %vm128_vm0 = vcmp.ge.f32.partialorder %v64_v62, 0.0  ;;  %vm132_vm1 = vcmp.ge.f32.partialorder %v68_v63, 0.0  ;;  %v192_v6 = vmul.f32 0.2, %v64_v62  ;;  %v32_v61 = vld [vmem:[%s663_s1 + $0x88] sm:$0xff] }
  0x15   :  { %v253_v7 = vsel %vm125_vm15, %v61_v59, %v189_v3  ;;  %v196_v8 = vmul.f32 0.2, %v68_v63  ;;  %v70_v9 = vunpack.c.h.bf16 %v26_v0  ;;  %vm130_vm2 = vcmp.ge.f32.partialorder %v66_v1, 0.0 }
  0x16   :  { %346 = vmatpush1.bf16.msra.mxu0 %v307_v5  ;;  %v309_v10 = vpack.c.bf16 %v253_v7, %v249_v4  ;;  %v256_v11 = vsel %vm128_vm0, %v64_v62, %v192_v6  ;;  %v194_v12 = vmul.f32 0.2, %v66_v1  ;;  %v63_v13 = vunpack.c.l.bf16 %v23_v53 }
  0x17   :  { %v260_v14 = vsel %vm132_vm1, %v68_v63, %v196_v8  ;;  %vm134_vm3 = vcmp.ge.f32.partialorder %v70_v9, 0.0  ;;  %v198_v15 = vmul.f32 0.2, %v70_v9  ;;  %v67_v16 = vunpack.c.l.bf16 %v25_v54 }
  0x18   :  { %389 = vmatpush1.bf16.msra.mxu1 %v309_v10  ;;  %v312_v18 = vpack.c.bf16 %v260_v14, %v256_v11  ;;  %v258_v19 = vsel %vm130_vm2, %v66_v1, %v194_v12  ;;  %vm127_vm4 = vcmp.ge.f32.partialorder %v63_v13, 0.0  ;;  %v191_v20 = vmul.f32 0.2, %v63_v13  ;;  %v35_v14 = vld [vmem:[%s663_s1 + $0xa0] sm:$0xff] }
  0x19   :  { %v262_v22 = vsel %vm134_vm3, %v70_v9, %v198_v15  ;;  %vm131_vm5 = vcmp.ge.f32.partialorder %v67_v16, 0.0  ;;  %v195_v23 = vmul.f32 0.2, %v67_v16  ;;  %v65_v24 = vunpack.c.l.bf16 %v24_v55 }
  0x1a   :  { %347 = vmatprep.subr.bf16.mxu0 %v312_v18  ;;  %v314_v25 = vpack.c.bf16 %v262_v22, %v258_v19  ;;  %v255_v26 = vsel %vm127_vm4, %v63_v13, %v191_v20  ;;  %v69_v27 = vunpack.c.l.bf16 %v26_v0  ;;  %v72_v28 = vunpack.c.h.bf16 %v27_v17  ;;  %v34_v0 = vld [vmem:[%s663_s1 + $0x98] sm:$0xff] }
  0x1b   :  { %v259_v29 = vsel %vm131_vm5, %v67_v16, %v195_v23  ;;  %vm129_vm6 = vcmp.ge.f32.partialorder %v65_v24, 0.0  ;;  %v193_v30 = vmul.f32 0.2, %v65_v24  ;;  %v76_v31 = vunpack.c.h.bf16 %v29_v21 }
  0x1c   :  { %390 = vmatprep.subr.bf16.mxu1 %v314_v25  ;;  %v311_v34 = vpack.c.bf16 %v259_v29, %v255_v26  ;;  %vm133_vm7 = vcmp.ge.f32.partialorder %v69_v27, 0.0  ;;  %v197_v35 = vmul.f32 0.2, %v69_v27  ;;  %vm136_vm8 = vcmp.ge.f32.partialorder %v72_v28, 0.0  ;;  %v36_v29 = vld [vmem:[%s663_s1 + $0xa8] sm:$0xff] }
  0x1d   :  { %v257_v36 = vsel %vm129_vm6, %v65_v24, %v193_v30  ;;  %vm140_vm9 = vcmp.ge.f32.partialorder %v76_v31, 0.0  ;;  %v200_v37 = vmul.f32 0.2, %v72_v28  ;;  %v204_v38 = vmul.f32 0.2, %v76_v31  ;;  %v37_v24 = vld [vmem:[%s663_s1 + $0xb0] sm:$0xff] }
  0x1e   :  { %348 = vmatpush1.bf16.msra.mxu0 %v311_v34  ;;  %v261_v39 = vsel %vm133_vm7, %v69_v27, %v197_v35  ;;  %v74_v40 = vunpack.c.h.bf16 %v28_v32  ;;  %v78_v41 = vunpack.c.h.bf16 %v30_v33  ;;  %v71_v42 = vunpack.c.l.bf16 %v27_v17  ;;  %v38_v35 = vld [vmem:[%s663_s1 + $0xb8] sm:$0xff] }
  0x1f   :  { %v313_v43 = vpack.c.bf16 %v261_v39, %v257_v36  ;;  %v264_v44 = vsel %vm136_vm8, %v72_v28, %v200_v37  ;;  %v268_v45 = vsel %vm140_vm9, %v76_v31, %v204_v38  ;;  %v75_v46 = vunpack.c.l.bf16 %v29_v21 }
  0x20   :  { %v316_v47 = vpack.c.bf16 %v268_v45, %v264_v44  ;;  %vm138_vm10 = vcmp.ge.f32.partialorder %v74_v40, 0.0  ;;  %vm142_vm11 = vcmp.ge.f32.partialorder %v78_v41, 0.0  ;;  %v202_v48 = vmul.f32 0.2, %v74_v40 }
  0x21   :  { %391 = vmatpush1.bf16.msra.mxu1 %v313_v43  ;;  %v206_v51 = vmul.f32 0.2, %v78_v41  ;;  %vm135_vm12 = vcmp.ge.f32.partialorder %v71_v42, 0.0  ;;  %vm139_vm13 = vcmp.ge.f32.partialorder %v75_v46, 0.0  ;;  %v199_v52 = vmul.f32 0.2, %v71_v42 }
  0x22   :  { %349 = vmatprep.subr.bf16.mxu0 %v316_v47  ;;  %v266_v53 = vsel %vm138_vm10, %v74_v40, %v202_v48  ;;  %v203_v54 = vmul.f32 0.2, %v75_v46  ;;  %v73_v55 = vunpack.c.l.bf16 %v28_v32  ;;  %v77_v56 = vunpack.c.l.bf16 %v30_v33 }
  0x23   :  { %v270_v57 = vsel %vm142_vm11, %v78_v41, %v206_v51  ;;  %v263_v58 = vsel %vm135_vm12, %v71_v42, %v199_v52  ;;  %v80_v59 = vunpack.c.h.bf16 %v31_v49  ;;  %v84_v60 = vunpack.c.h.bf16 %v33_v50 }
  0x24   :  { %v318_v62 = vpack.c.bf16 %v270_v57, %v266_v53  ;;  %v267_v63 = vsel %vm139_vm13, %v75_v46, %v203_v54  ;;  %vm137_vm14 = vcmp.ge.f32.partialorder %v73_v55, 0.0  ;;  %vm141_vm15 = vcmp.ge.f32.partialorder %v77_v56, 0.0  ;;  %v39_v53 = vld [vmem:[%s663_s1 + $0xc0] sm:$0xff]  ;;  %v41_v54 = vld [vmem:[%s663_s1 + $0xd0] sm:$0xff] }
  0x25   :  { %v315_v1 = vpack.c.bf16 %v267_v63, %v263_v58  ;;  %v201_v2 = vmul.f32 0.2, %v73_v55  ;;  %v205_v3 = vmul.f32 0.2, %v77_v56  ;;  %vm144_vm0 = vcmp.ge.f32.partialorder %v80_v59, 0.0 }
  0x26   :  { %392 = vmatprep.subr.bf16.mxu1 %v318_v62  ;;  %vm148_vm1 = vcmp.ge.f32.partialorder %v84_v60, 0.0  ;;  %v208_v4 = vmul.f32 0.2, %v80_v59  ;;  %v212_v5 = vmul.f32 0.2, %v84_v60  ;;  %v82_v6 = vunpack.c.h.bf16 %v32_v61 }
  0x27   :  { %350 = vmatpush1.bf16.msra.mxu0 %v315_v1  ;;  %v265_v7 = vsel %vm137_vm14, %v73_v55, %v201_v2  ;;  %v269_v8 = vsel %vm141_vm15, %v77_v56, %v205_v3  ;;  %v86_v9 = vunpack.c.h.bf16 %v34_v0  ;;  %v79_v10 = vunpack.c.l.bf16 %v31_v49 }
  0x28   :  { %v317_v11 = vpack.c.bf16 %v269_v8, %v265_v7  ;;  %v272_v12 = vsel %vm144_vm0, %v80_v59, %v208_v4  ;;  %v276_v13 = vsel %vm148_vm1, %v84_v60, %v212_v5  ;;  %vm146_vm2 = vcmp.ge.f32.partialorder %v82_v6, 0.0  ;;  %v40_v59 = vld [vmem:[%s663_s1 + $0xc8] sm:$0xff]  ;;  %v42_v60 = vld [vmem:[%s663_s1 + $0xd8] sm:$0xff] }
  0x29   :  { %v320_v15 = vpack.c.bf16 %v276_v13, %v272_v12  ;;  %vm150_vm3 = vcmp.ge.f32.partialorder %v86_v9, 0.0  ;;  %v210_v16 = vmul.f32 0.2, %v82_v6  ;;  %v214_v17 = vmul.f32 0.2, %v86_v9 }
  0x2a   :  { %393 = vmatpush1.bf16.msra.mxu1 %v317_v11  ;;  %v83_v18 = vunpack.c.l.bf16 %v33_v50  ;;  %vm143_vm4 = vcmp.ge.f32.partialorder %v79_v10, 0.0  ;;  %v207_v19 = vmul.f32 0.2, %v79_v10  ;;  %v81_v20 = vunpack.c.l.bf16 %v32_v61 }
  0x2b   :  { %351 = vmatprep.subr.bf16.mxu0 %v320_v15  ;;  %v274_v21 = vsel %vm146_vm2, %v82_v6, %v210_v16  ;;  %v278_v22 = vsel %vm150_vm3, %v86_v9, %v214_v17  ;;  %v85_v23 = vunpack.c.l.bf16 %v34_v0  ;;  %v88_v25 = vunpack.c.h.bf16 %v35_v14 }
  0x2c   :  { %v322_v26 = vpack.c.bf16 %v278_v22, %v274_v21  ;;  %vm147_vm5 = vcmp.ge.f32.partialorder %v83_v18, 0.0  ;;  %v211_v27 = vmul.f32 0.2, %v83_v18  ;;  %v271_v28 = vsel %vm143_vm4, %v79_v10, %v207_v19  ;;  %v45_v21 = vld [vmem:[%s663_s1 + $0xf0] sm:$0xff] }
  0x2d   :  { %vm145_vm6 = vcmp.ge.f32.partialorder %v81_v20, 0.0  ;;  %vm149_vm7 = vcmp.ge.f32.partialorder %v85_v23, 0.0  ;;  %v209_v30 = vmul.f32 0.2, %v81_v20  ;;  %v213_v31 = vmul.f32 0.2, %v85_v23 }
  0x2e   :  { %394 = vmatprep.subr.bf16.mxu1 %v322_v26  ;;  %v275_v32 = vsel %vm147_vm5, %v83_v18, %v211_v27  ;;  %v92_v33 = vunpack.c.h.bf16 %v37_v24  ;;  %vm152_vm8 = vcmp.ge.f32.partialorder %v88_v25, 0.0  ;;  %v216_v34 = vmul.f32 0.2, %v88_v25 }
  0x2f   :  { %v319_v36 = vpack.c.bf16 %v275_v32, %v271_v28  ;;  %v273_v37 = vsel %vm145_vm6, %v81_v20, %v209_v30  ;;  %v277_v38 = vsel %vm149_vm7, %v85_v23, %v213_v31  ;;  %v90_v39 = vunpack.c.h.bf16 %v36_v29  ;;  %v43_v20 = vld [vmem:[%s663_s1 + $0xe0] sm:$0xff] }
  0x30   :  { %v321_v40 = vpack.c.bf16 %v277_v38, %v273_v37  ;;  %vm156_vm9 = vcmp.ge.f32.partialorder %v92_v33, 0.0  ;;  %v220_v41 = vmul.f32 0.2, %v92_v33  ;;  %v280_v42 = vsel %vm152_vm8, %v88_v25, %v216_v34  ;;  %v44_v25 = vld [vmem:[%s663_s1 + $0xe8] sm:$0xff] }
  0x31   :  { %352 = vmatpush1.bf16.msra.mxu0 %v319_v36  ;;  %v94_v43 = vunpack.c.h.bf16 %v38_v35  ;;  %vm154_vm10 = vcmp.ge.f32.partialorder %v90_v39, 0.0  ;;  %v218_v44 = vmul.f32 0.2, %v90_v39  ;;  %v87_v45 = vunpack.c.l.bf16 %v35_v14 }
  0x32   :  { %395 = vmatpush1.bf16.msra.mxu1 %v321_v40  ;;  %v284_v46 = vsel %vm156_vm9, %v92_v33, %v220_v41  ;;  %v91_v47 = vunpack.c.l.bf16 %v37_v24  ;;  %v89_v48 = vunpack.c.l.bf16 %v36_v29  ;;  %v93_v49 = vunpack.c.l.bf16 %v38_v35  ;;  %v46_v33 = vld [vmem:[%s663_s1 + $0xf8] sm:$0xff] }
  0x33   :  { %v324_v50 = vpack.c.bf16 %v284_v46, %v280_v42  ;;  %vm158_vm11 = vcmp.ge.f32.partialorder %v94_v43, 0.0  ;;  %v222_v51 = vmul.f32 0.2, %v94_v43  ;;  %v282_v52 = vsel %vm154_vm10, %v90_v39, %v218_v44 }
  0x34   :  { %vm151_vm12 = vcmp.ge.f32.partialorder %v87_v45, 0.0  ;;  %vm155_vm13 = vcmp.ge.f32.partialorder %v91_v47, 0.0  ;;  %v215_v55 = vmul.f32 0.2, %v87_v45  ;;  %v219_v56 = vmul.f32 0.2, %v91_v47 }
  0x35   :  { %353 = vmatprep.subr.bf16.mxu0 %v324_v50  ;;  %v286_v57 = vsel %vm158_vm11, %v94_v43, %v222_v51  ;;  %vm153_vm14 = vcmp.ge.f32.partialorder %v89_v48, 0.0  ;;  %vm157_vm15 = vcmp.ge.f32.partialorder %v93_v49, 0.0  ;;  %v217_v58 = vmul.f32 0.2, %v89_v48 }
  0x36   :  { %v326_v61 = vpack.c.bf16 %v286_v57, %v282_v52  ;;  %v279_v62 = vsel %vm151_vm12, %v87_v45, %v215_v55  ;;  %v283_v63 = vsel %vm155_vm13, %v91_v47, %v219_v56  ;;  %v221_v0 = vmul.f32 0.2, %v93_v49 }
  0x37   :  { %v323_v1 = vpack.c.bf16 %v283_v63, %v279_v62  ;;  %v281_v2 = vsel %vm153_vm14, %v89_v48, %v217_v58  ;;  %v96_v3 = vunpack.c.h.bf16 %v39_v53  ;;  %v100_v4 = vunpack.c.h.bf16 %v41_v54  ;;  %v512_v63 = vld [vmem:[%s664_s0] sm:$0xff]  }
  0x38   :  { %396 = vmatprep.subr.bf16.mxu1 %v326_v61  ;;  %v285_v5 = vsel %vm157_vm15, %v93_v49, %v221_v0  ;;  %v98_v6 = vunpack.c.h.bf16 %v40_v59  ;;  %v102_v7 = vunpack.c.h.bf16 %v42_v60  ;;  %v95_v8 = vunpack.c.l.bf16 %v39_v53 }
  0x39   :  { %354 = vmatpush1.bf16.msra.mxu0 %v323_v1  ;;  %v325_v9 = vpack.c.bf16 %v285_v5, %v281_v2  ;;  %vm160_vm0 = vcmp.ge.f32.partialorder %v96_v3, 0.0  ;;  %vm164_vm1 = vcmp.ge.f32.partialorder %v100_v4, 0.0  ;;  %v224_v10 = vmul.f32 0.2, %v96_v3 }
  0x3a   :  { %v228_v11 = vmul.f32 0.2, %v100_v4  ;;  %vm162_vm2 = vcmp.ge.f32.partialorder %v98_v6, 0.0  ;;  %vm166_vm3 = vcmp.ge.f32.partialorder %v102_v7, 0.0  ;;  %v226_v12 = vmul.f32 0.2, %v98_v6 }
  0x3b   :  { %397 = vmatpush1.bf16.msra.mxu1 %v325_v9  ;;  %v288_v13 = vsel %vm160_vm0, %v96_v3, %v224_v10  ;;  %v230_v14 = vmul.f32 0.2, %v102_v7  ;;  %v99_v15 = vunpack.c.l.bf16 %v41_v54  ;;  %vm159_vm4 = vcmp.ge.f32.partialorder %v95_v8, 0.0 }
  0x3c   :  { %v292_v16 = vsel %vm164_vm1, %v100_v4, %v228_v11  ;;  %v290_v17 = vsel %vm162_vm2, %v98_v6, %v226_v12  ;;  %v223_v18 = vmul.f32 0.2, %v95_v8  ;;  %v97_v19 = vunpack.c.l.bf16 %v40_v59 }
  0x3d   :  { %v328_v22 = vpack.c.bf16 %v292_v16, %v288_v13  ;;  %v294_v23 = vsel %vm166_vm3, %v102_v7, %v230_v14  ;;  %vm163_vm5 = vcmp.ge.f32.partialorder %v99_v15, 0.0  ;;  %v227_v24 = vmul.f32 0.2, %v99_v15 }
  0x3e   :  { %v330_v26 = vpack.c.bf16 %v294_v23, %v290_v17  ;;  %v287_v27 = vsel %vm159_vm4, %v95_v8, %v223_v18  ;;  %v101_v28 = vunpack.c.l.bf16 %v42_v60  ;;  %vm161_vm6 = vcmp.ge.f32.partialorder %v97_v19, 0.0 }
  0x3f   :  { %355 = vmatprep.subr.bf16.mxu0 %v328_v22  ;;  %v291_v29 = vsel %vm163_vm5, %v99_v15, %v227_v24  ;;  %v225_v30 = vmul.f32 0.2, %v97_v19  ;;  %v104_v31 = vunpack.c.h.bf16 %v43_v20  ;;  %v108_v32 = vunpack.c.h.bf16 %v45_v21 }
  0x40   :  { %398 = vmatprep.subr.bf16.mxu1 %v330_v26  ;;  %v327_v34 = vpack.c.bf16 %v291_v29, %v287_v27  ;;  %vm165_vm7 = vcmp.ge.f32.partialorder %v101_v28, 0.0  ;;  %v229_v35 = vmul.f32 0.2, %v101_v28  ;;  %v106_v36 = vunpack.c.h.bf16 %v44_v25 }
  0x41   :  { %v289_v37 = vsel %vm161_vm6, %v97_v19, %v225_v30  ;;  %vm168_vm8 = vcmp.ge.f32.partialorder %v104_v31, 0.0  ;;  %vm172_vm9 = vcmp.ge.f32.partialorder %v108_v32, 0.0  ;;  %v232_v38 = vmul.f32 0.2, %v104_v31 }
  0x42   :  { %356 = vmatpush1.bf16.msra.mxu0 %v327_v34  ;;  %v293_v39 = vsel %vm165_vm7, %v101_v28, %v229_v35  ;;  %v236_v40 = vmul.f32 0.2, %v108_v32  ;;  %v110_v41 = vunpack.c.h.bf16 %v46_v33  ;;  %vm170_vm10 = vcmp.ge.f32.partialorder %v106_v36, 0.0 }
  0x43   :  { %v329_v42 = vpack.c.bf16 %v293_v39, %v289_v37  ;;  %v296_v43 = vsel %vm168_vm8, %v104_v31, %v232_v38  ;;  %v234_v44 = vmul.f32 0.2, %v106_v36  ;;  %v103_v45 = vunpack.c.l.bf16 %v43_v20 }
  0x44   :  { %v300_v46 = vsel %vm172_vm9, %v108_v32, %v236_v40  ;;  %vm174_vm11 = vcmp.ge.f32.partialorder %v110_v41, 0.0  ;;  %v238_v47 = vmul.f32 0.2, %v110_v41  ;;  %v107_v48 = vunpack.c.l.bf16 %v45_v21 }
  0x45   :  { %399 = vmatpush1.bf16.msra.mxu1 %v329_v42  ;;  %v332_v49 = vpack.c.bf16 %v300_v46, %v296_v43  ;;  %v298_v50 = vsel %vm170_vm10, %v106_v36, %v234_v44  ;;  %vm167_vm12 = vcmp.ge.f32.partialorder %v103_v45, 0.0  ;;  %v231_v51 = vmul.f32 0.2, %v103_v45 }
  0x46   :  { %v302_v52 = vsel %vm174_vm11, %v110_v41, %v238_v47  ;;  %vm171_vm13 = vcmp.ge.f32.partialorder %v107_v48, 0.0  ;;  %v235_v53 = vmul.f32 0.2, %v107_v48  ;;  %v105_v54 = vunpack.c.l.bf16 %v44_v25 }
  0x47   :  { %357 = vmatprep.subr.bf16.mxu0 %v332_v49  ;;  %v334_v55 = vpack.c.bf16 %v302_v52, %v298_v50  ;;  %v295_v56 = vsel %vm167_vm12, %v103_v45, %v231_v51  ;;  %v109_v57 = vunpack.c.l.bf16 %v46_v33  ;;  %vm467_vm0 = vcmask 7168  }
  0x48   :  { %v299_v58 = vsel %vm171_vm13, %v107_v48, %v235_v53  ;;  %vm169_vm14 = vcmp.ge.f32.partialorder %v105_v54, 0.0  ;;  %v233_v59 = vmul.f32 0.2, %v105_v54 }
  0x49   :  { %400 = vmatprep.subr.bf16.mxu1 %v334_v55  ;;  %v331_v60 = vpack.c.bf16 %v299_v58, %v295_v56  ;;  %vm173_vm15 = vcmp.ge.f32.partialorder %v109_v57, 0.0  ;;  %v237_v61 = vmul.f32 0.2, %v109_v57 }
  0x4a   :  { %v297_v62 = vsel %vm169_vm14, %v105_v54, %v233_v59 }
  0x4b   :  { %358 = vmatpush1.bf16.msra.mxu0 %v331_v60  ;;  %v301_v0 = vsel %vm173_vm15, %v109_v57, %v237_v61 }
  0x4c   :  { %v333_v1 = vpack.c.bf16 %v301_v0, %v297_v62 }
  0x4e   :  { %401 = vmatpush1.bf16.msra.mxu1 %v333_v1  ;;  %376 = vmatmul.mubr.bf16.vlgmr.msra.gmra.mrb[0].mxu0 %v512_v63 }
  0x51   :  { %419 = vmatmul.mubr.bf16.vlgmr.msra.gmra.mrb[0].mxu1 %v512_v63 }
 0x121   :  { %v377_v2 = vpop.f32.mrb[0].mxu0 }
 0x122   :  { %v470_v3 = vmul.f32 %v377_v2, %v377_v2  ;;  %v379_v4 = vpop.f32.mrb[1].mxu0 }
 0x123   :  { %v507_v5 = vpack.c.bf16 %v379_v4, %v377_v2  ;;  %v457_v6 = vadd.f32 %v379_v4, %v377_v2  ;;  %v471_v7 = vmul.f32 %v379_v4, %v379_v4  ;;  %v381_v8 = vpop.f32.mrb[2].mxu0 }
 0x124   :  { %v420_v9 = vpop.f32.mrb[0].mxu1  ;;  %v474_v10 = vmul.f32 %v381_v8, %v381_v8  ;;  %v383_v11 = vpop.f32.mrb[3].mxu0 }
 0x125   :  { %v472_v12 = vmul.f32 %v420_v9, %v420_v9  ;;  %453 = vst [vmem:[%s665_s2] sm:$0xff] %v507_v5  ;;  %v422_v13 = vpop.f32.mrb[1].mxu1  ;;  %v509_v14 = vpack.c.bf16 %v383_v11, %v381_v8  ;;  %v462_v15 = vadd.f32 %v383_v11, %v381_v8  ;;  %v475_v16 = vmul.f32 %v383_v11, %v383_v11 }
 0x126   :  { %v508_v17 = vpack.c.bf16 %v422_v13, %v420_v9  ;;  %v424_v18 = vpop.f32.mrb[2].mxu1  ;;  %v458_v19 = vadd.f32 %v457_v6, %v420_v9  ;;  %v478_v20 = vadd.f32 %v471_v7, %v470_v3  ;;  %v473_v27 = vmul.f32 %v422_v13, %v422_v13 }
 0x127   :  { %v476_v21 = vmul.f32 %v424_v18, %v424_v18  ;;  %455 = vst [vmem:[%s665_s2 + $0x10] sm:$0xff] %v509_v14  ;;  %v483_v22 = vadd.f32 %v475_v16, %v474_v10  ;;  %v426_v23 = vpop.f32.mrb[3].mxu1  ;;  %v463_v24 = vadd.f32 %v462_v15, %v424_v18 }
 0x128   :  { %454 = vst [vmem:[%s665_s2 + $0x8] sm:$0xff] %v508_v17  ;;  %v510_v25 = vpack.c.bf16 %v426_v23, %v424_v18  ;;  %v459_v26 = vadd.f32 %v458_v19, %v422_v13  ;;  %v479_v28 = vadd.f32 %v478_v20, %v472_v12  ;;  %v477_v29 = vmul.f32 %v426_v23, %v426_v23 }
 0x129   :  { %v464_v30 = vadd.f32 %v463_v24, %v426_v23  ;;  %v484_v31 = vadd.f32 %v483_v22, %v476_v21 }
 0x12a   :  { %456 = vst [vmem:[%s665_s2 + $0x18] sm:$0xff] %v510_v25  ;;  %460 = vadd.xlane.f32.xlu0 %v459_v26  ;;  %v480_v32 = vadd.f32 %v479_v28, %v473_v27 }
 0x12b   :  { %v485_v33 = vadd.f32 %v484_v31, %v477_v29 }
 0x12c   :  { %481 = vadd.xlane.f32.xlu1 %v480_v32 }
 0x12e   :  { %465 = vadd.xlane.f32.xlu0 %v464_v30 }
 0x130   :  { %486 = vadd.xlane.f32.xlu1 %v485_v33 }
 0x1b7   :  { %v461_v34 = vpop.xlane.xlu0 %460 }
 0x1b8   :  { %468 = vst.msk [vmem:[%s666_s3] sm:$0xff] %vm467_vm0, %v461_v34 }
 0x1b9   :  { %v482_v35 = vpop.xlane.xlu1 %481 }
 0x1ba   :  { %488 = vst.msk [vmem:[%s667_s4] sm:$0xff] %vm467_vm0, %v482_v35 }
 0x1bb   :  { %v466_v36 = vpop.xlane.xlu0 %465 }
 0x1bc   :  { %469 = vst.msk [vmem:[%s666_s3 + $0x8] sm:$0xff] %vm467_vm0, %v466_v36 }
 0x1bd   :  { %v487_v37 = vpop.xlane.xlu1 %486 }
 0x1be   :  { %489 = vst.msk [vmem:[%s667_s4 + $0x8] sm:$0xff] %vm467_vm0, %v487_v37 }

// kernel: tile.23
= control target key start
LH: loop header
LB: loop body
LE: loop exit
PB: predicated region body
PF: predicated region fallthrough
CT: control target
= control target key end

     0   :  { %s28_s0 = inlined_call_operand.vmem [shape: f32[16], index: 0, kind: input, shape index: {}]   ;;  %s29_s1 = inlined_call_operand.vmem [shape: f32[16,16], index: 1, kind: output, shape index: {}]  }
   0x1   :  { %v4_v0 = vld [vmem:[%s28_s0] ss:$0 sm:$0xff] }
   0x2   :  { %5 = vst [vmem:[%s29_s1] sm:$0xff] %v4_v0  ;;  %8 = vst [vmem:[%s29_s1 + $0x8] sm:$0xff] %v4_v0 }

// kernel: tile.0
= control target key start
LH: loop header
LB: loop body
LE: loop exit
PB: predicated region body
PF: predicated region fallthrough
CT: control target
= control target key end

     0   :  { %vm3_vm0 = vcmask 7168   ;;  %s550_s10 = smov 127   ;;  %s551_s27 = smov 125   ;;  %s1092_s0 = inlined_call_operand.vmem [shape: f32[16,16], index: 0, kind: input, shape index: {}]   ;;  %s1093_s1 = inlined_call_operand.vmem [shape: f32[256,1], index: 1, kind: output, shape index: {}]  }
   0x1   :  { %v44_v0 = vld [vmem:[%s1092_s0] sm:$0xff]   ;;  %v412_v1 = vld [vmem:[%s1092_s0 + $0x8] sm:$0xff]   ;;  %s549_s0 = smov 126   ;;  %s552_s28 = smov 124  }
   0x2   :  { %45 = vrot.lane.b32.xlu1 %v44_v0, %s549_s0  ;;  %20 = vrot.lane.b32.xlu0 %v44_v0, %s550_s10  ;;  %4 = vst.msk [vmem:[%s1093_s1] ss:$16 sm:$0x3] %vm3_vm0, %v44_v0   ;;  %5 = vst.msk [vmem:[%s1093_s1] ss:$16 sm:$0xc] %vm3_vm0, %v44_v0  }
   0x3   :  { %6 = vst.msk [vmem:[%s1093_s1] ss:$16 sm:$0x30] %vm3_vm0, %v44_v0   ;;  %7 = vst.msk [vmem:[%s1093_s1] ss:$16 sm:$0xc0] %vm3_vm0, %v44_v0  }
   0x4   :  { %395 = vst.msk [vmem:[%s1093_s1 + $0x80] ss:$16 sm:$0x3] %vm3_vm0, %v412_v1   ;;  %396 = vst.msk [vmem:[%s1093_s1 + $0x80] ss:$16 sm:$0xc] %vm3_vm0, %v412_v1  }
   0x5   :  { %397 = vst.msk [vmem:[%s1093_s1 + $0x80] ss:$16 sm:$0x30] %vm3_vm0, %v412_v1   ;;  %398 = vst.msk [vmem:[%s1093_s1 + $0x80] ss:$16 sm:$0xc0] %vm3_vm0, %v412_v1  }
   0x6   :  { %58 = vrot.lane.b32.xlu1 %v412_v1, %s549_s0  ;;  %33 = vrot.lane.b32.xlu0 %v412_v1, %s550_s10  ;;  %s553_s29 = smov 123   ;;  %s554_s30 = smov 122  }
   0x7   :  { %s555_s2 = smov 121   ;;  %s556_s3 = smov 120  }
   0x8   :  { %s557_s4 = smov 119   ;;  %s558_s5 = smov 118  }
   0x9   :  { %s559_s6 = smov 117   ;;  %s560_s7 = smov 116  }
   0xa   :  { %83 = vrot.lane.b32.xlu1 %v412_v1, %s551_s27  ;;  %70 = vrot.lane.b32.xlu0 %v44_v0, %s551_s27  ;;  %s561_s8 = smov 115   ;;  %s562_s9 = smov 114  }
   0xb   :  { %s563_s0 = smov 113  }
   0xe   :  { %108 = vrot.lane.b32.xlu1 %v412_v1, %s552_s28  ;;  %95 = vrot.lane.b32.xlu0 %v44_v0, %s552_s28 }
  0x12   :  { %133 = vrot.lane.b32.xlu1 %v412_v1, %s553_s29  ;;  %120 = vrot.lane.b32.xlu0 %v44_v0, %s553_s29 }
  0x16   :  { %158 = vrot.lane.b32.xlu1 %v412_v1, %s554_s30  ;;  %145 = vrot.lane.b32.xlu0 %v44_v0, %s554_s30 }
  0x1a   :  { %183 = vrot.lane.b32.xlu1 %v412_v1, %s555_s2  ;;  %170 = vrot.lane.b32.xlu0 %v44_v0, %s555_s2 }
  0x1e   :  { %208 = vrot.lane.b32.xlu1 %v412_v1, %s556_s3  ;;  %195 = vrot.lane.b32.xlu0 %v44_v0, %s556_s3 }
  0x22   :  { %233 = vrot.lane.b32.xlu1 %v412_v1, %s557_s4  ;;  %220 = vrot.lane.b32.xlu0 %v44_v0, %s557_s4 }
  0x26   :  { %258 = vrot.lane.b32.xlu1 %v412_v1, %s558_s5  ;;  %245 = vrot.lane.b32.xlu0 %v44_v0, %s558_s5 }
  0x2a   :  { %283 = vrot.lane.b32.xlu1 %v412_v1, %s559_s6  ;;  %270 = vrot.lane.b32.xlu0 %v44_v0, %s559_s6 }
  0x2e   :  { %308 = vrot.lane.b32.xlu1 %v412_v1, %s560_s7  ;;  %295 = vrot.lane.b32.xlu0 %v44_v0, %s560_s7 }
  0x32   :  { %333 = vrot.lane.b32.xlu1 %v412_v1, %s561_s8  ;;  %320 = vrot.lane.b32.xlu0 %v44_v0, %s561_s8 }
  0x36   :  { %358 = vrot.lane.b32.xlu1 %v412_v1, %s562_s9  ;;  %345 = vrot.lane.b32.xlu0 %v44_v0, %s562_s9 }
  0x3a   :  { %383 = vrot.lane.b32.xlu1 %v412_v1, %s563_s0  ;;  %370 = vrot.lane.b32.xlu0 %v44_v0, %s563_s0 }
  0x74   :  { %v46_v2 = vpop.permute.xlu1 %45   ;;  %v21_v3 = vpop.permute.xlu0 %20  }
  0x75   :  { %408 = vst.msk [vmem:[%s1093_s1 + $0x2] ss:$16 sm:$0x3] %vm3_vm0, %v46_v2   ;;  %409 = vst.msk [vmem:[%s1093_s1 + $0x2] ss:$16 sm:$0xc] %vm3_vm0, %v46_v2  }
  0x76   :  { %410 = vst.msk [vmem:[%s1093_s1 + $0x2] ss:$16 sm:$0x30] %vm3_vm0, %v46_v2   ;;  %411 = vst.msk [vmem:[%s1093_s1 + $0x2] ss:$16 sm:$0xc0] %vm3_vm0, %v46_v2  }
  0x77   :  { %399 = vst.msk [vmem:[%s1093_s1 + $0x1] ss:$16 sm:$0x3] %vm3_vm0, %v21_v3   ;;  %400 = vst.msk [vmem:[%s1093_s1 + $0x1] ss:$16 sm:$0xc] %vm3_vm0, %v21_v3  }
  0x78   :  { %401 = vst.msk [vmem:[%s1093_s1 + $0x1] ss:$16 sm:$0x30] %vm3_vm0, %v21_v3   ;;  %402 = vst.msk [vmem:[%s1093_s1 + $0x1] ss:$16 sm:$0xc0] %vm3_vm0, %v21_v3   ;;  %v59_v4 = vpop.permute.xlu1 %58   ;;  %v34_v5 = vpop.permute.xlu0 %33  }
  0x79   :  { %413 = vst.msk [vmem:[%s1093_s1 + $0x82] ss:$16 sm:$0x3] %vm3_vm0, %v59_v4   ;;  %414 = vst.msk [vmem:[%s1093_s1 + $0x82] ss:$16 sm:$0xc] %vm3_vm0, %v59_v4  }
  0x7a   :  { %415 = vst.msk [vmem:[%s1093_s1 + $0x82] ss:$16 sm:$0x30] %vm3_vm0, %v59_v4   ;;  %416 = vst.msk [vmem:[%s1093_s1 + $0x82] ss:$16 sm:$0xc0] %vm3_vm0, %v59_v4  }
  0x7b   :  { %404 = vst.msk [vmem:[%s1093_s1 + $0x81] ss:$16 sm:$0x3] %vm3_vm0, %v34_v5   ;;  %405 = vst.msk [vmem:[%s1093_s1 + $0x81] ss:$16 sm:$0xc] %vm3_vm0, %v34_v5  }
  0x7c   :  { %406 = vst.msk [vmem:[%s1093_s1 + $0x81] ss:$16 sm:$0x30] %vm3_vm0, %v34_v5   ;;  %407 = vst.msk [vmem:[%s1093_s1 + $0x81] ss:$16 sm:$0xc0] %vm3_vm0, %v34_v5   ;;  %v84_v6 = vpop.permute.xlu1 %83   ;;  %v71_v7 = vpop.permute.xlu0 %70  }
  0x7d   :  { %422 = vst.msk [vmem:[%s1093_s1 + $0x83] ss:$16 sm:$0x3] %vm3_vm0, %v84_v6   ;;  %423 = vst.msk [vmem:[%s1093_s1 + $0x83] ss:$16 sm:$0xc] %vm3_vm0, %v84_v6  }
  0x7e   :  { %424 = vst.msk [vmem:[%s1093_s1 + $0x83] ss:$16 sm:$0x30] %vm3_vm0, %v84_v6   ;;  %425 = vst.msk [vmem:[%s1093_s1 + $0x83] ss:$16 sm:$0xc0] %vm3_vm0, %v84_v6  }
  0x7f   :  { %417 = vst.msk [vmem:[%s1093_s1 + $0x3] ss:$16 sm:$0x3] %vm3_vm0, %v71_v7   ;;  %418 = vst.msk [vmem:[%s1093_s1 + $0x3] ss:$16 sm:$0xc] %vm3_vm0, %v71_v7  }
  0x80   :  { %419 = vst.msk [vmem:[%s1093_s1 + $0x3] ss:$16 sm:$0x30] %vm3_vm0, %v71_v7   ;;  %420 = vst.msk [vmem:[%s1093_s1 + $0x3] ss:$16 sm:$0xc0] %vm3_vm0, %v71_v7   ;;  %v109_v8 = vpop.permute.xlu1 %108   ;;  %v96_v9 = vpop.permute.xlu0 %95  }
  0x81   :  { %431 = vst.msk [vmem:[%s1093_s1 + $0x84] ss:$16 sm:$0x3] %vm3_vm0, %v109_v8   ;;  %432 = vst.msk [vmem:[%s1093_s1 + $0x84] ss:$16 sm:$0xc] %vm3_vm0, %v109_v8  }
  0x82   :  { %433 = vst.msk [vmem:[%s1093_s1 + $0x84] ss:$16 sm:$0x30] %vm3_vm0, %v109_v8   ;;  %434 = vst.msk [vmem:[%s1093_s1 + $0x84] ss:$16 sm:$0xc0] %vm3_vm0, %v109_v8  }
  0x83   :  { %426 = vst.msk [vmem:[%s1093_s1 + $0x4] ss:$16 sm:$0x3] %vm3_vm0, %v96_v9   ;;  %427 = vst.msk [vmem:[%s1093_s1 + $0x4] ss:$16 sm:$0xc] %vm3_vm0, %v96_v9  }
  0x84   :  { %428 = vst.msk [vmem:[%s1093_s1 + $0x4] ss:$16 sm:$0x30] %vm3_vm0, %v96_v9   ;;  %429 = vst.msk [vmem:[%s1093_s1 + $0x4] ss:$16 sm:$0xc0] %vm3_vm0, %v96_v9   ;;  %v134_v10 = vpop.permute.xlu1 %133   ;;  %v121_v11 = vpop.permute.xlu0 %120  }
  0x85   :  { %440 = vst.msk [vmem:[%s1093_s1 + $0x85] ss:$16 sm:$0x3] %vm3_vm0, %v134_v10   ;;  %441 = vst.msk [vmem:[%s1093_s1 + $0x85] ss:$16 sm:$0xc] %vm3_vm0, %v134_v10  }
  0x86   :  { %442 = vst.msk [vmem:[%s1093_s1 + $0x85] ss:$16 sm:$0x30] %vm3_vm0, %v134_v10   ;;  %443 = vst.msk [vmem:[%s1093_s1 + $0x85] ss:$16 sm:$0xc0] %vm3_vm0, %v134_v10  }
  0x87   :  { %435 = vst.msk [vmem:[%s1093_s1 + $0x5] ss:$16 sm:$0x3] %vm3_vm0, %v121_v11   ;;  %436 = vst.msk [vmem:[%s1093_s1 + $0x5] ss:$16 sm:$0xc] %vm3_vm0, %v121_v11  }
  0x88   :  { %437 = vst.msk [vmem:[%s1093_s1 + $0x5] ss:$16 sm:$0x30] %vm3_vm0, %v121_v11   ;;  %438 = vst.msk [vmem:[%s1093_s1 + $0x5] ss:$16 sm:$0xc0] %vm3_vm0, %v121_v11   ;;  %v159_v12 = vpop.permute.xlu1 %158   ;;  %v146_v13 = vpop.permute.xlu0 %145  }
  0x89   :  { %449 = vst.msk [vmem:[%s1093_s1 + $0x86] ss:$16 sm:$0x3] %vm3_vm0, %v159_v12   ;;  %450 = vst.msk [vmem:[%s1093_s1 + $0x86] ss:$16 sm:$0xc] %vm3_vm0, %v159_v12  }
  0x8a   :  { %451 = vst.msk [vmem:[%s1093_s1 + $0x86] ss:$16 sm:$0x30] %vm3_vm0, %v159_v12   ;;  %452 = vst.msk [vmem:[%s1093_s1 + $0x86] ss:$16 sm:$0xc0] %vm3_vm0, %v159_v12  }
  0x8b   :  { %444 = vst.msk [vmem:[%s1093_s1 + $0x6] ss:$16 sm:$0x3] %vm3_vm0, %v146_v13   ;;  %445 = vst.msk [vmem:[%s1093_s1 + $0x6] ss:$16 sm:$0xc] %vm3_vm0, %v146_v13  }
  0x8c   :  { %446 = vst.msk [vmem:[%s1093_s1 + $0x6] ss:$16 sm:$0x30] %vm3_vm0, %v146_v13   ;;  %447 = vst.msk [vmem:[%s1093_s1 + $0x6] ss:$16 sm:$0xc0] %vm3_vm0, %v146_v13   ;;  %v184_v14 = vpop.permute.xlu1 %183   ;;  %v171_v15 = vpop.permute.xlu0 %170  }
  0x8d   :  { %458 = vst.msk [vmem:[%s1093_s1 + $0x87] ss:$16 sm:$0x3] %vm3_vm0, %v184_v14   ;;  %459 = vst.msk [vmem:[%s1093_s1 + $0x87] ss:$16 sm:$0xc] %vm3_vm0, %v184_v14  }
  0x8e   :  { %460 = vst.msk [vmem:[%s1093_s1 + $0x87] ss:$16 sm:$0x30] %vm3_vm0, %v184_v14   ;;  %461 = vst.msk [vmem:[%s1093_s1 + $0x87] ss:$16 sm:$0xc0] %vm3_vm0, %v184_v14  }
  0x8f   :  { %453 = vst.msk [vmem:[%s1093_s1 + $0x7] ss:$16 sm:$0x3] %vm3_vm0, %v171_v15   ;;  %454 = vst.msk [vmem:[%s1093_s1 + $0x7] ss:$16 sm:$0xc] %vm3_vm0, %v171_v15  }
  0x90   :  { %455 = vst.msk [vmem:[%s1093_s1 + $0x7] ss:$16 sm:$0x30] %vm3_vm0, %v171_v15   ;;  %456 = vst.msk [vmem:[%s1093_s1 + $0x7] ss:$16 sm:$0xc0] %vm3_vm0, %v171_v15   ;;  %v209_v16 = vpop.permute.xlu1 %208   ;;  %v196_v17 = vpop.permute.xlu0 %195  }
  0x91   :  { %467 = vst.msk [vmem:[%s1093_s1 + $0x88] ss:$16 sm:$0x3] %vm3_vm0, %v209_v16   ;;  %468 = vst.msk [vmem:[%s1093_s1 + $0x88] ss:$16 sm:$0xc] %vm3_vm0, %v209_v16  }
  0x92   :  { %469 = vst.msk [vmem:[%s1093_s1 + $0x88] ss:$16 sm:$0x30] %vm3_vm0, %v209_v16   ;;  %470 = vst.msk [vmem:[%s1093_s1 + $0x88] ss:$16 sm:$0xc0] %vm3_vm0, %v209_v16  }
  0x93   :  { %462 = vst.msk [vmem:[%s1093_s1 + $0x8] ss:$16 sm:$0x3] %vm3_vm0, %v196_v17   ;;  %463 = vst.msk [vmem:[%s1093_s1 + $0x8] ss:$16 sm:$0xc] %vm3_vm0, %v196_v17  }
  0x94   :  { %464 = vst.msk [vmem:[%s1093_s1 + $0x8] ss:$16 sm:$0x30] %vm3_vm0, %v196_v17   ;;  %465 = vst.msk [vmem:[%s1093_s1 + $0x8] ss:$16 sm:$0xc0] %vm3_vm0, %v196_v17   ;;  %v234_v18 = vpop.permute.xlu1 %233   ;;  %v221_v19 = vpop.permute.xlu0 %220  }
  0x95   :  { %476 = vst.msk [vmem:[%s1093_s1 + $0x89] ss:$16 sm:$0x3] %vm3_vm0, %v234_v18   ;;  %477 = vst.msk [vmem:[%s1093_s1 + $0x89] ss:$16 sm:$0xc] %vm3_vm0, %v234_v18  }
  0x96   :  { %478 = vst.msk [vmem:[%s1093_s1 + $0x89] ss:$16 sm:$0x30] %vm3_vm0, %v234_v18   ;;  %479 = vst.msk [vmem:[%s1093_s1 + $0x89] ss:$16 sm:$0xc0] %vm3_vm0, %v234_v18  }
  0x97   :  { %471 = vst.msk [vmem:[%s1093_s1 + $0x9] ss:$16 sm:$0x3] %vm3_vm0, %v221_v19   ;;  %472 = vst.msk [vmem:[%s1093_s1 + $0x9] ss:$16 sm:$0xc] %vm3_vm0, %v221_v19  }
  0x98   :  { %473 = vst.msk [vmem:[%s1093_s1 + $0x9] ss:$16 sm:$0x30] %vm3_vm0, %v221_v19   ;;  %474 = vst.msk [vmem:[%s1093_s1 + $0x9] ss:$16 sm:$0xc0] %vm3_vm0, %v221_v19   ;;  %v259_v20 = vpop.permute.xlu1 %258   ;;  %v246_v21 = vpop.permute.xlu0 %245  }
  0x99   :  { %485 = vst.msk [vmem:[%s1093_s1 + $0x8a] ss:$16 sm:$0x3] %vm3_vm0, %v259_v20   ;;  %486 = vst.msk [vmem:[%s1093_s1 + $0x8a] ss:$16 sm:$0xc] %vm3_vm0, %v259_v20  }
  0x9a   :  { %487 = vst.msk [vmem:[%s1093_s1 + $0x8a] ss:$16 sm:$0x30] %vm3_vm0, %v259_v20   ;;  %488 = vst.msk [vmem:[%s1093_s1 + $0x8a] ss:$16 sm:$0xc0] %vm3_vm0, %v259_v20  }
  0x9b   :  { %480 = vst.msk [vmem:[%s1093_s1 + $0xa] ss:$16 sm:$0x3] %vm3_vm0, %v246_v21   ;;  %481 = vst.msk [vmem:[%s1093_s1 + $0xa] ss:$16 sm:$0xc] %vm3_vm0, %v246_v21  }
  0x9c   :  { %482 = vst.msk [vmem:[%s1093_s1 + $0xa] ss:$16 sm:$0x30] %vm3_vm0, %v246_v21   ;;  %483 = vst.msk [vmem:[%s1093_s1 + $0xa] ss:$16 sm:$0xc0] %vm3_vm0, %v246_v21   ;;  %v284_v22 = vpop.permute.xlu1 %283   ;;  %v271_v23 = vpop.permute.xlu0 %270  }
  0x9d   :  { %494 = vst.msk [vmem:[%s1093_s1 + $0x8b] ss:$16 sm:$0x3] %vm3_vm0, %v284_v22   ;;  %495 = vst.msk [vmem:[%s1093_s1 + $0x8b] ss:$16 sm:$0xc] %vm3_vm0, %v284_v22  }
  0x9e   :  { %496 = vst.msk [vmem:[%s1093_s1 + $0x8b] ss:$16 sm:$0x30] %vm3_vm0, %v284_v22   ;;  %497 = vst.msk [vmem:[%s1093_s1 + $0x8b] ss:$16 sm:$0xc0] %vm3_vm0, %v284_v22  }
  0x9f   :  { %489 = vst.msk [vmem:[%s1093_s1 + $0xb] ss:$16 sm:$0x3] %vm3_vm0, %v271_v23   ;;  %490 = vst.msk [vmem:[%s1093_s1 + $0xb] ss:$16 sm:$0xc] %vm3_vm0, %v271_v23  }
  0xa0   :  { %491 = vst.msk [vmem:[%s1093_s1 + $0xb] ss:$16 sm:$0x30] %vm3_vm0, %v271_v23   ;;  %492 = vst.msk [vmem:[%s1093_s1 + $0xb] ss:$16 sm:$0xc0] %vm3_vm0, %v271_v23   ;;  %v309_v24 = vpop.permute.xlu1 %308   ;;  %v296_v25 = vpop.permute.xlu0 %295  }
  0xa1   :  { %503 = vst.msk [vmem:[%s1093_s1 + $0x8c] ss:$16 sm:$0x3] %vm3_vm0, %v309_v24   ;;  %504 = vst.msk [vmem:[%s1093_s1 + $0x8c] ss:$16 sm:$0xc] %vm3_vm0, %v309_v24  }
  0xa2   :  { %505 = vst.msk [vmem:[%s1093_s1 + $0x8c] ss:$16 sm:$0x30] %vm3_vm0, %v309_v24   ;;  %506 = vst.msk [vmem:[%s1093_s1 + $0x8c] ss:$16 sm:$0xc0] %vm3_vm0, %v309_v24  }
  0xa3   :  { %498 = vst.msk [vmem:[%s1093_s1 + $0xc] ss:$16 sm:$0x3] %vm3_vm0, %v296_v25   ;;  %499 = vst.msk [vmem:[%s1093_s1 + $0xc] ss:$16 sm:$0xc] %vm3_vm0, %v296_v25  }
  0xa4   :  { %500 = vst.msk [vmem:[%s1093_s1 + $0xc] ss:$16 sm:$0x30] %vm3_vm0, %v296_v25   ;;  %501 = vst.msk [vmem:[%s1093_s1 + $0xc] ss:$16 sm:$0xc0] %vm3_vm0, %v296_v25   ;;  %v334_v26 = vpop.permute.xlu1 %333   ;;  %v321_v27 = vpop.permute.xlu0 %320  }
  0xa5   :  { %512 = vst.msk [vmem:[%s1093_s1 + $0x8d] ss:$16 sm:$0x3] %vm3_vm0, %v334_v26   ;;  %513 = vst.msk [vmem:[%s1093_s1 + $0x8d] ss:$16 sm:$0xc] %vm3_vm0, %v334_v26  }
  0xa6   :  { %514 = vst.msk [vmem:[%s1093_s1 + $0x8d] ss:$16 sm:$0x30] %vm3_vm0, %v334_v26   ;;  %515 = vst.msk [vmem:[%s1093_s1 + $0x8d] ss:$16 sm:$0xc0] %vm3_vm0, %v334_v26  }
  0xa7   :  { %507 = vst.msk [vmem:[%s1093_s1 + $0xd] ss:$16 sm:$0x3] %vm3_vm0, %v321_v27   ;;  %508 = vst.msk [vmem:[%s1093_s1 + $0xd] ss:$16 sm:$0xc] %vm3_vm0, %v321_v27  }
  0xa8   :  { %509 = vst.msk [vmem:[%s1093_s1 + $0xd] ss:$16 sm:$0x30] %vm3_vm0, %v321_v27   ;;  %510 = vst.msk [vmem:[%s1093_s1 + $0xd] ss:$16 sm:$0xc0] %vm3_vm0, %v321_v27   ;;  %v359_v28 = vpop.permute.xlu1 %358   ;;  %v346_v29 = vpop.permute.xlu0 %345  }
  0xa9   :  { %521 = vst.msk [vmem:[%s1093_s1 + $0x8e] ss:$16 sm:$0x3] %vm3_vm0, %v359_v28   ;;  %522 = vst.msk [vmem:[%s1093_s1 + $0x8e] ss:$16 sm:$0xc] %vm3_vm0, %v359_v28  }
  0xaa   :  { %523 = vst.msk [vmem:[%s1093_s1 + $0x8e] ss:$16 sm:$0x30] %vm3_vm0, %v359_v28   ;;  %524 = vst.msk [vmem:[%s1093_s1 + $0x8e] ss:$16 sm:$0xc0] %vm3_vm0, %v359_v28  }
  0xab   :  { %516 = vst.msk [vmem:[%s1093_s1 + $0xe] ss:$16 sm:$0x3] %vm3_vm0, %v346_v29   ;;  %517 = vst.msk [vmem:[%s1093_s1 + $0xe] ss:$16 sm:$0xc] %vm3_vm0, %v346_v29  }
  0xac   :  { %518 = vst.msk [vmem:[%s1093_s1 + $0xe] ss:$16 sm:$0x30] %vm3_vm0, %v346_v29   ;;  %519 = vst.msk [vmem:[%s1093_s1 + $0xe] ss:$16 sm:$0xc0] %vm3_vm0, %v346_v29   ;;  %v384_v30 = vpop.permute.xlu1 %383   ;;  %v371_v31 = vpop.permute.xlu0 %370  }
  0xad   :  { %530 = vst.msk [vmem:[%s1093_s1 + $0x8f] ss:$16 sm:$0x3] %vm3_vm0, %v384_v30   ;;  %531 = vst.msk [vmem:[%s1093_s1 + $0x8f] ss:$16 sm:$0xc] %vm3_vm0, %v384_v30  }
  0xae   :  { %532 = vst.msk [vmem:[%s1093_s1 + $0x8f] ss:$16 sm:$0x30] %vm3_vm0, %v384_v30   ;;  %533 = vst.msk [vmem:[%s1093_s1 + $0x8f] ss:$16 sm:$0xc0] %vm3_vm0, %v384_v30  }
  0xaf   :  { %525 = vst.msk [vmem:[%s1093_s1 + $0xf] ss:$16 sm:$0x3] %vm3_vm0, %v371_v31   ;;  %526 = vst.msk [vmem:[%s1093_s1 + $0xf] ss:$16 sm:$0xc] %vm3_vm0, %v371_v31  }
  0xb0   :  { %527 = vst.msk [vmem:[%s1093_s1 + $0xf] ss:$16 sm:$0x30] %vm3_vm0, %v371_v31   ;;  %528 = vst.msk [vmem:[%s1093_s1 + $0xf] ss:$16 sm:$0xc0] %vm3_vm0, %v371_v31  }

// kernel: discriminator_forward.6
= control target key start
LH: loop header
LB: loop body
LE: loop exit
PB: predicated region body
PF: predicated region fallthrough
CT: control target
= control target key end

     0   :  { %v934_v0 = vmov 0   ;;  %s1260_s2 = inlined_call_operand.vmem [shape: f32[256,1], index: 2, kind: input, shape index: {}]   ;;  %s1261_s3 = inlined_call_operand.vmem [shape: f32[256,1], index: 3, kind: input, shape index: {}]   ;;  %s1262_s1 = inlined_call_operand.vmem [shape: bf16[256,128], index: 1, kind: input, shape index: {}]   ;;  %s1263_s0 = inlined_call_operand.vmem [shape: bf16[32,256], index: 0, kind: input, shape index: {}]   ;;  %s1264_s4 = inlined_call_operand.vmem [shape: bf16[32,128], index: 4, kind: output, shape index: {0}]   ;;  %s1265_s5 = inlined_call_operand.vmem [shape: f32[1,32,1], index: 5, kind: output, shape index: {1}]   ;;  %s1266_s6 = inlined_call_operand.vmem [shape: f32[1,32,1], index: 6, kind: output, shape index: {2}]  }
   0x1   :  { %927 = vset.pattern.permute.xlu1 %v934_v0  ;;  %926 = vset.pattern.permute.xlu0 %v934_v0  ;;  %v101_v1 = vld [vmem:[%s1260_s2 + $0x80] sm:$0xff]  ;;  %v102_v3 = vld [vmem:[%s1260_s2 + $0x88] sm:$0xff]  ;;  %v103_v9 = vld [vmem:[%s1260_s2 + $0x90] sm:$0xff] }
   0x2   :  { %v85_v2 = vld [vmem:[%s1260_s2] sm:$0xff]  ;;  %199 = vperm.xlu0 %926, %v101_v1   ;;  %v86_v4 = vld [vmem:[%s1260_s2 + $0x8] sm:$0xff]  ;;  %v104_v10 = vld [vmem:[%s1260_s2 + $0x98] sm:$0xff] }
   0x3   :  { %119 = vperm.xlu1 %927, %v85_v2   ;;  %v325_v5 = vld [vmem:[%s1261_s3 + $0x80] sm:$0xff]  ;;  %v326_v6 = vld [vmem:[%s1261_s3 + $0x88] sm:$0xff]  ;;  %v87_v11 = vld [vmem:[%s1260_s2 + $0x10] sm:$0xff] }
   0x4   :  { %v309_v7 = vld [vmem:[%s1261_s3] sm:$0xff]  ;;  %v310_v8 = vld [vmem:[%s1261_s3 + $0x8] sm:$0xff]  ;;  %v88_v12 = vld [vmem:[%s1260_s2 + $0x18] sm:$0xff] }
   0x5   :  { %v327_v13 = vld [vmem:[%s1261_s3 + $0x90] sm:$0xff]  ;;  %v328_v14 = vld [vmem:[%s1261_s3 + $0x98] sm:$0xff]  ;;  %v105_v17 = vld [vmem:[%s1260_s2 + $0xa0] sm:$0xff] }
   0x6   :  { %204 = vperm.xlu0 %926, %v102_v3   ;;  %v311_v15 = vld [vmem:[%s1261_s3 + $0x10] sm:$0xff]  ;;  %v312_v16 = vld [vmem:[%s1261_s3 + $0x18] sm:$0xff]  ;;  %v106_v18 = vld [vmem:[%s1260_s2 + $0xa8] sm:$0xff] }
   0x7   :  { %124 = vperm.xlu1 %927, %v86_v4   ;;  %v89_v19 = vld [vmem:[%s1260_s2 + $0x20] sm:$0xff]  ;;  %v90_v20 = vld [vmem:[%s1260_s2 + $0x28] sm:$0xff]  ;;  %v107_v25 = vld [vmem:[%s1260_s2 + $0xb0] sm:$0xff] }
   0x8   :  { %v329_v21 = vld [vmem:[%s1261_s3 + $0xa0] sm:$0xff]  ;;  %v330_v22 = vld [vmem:[%s1261_s3 + $0xa8] sm:$0xff]  ;;  %v108_v26 = vld [vmem:[%s1260_s2 + $0xb8] sm:$0xff] }
   0x9   :  { %v313_v23 = vld [vmem:[%s1261_s3 + $0x20] sm:$0xff]  ;;  %v314_v24 = vld [vmem:[%s1261_s3 + $0x28] sm:$0xff]  ;;  %v91_v27 = vld [vmem:[%s1260_s2 + $0x30] sm:$0xff] }
   0xa   :  { %423 = vperm.xlu0 %926, %v325_v5   ;;  %v92_v28 = vld [vmem:[%s1260_s2 + $0x38] sm:$0xff]  ;;  %v331_v29 = vld [vmem:[%s1261_s3 + $0xb0] sm:$0xff]  ;;  %v109_v33 = vld [vmem:[%s1260_s2 + $0xc0] sm:$0xff] }
   0xb   :  { %428 = vperm.xlu1 %927, %v326_v6   ;;  %v332_v30 = vld [vmem:[%s1261_s3 + $0xb8] sm:$0xff]  ;;  %v315_v31 = vld [vmem:[%s1261_s3 + $0x30] sm:$0xff]  ;;  %v110_v34 = vld [vmem:[%s1260_s2 + $0xc8] sm:$0xff] }
   0xc   :  { %v316_v32 = vld [vmem:[%s1261_s3 + $0x38] sm:$0xff]  ;;  %v93_v35 = vld [vmem:[%s1260_s2 + $0x40] sm:$0xff]  ;;  %v94_v36 = vld [vmem:[%s1260_s2 + $0x48] sm:$0xff] }
   0xd   :  { %v333_v37 = vld [vmem:[%s1261_s3 + $0xc0] sm:$0xff]  ;;  %v334_v38 = vld [vmem:[%s1261_s3 + $0xc8] sm:$0xff]  ;;  %v111_v41 = vld [vmem:[%s1260_s2 + $0xd0] sm:$0xff] }
   0xe   :  { %343 = vperm.xlu0 %926, %v309_v7   ;;  %v317_v39 = vld [vmem:[%s1261_s3 + $0x40] sm:$0xff]  ;;  %v318_v40 = vld [vmem:[%s1261_s3 + $0x48] sm:$0xff]  ;;  %v112_v42 = vld [vmem:[%s1260_s2 + $0xd8] sm:$0xff] }
   0xf   :  { %348 = vperm.xlu1 %927, %v310_v8   ;;  %v95_v43 = vld [vmem:[%s1260_s2 + $0x50] sm:$0xff]  ;;  %v96_v44 = vld [vmem:[%s1260_s2 + $0x58] sm:$0xff]  ;;  %v113_v49 = vld [vmem:[%s1260_s2 + $0xe0] sm:$0xff] }
  0x10   :  { %v335_v45 = vld [vmem:[%s1261_s3 + $0xd0] sm:$0xff]  ;;  %v336_v46 = vld [vmem:[%s1261_s3 + $0xd8] sm:$0xff]  ;;  %v114_v50 = vld [vmem:[%s1260_s2 + $0xe8] sm:$0xff] }
  0x11   :  { %v319_v47 = vld [vmem:[%s1261_s3 + $0x50] sm:$0xff]  ;;  %v320_v48 = vld [vmem:[%s1261_s3 + $0x58] sm:$0xff]  ;;  %v97_v51 = vld [vmem:[%s1260_s2 + $0x60] sm:$0xff] }
  0x12   :  { %209 = vperm.xlu0 %926, %v103_v9   ;;  %v98_v52 = vld [vmem:[%s1260_s2 + $0x68] sm:$0xff]  ;;  %v337_v53 = vld [vmem:[%s1261_s3 + $0xe0] sm:$0xff]  ;;  %v115_v57 = vld [vmem:[%s1260_s2 + $0xf0] sm:$0xff] }
  0x13   :  { %214 = vperm.xlu1 %927, %v104_v10   ;;  %v338_v54 = vld [vmem:[%s1261_s3 + $0xe8] sm:$0xff]  ;;  %v321_v55 = vld [vmem:[%s1261_s3 + $0x60] sm:$0xff]  ;;  %v116_v58 = vld [vmem:[%s1260_s2 + $0xf8] sm:$0xff] }
  0x14   :  { %v322_v56 = vld [vmem:[%s1261_s3 + $0x68] sm:$0xff]  ;;  %v99_v59 = vld [vmem:[%s1260_s2 + $0x70] sm:$0xff]  ;;  %v100_v60 = vld [vmem:[%s1260_s2 + $0x78] sm:$0xff] }
  0x15   :  { %v339_v61 = vld [vmem:[%s1261_s3 + $0xf0] sm:$0xff]  ;;  %v340_v62 = vld [vmem:[%s1261_s3 + $0xf8] sm:$0xff]  ;;  %v872_v2 = vld [vmem:[%s1262_s1 + $0x40] sm:$0xff]  }
  0x16   :  { %129 = vperm.xlu0 %926, %v87_v11   ;;  %v323_v63 = vld [vmem:[%s1261_s3 + $0x70] sm:$0xff]  ;;  %v324_v0 = vld [vmem:[%s1261_s3 + $0x78] sm:$0xff]  ;;  %v825_v4 = vunpack.c.l.bf16 %v872_v2  ;;  %v792_v5 = vld [vmem:[%s1262_s1] sm:$0xff]   ;;  %v826_v6 = vunpack.c.h.bf16 %v872_v2 }
  0x17   :  { %134 = vperm.xlu1 %927, %v88_v12   ;;  %v930_v9 = vld [vmem:[%s1263_s0 + $0x4] ss:$8 sps:$4 sm:$0xff]   ;;  %v793_v10 = vunpack.c.l.bf16 %v792_v5  ;;  %v794_v11 = vunpack.c.h.bf16 %v792_v5  ;;  %v933_v12 = vld [vmem:[%s1263_s0 + $0x14] ss:$8 sps:$4 sm:$0xff]  }
  0x18   :  { %701 = vmatprep.mubr.bf16.mxu0 %v930_v9  ;;  %709 = vmatprep.mubr.bf16.mxu1 %v933_v12 }
  0x1a   :  { %433 = vperm.xlu0 %926, %v327_v13  }
  0x1b   :  { %438 = vperm.xlu1 %927, %v328_v14  }
  0x1e   :  { %353 = vperm.xlu0 %926, %v311_v15  }
  0x1f   :  { %358 = vperm.xlu1 %927, %v312_v16  }
  0x22   :  { %219 = vperm.xlu0 %926, %v105_v17  }
  0x23   :  { %224 = vperm.xlu1 %927, %v106_v18  }
  0x26   :  { %139 = vperm.xlu0 %926, %v89_v19  }
  0x27   :  { %144 = vperm.xlu1 %927, %v90_v20  }
  0x2a   :  { %443 = vperm.xlu0 %926, %v329_v21  }
  0x2b   :  { %448 = vperm.xlu1 %927, %v330_v22  }
  0x2e   :  { %363 = vperm.xlu0 %926, %v313_v23  }
  0x2f   :  { %368 = vperm.xlu1 %927, %v314_v24  }
  0x32   :  { %229 = vperm.xlu0 %926, %v107_v25  }
  0x33   :  { %234 = vperm.xlu1 %927, %v108_v26  }
  0x36   :  { %149 = vperm.xlu0 %926, %v91_v27  }
  0x37   :  { %154 = vperm.xlu1 %927, %v92_v28  }
  0x3a   :  { %453 = vperm.xlu0 %926, %v331_v29  }
  0x3b   :  { %458 = vperm.xlu1 %927, %v332_v30  }
  0x3e   :  { %373 = vperm.xlu0 %926, %v315_v31  }
  0x3f   :  { %378 = vperm.xlu1 %927, %v316_v32  }
  0x42   :  { %239 = vperm.xlu0 %926, %v109_v33   ;;  %v873_v33 = vld [vmem:[%s1262_s1 + $0x48] sm:$0xff]  }
  0x43   :  { %244 = vperm.xlu1 %927, %v110_v34  }
  0x46   :  { %159 = vperm.xlu0 %926, %v93_v35  }
  0x47   :  { %164 = vperm.xlu1 %927, %v94_v36  }
  0x4a   :  { %463 = vperm.xlu0 %926, %v333_v37  }
  0x4b   :  { %468 = vperm.xlu1 %927, %v334_v38   ;;  %v829_v38 = vunpack.c.l.bf16 %v873_v33 }
  0x4e   :  { %383 = vperm.xlu0 %926, %v317_v39   ;;  %v830_v39 = vunpack.c.h.bf16 %v873_v33  ;;  %v875_v33 = vld [vmem:[%s1262_s1 + $0x58] sm:$0xff]  }
  0x4f   :  { %388 = vperm.xlu1 %927, %v318_v40   ;;  %v865_v40 = vld [vmem:[%s1262_s1 + $0x8] sm:$0xff]  }
  0x52   :  { %249 = vperm.xlu0 %926, %v111_v41  }
  0x53   :  { %254 = vperm.xlu1 %927, %v112_v42  }
  0x56   :  { %169 = vperm.xlu0 %926, %v95_v43   ;;  %v797_v43 = vunpack.c.l.bf16 %v865_v40 }
  0x57   :  { %174 = vperm.xlu1 %927, %v96_v44   ;;  %v798_v44 = vunpack.c.h.bf16 %v865_v40  ;;  %v867_v40 = vld [vmem:[%s1262_s1 + $0x18] sm:$0xff]  }
  0x5a   :  { %473 = vperm.xlu0 %926, %v335_v45  }
  0x5b   :  { %478 = vperm.xlu1 %927, %v336_v46  }
  0x5e   :  { %393 = vperm.xlu0 %926, %v319_v47  }
  0x5f   :  { %398 = vperm.xlu1 %927, %v320_v48  }
  0x62   :  { %259 = vperm.xlu0 %926, %v113_v49  }
  0x63   :  { %264 = vperm.xlu1 %927, %v114_v50  }
  0x66   :  { %179 = vperm.xlu0 %926, %v97_v51  }
  0x67   :  { %184 = vperm.xlu1 %927, %v98_v52  }
  0x6a   :  { %483 = vperm.xlu0 %926, %v337_v53  }
  0x6b   :  { %488 = vperm.xlu1 %927, %v338_v54  }
  0x6e   :  { %403 = vperm.xlu0 %926, %v321_v55  }
  0x6f   :  { %408 = vperm.xlu1 %927, %v322_v56  }
  0x72   :  { %269 = vperm.xlu0 %926, %v115_v57  }
  0x73   :  { %274 = vperm.xlu1 %927, %v116_v58  }
  0x76   :  { %189 = vperm.xlu0 %926, %v99_v59  }
  0x77   :  { %194 = vperm.xlu1 %927, %v100_v60  }
  0x7a   :  { %493 = vperm.xlu0 %926, %v339_v61  }
  0x7b   :  { %498 = vperm.xlu1 %927, %v340_v62  }
  0x7e   :  { %413 = vperm.xlu0 %926, %v323_v63  }
  0x7f   :  { %418 = vperm.xlu1 %927, %v324_v0  }
  0x81   :  { %v200_v1 = vpop.permute.xlu0 %199 }
  0x82   :  { %v120_v3 = vpop.permute.xlu1 %119  ;;  %v293_v13 = vmul.f32 %v825_v4, %v200_v1  ;;  %v874_v1 = vld [vmem:[%s1262_s1 + $0x50] sm:$0xff]  }
  0x83   :  { %v277_v19 = vmul.f32 %v793_v10, %v120_v3 }
  0x85   :  { %v205_v7 = vpop.permute.xlu0 %204 }
  0x86   :  { %v125_v8 = vpop.permute.xlu1 %124  ;;  %v294_v14 = vmul.f32 %v826_v6, %v205_v7  ;;  %v833_v6 = vunpack.c.l.bf16 %v874_v1  ;;  %v834_v7 = vunpack.c.h.bf16 %v874_v1  ;;  %v876_v1 = vld [vmem:[%s1262_s1 + $0x60] sm:$0xff]  }
  0x87   :  { %v278_v20 = vmul.f32 %v794_v11, %v125_v8  ;;  %v866_v8 = vld [vmem:[%s1262_s1 + $0x10] sm:$0xff]  }
  0x88   :  { %v801_v11 = vunpack.c.l.bf16 %v866_v8  ;;  %v802_v12 = vunpack.c.h.bf16 %v866_v8  ;;  %v868_v8 = vld [vmem:[%s1262_s1 + $0x20] sm:$0xff]  }
  0x89   :  { %v424_v15 = vpop.permute.xlu0 %423 }
  0x8a   :  { %v429_v16 = vpop.permute.xlu1 %428  ;;  %v517_v17 = vadd.f32 %v424_v15, %v293_v13 }
  0x8b   :  { %v518_v18 = vadd.f32 %v429_v16, %v294_v14 }
  0x8c   :  { %v581_v21 = vmul.f32 0.2, %v517_v17  ;;  %vm549_vm0 = vcmp.ge.f32.partialorder %v517_v17, 0.0 }
  0x8d   :  { %v582_v22 = vmul.f32 0.2, %v518_v18  ;;  %vm550_vm1 = vcmp.ge.f32.partialorder %v518_v18, 0.0  ;;  %v344_v23 = vpop.permute.xlu0 %343 }
  0x8e   :  { %v349_v24 = vpop.permute.xlu1 %348  ;;  %v501_v25 = vadd.f32 %v344_v23, %v277_v19  ;;  %v613_v27 = vsel %vm549_vm0, %v517_v17, %v581_v21 }
  0x8f   :  { %v502_v26 = vadd.f32 %v349_v24, %v278_v20  ;;  %v614_v28 = vsel %vm550_vm1, %v518_v18, %v582_v22 }
  0x90   :  { %v637_v29 = vpack.c.bf16 %v614_v28, %v613_v27  ;;  %v565_v30 = vmul.f32 0.2, %v501_v25  ;;  %vm533_vm2 = vcmp.ge.f32.partialorder %v501_v25, 0.0 }
  0x91   :  { %v566_v31 = vmul.f32 0.2, %v502_v26  ;;  %vm534_vm3 = vcmp.ge.f32.partialorder %v502_v26, 0.0  ;;  %v210_v32 = vpop.permute.xlu0 %209 }
  0x92   :  { %v215_v34 = vpop.permute.xlu1 %214  ;;  %881 = vmatprep.subr.bf16.mxu0 %v637_v29  ;;  %909 = vmatprep.subr.bf16.mxu1 %v637_v29  ;;  %v597_v35 = vsel %vm533_vm2, %v501_v25, %v565_v30  ;;  %v295_v45 = vmul.f32 %v829_v38, %v210_v32  ;;  %v837_v38 = vunpack.c.l.bf16 %v875_v33 }
  0x93   :  { %v598_v36 = vsel %vm534_vm3, %v502_v26, %v566_v31  ;;  %v296_v46 = vmul.f32 %v830_v39, %v215_v34  ;;  %v838_v39 = vunpack.c.h.bf16 %v875_v33  ;;  %v877_v33 = vld [vmem:[%s1262_s1 + $0x68] sm:$0xff]  }
  0x94   :  { %v629_v37 = vpack.c.bf16 %v598_v36, %v597_v35 }
  0x95   :  { %v130_v41 = vpop.permute.xlu0 %129 }
  0x96   :  { %v135_v42 = vpop.permute.xlu1 %134  ;;  %882 = vmatpush3.bf16.msra.mxu0 %v629_v37  ;;  %917 = vmatpush3.bf16.msra.mxu1 %v629_v37  ;;  %v279_v51 = vmul.f32 %v797_v43, %v130_v41  ;;  %v805_v43 = vunpack.c.l.bf16 %v867_v40 }
  0x97   :  { %v280_v52 = vmul.f32 %v798_v44, %v135_v42  ;;  %v806_v44 = vunpack.c.h.bf16 %v867_v40  ;;  %v869_v40 = vld [vmem:[%s1262_s1 + $0x28] sm:$0xff]  }
  0x99   :  { %v434_v47 = vpop.permute.xlu0 %433 }
  0x9a   :  { %v439_v48 = vpop.permute.xlu1 %438  ;;  %v519_v49 = vadd.f32 %v434_v47, %v295_v45 }
  0x9b   :  { %v520_v50 = vadd.f32 %v439_v48, %v296_v46 }
  0x9c   :  { %vm551_vm4 = vcmp.ge.f32.partialorder %v519_v49, 0.0  ;;  %v583_v53 = vmul.f32 0.2, %v519_v49 }
  0x9d   :  { %vm552_vm5 = vcmp.ge.f32.partialorder %v520_v50, 0.0  ;;  %v584_v54 = vmul.f32 0.2, %v520_v50  ;;  %v354_v55 = vpop.permute.xlu0 %353 }
  0x9e   :  { %v359_v56 = vpop.permute.xlu1 %358  ;;  %v503_v57 = vadd.f32 %v354_v55, %v279_v51  ;;  %v615_v59 = vsel %vm551_vm4, %v519_v49, %v583_v53 }
  0x9f   :  { %v504_v58 = vadd.f32 %v359_v56, %v280_v52  ;;  %v616_v60 = vsel %vm552_vm5, %v520_v50, %v584_v54 }
  0xa0   :  { %v638_v61 = vpack.c.bf16 %v616_v60, %v615_v59  ;;  %vm535_vm6 = vcmp.ge.f32.partialorder %v503_v57, 0.0  ;;  %v567_v62 = vmul.f32 0.2, %v503_v57 }
  0xa1   :  { %vm536_vm7 = vcmp.ge.f32.partialorder %v504_v58, 0.0  ;;  %v568_v63 = vmul.f32 0.2, %v504_v58  ;;  %v220_v0 = vpop.permute.xlu0 %219 }
  0xa2   :  { %v225_v2 = vpop.permute.xlu1 %224  ;;  %883 = vmatprep.subr.bf16.mxu0 %v638_v61  ;;  %910 = vmatprep.subr.bf16.mxu1 %v638_v61  ;;  %v599_v3 = vsel %vm535_vm6, %v503_v57, %v567_v62  ;;  %v297_v13 = vmul.f32 %v833_v6, %v220_v0  ;;  %v841_v6 = vunpack.c.l.bf16 %v876_v1 }
  0xa3   :  { %v600_v4 = vsel %vm536_vm7, %v504_v58, %v568_v63  ;;  %v298_v14 = vmul.f32 %v834_v7, %v225_v2  ;;  %v842_v7 = vunpack.c.h.bf16 %v876_v1  ;;  %v878_v1 = vld [vmem:[%s1262_s1 + $0x70] sm:$0xff]  }
  0xa4   :  { %v630_v5 = vpack.c.bf16 %v600_v4, %v599_v3 }
  0xa5   :  { %v140_v9 = vpop.permute.xlu0 %139 }
  0xa6   :  { %v145_v10 = vpop.permute.xlu1 %144  ;;  %884 = vmatpush3.bf16.msra.mxu0 %v630_v5  ;;  %918 = vmatpush3.bf16.msra.mxu1 %v630_v5  ;;  %v281_v19 = vmul.f32 %v801_v11, %v140_v9  ;;  %v809_v11 = vunpack.c.l.bf16 %v868_v8 }
  0xa7   :  { %v282_v20 = vmul.f32 %v802_v12, %v145_v10  ;;  %v810_v12 = vunpack.c.h.bf16 %v868_v8  ;;  %v870_v8 = vld [vmem:[%s1262_s1 + $0x30] sm:$0xff]  }
  0xa9   :  { %v444_v15 = vpop.permute.xlu0 %443 }
  0xaa   :  { %v449_v16 = vpop.permute.xlu1 %448  ;;  %v521_v17 = vadd.f32 %v444_v15, %v297_v13 }
  0xab   :  { %v522_v18 = vadd.f32 %v449_v16, %v298_v14 }
  0xac   :  { %vm553_vm8 = vcmp.ge.f32.partialorder %v521_v17, 0.0  ;;  %v585_v21 = vmul.f32 0.2, %v521_v17 }
  0xad   :  { %vm554_vm9 = vcmp.ge.f32.partialorder %v522_v18, 0.0  ;;  %v586_v22 = vmul.f32 0.2, %v522_v18  ;;  %v364_v23 = vpop.permute.xlu0 %363 }
  0xae   :  { %v369_v24 = vpop.permute.xlu1 %368  ;;  %v505_v25 = vadd.f32 %v364_v23, %v281_v19  ;;  %v617_v27 = vsel %vm553_vm8, %v521_v17, %v585_v21 }
  0xaf   :  { %v506_v26 = vadd.f32 %v369_v24, %v282_v20  ;;  %v618_v28 = vsel %vm554_vm9, %v522_v18, %v586_v22 }
  0xb0   :  { %v639_v29 = vpack.c.bf16 %v618_v28, %v617_v27  ;;  %vm537_vm10 = vcmp.ge.f32.partialorder %v505_v25, 0.0  ;;  %v569_v30 = vmul.f32 0.2, %v505_v25 }
  0xb1   :  { %vm538_vm11 = vcmp.ge.f32.partialorder %v506_v26, 0.0  ;;  %v570_v31 = vmul.f32 0.2, %v506_v26  ;;  %v230_v32 = vpop.permute.xlu0 %229 }
  0xb2   :  { %v235_v34 = vpop.permute.xlu1 %234  ;;  %885 = vmatprep.subr.bf16.mxu0 %v639_v29  ;;  %911 = vmatprep.subr.bf16.mxu1 %v639_v29  ;;  %v601_v35 = vsel %vm537_vm10, %v505_v25, %v569_v30  ;;  %v299_v45 = vmul.f32 %v837_v38, %v230_v32  ;;  %v845_v38 = vunpack.c.l.bf16 %v877_v33 }
  0xb3   :  { %v602_v36 = vsel %vm538_vm11, %v506_v26, %v570_v31  ;;  %v300_v46 = vmul.f32 %v838_v39, %v235_v34  ;;  %v846_v39 = vunpack.c.h.bf16 %v877_v33  ;;  %v879_v33 = vld [vmem:[%s1262_s1 + $0x78] sm:$0xff]  }
  0xb4   :  { %v631_v37 = vpack.c.bf16 %v602_v36, %v601_v35 }
  0xb5   :  { %v150_v41 = vpop.permute.xlu0 %149 }
  0xb6   :  { %v155_v42 = vpop.permute.xlu1 %154  ;;  %886 = vmatpush3.bf16.msra.mxu0 %v631_v37  ;;  %919 = vmatpush3.bf16.msra.mxu1 %v631_v37  ;;  %v283_v51 = vmul.f32 %v805_v43, %v150_v41  ;;  %v813_v43 = vunpack.c.l.bf16 %v869_v40 }
  0xb7   :  { %v284_v52 = vmul.f32 %v806_v44, %v155_v42  ;;  %v814_v44 = vunpack.c.h.bf16 %v869_v40  ;;  %v871_v40 = vld [vmem:[%s1262_s1 + $0x38] sm:$0xff]  }
  0xb9   :  { %v454_v47 = vpop.permute.xlu0 %453 }
  0xba   :  { %v459_v48 = vpop.permute.xlu1 %458  ;;  %v523_v49 = vadd.f32 %v454_v47, %v299_v45 }
  0xbb   :  { %v524_v50 = vadd.f32 %v459_v48, %v300_v46 }
  0xbc   :  { %vm555_vm12 = vcmp.ge.f32.partialorder %v523_v49, 0.0  ;;  %v587_v53 = vmul.f32 0.2, %v523_v49 }
  0xbd   :  { %vm556_vm13 = vcmp.ge.f32.partialorder %v524_v50, 0.0  ;;  %v588_v54 = vmul.f32 0.2, %v524_v50  ;;  %v374_v55 = vpop.permute.xlu0 %373 }
  0xbe   :  { %v379_v56 = vpop.permute.xlu1 %378  ;;  %v507_v57 = vadd.f32 %v374_v55, %v283_v51  ;;  %v619_v59 = vsel %vm555_vm12, %v523_v49, %v587_v53 }
  0xbf   :  { %v508_v58 = vadd.f32 %v379_v56, %v284_v52  ;;  %v620_v60 = vsel %vm556_vm13, %v524_v50, %v588_v54 }
  0xc0   :  { %v640_v61 = vpack.c.bf16 %v620_v60, %v619_v59  ;;  %vm539_vm14 = vcmp.ge.f32.partialorder %v507_v57, 0.0  ;;  %v571_v62 = vmul.f32 0.2, %v507_v57 }
  0xc1   :  { %vm540_vm15 = vcmp.ge.f32.partialorder %v508_v58, 0.0  ;;  %v572_v63 = vmul.f32 0.2, %v508_v58  ;;  %v240_v0 = vpop.permute.xlu0 %239 }
  0xc2   :  { %v245_v2 = vpop.permute.xlu1 %244  ;;  %887 = vmatprep.subr.bf16.mxu0 %v640_v61  ;;  %912 = vmatprep.subr.bf16.mxu1 %v640_v61  ;;  %v603_v3 = vsel %vm539_vm14, %v507_v57, %v571_v62  ;;  %v301_v13 = vmul.f32 %v841_v6, %v240_v0  ;;  %v849_v6 = vunpack.c.l.bf16 %v878_v1 }
  0xc3   :  { %v604_v4 = vsel %vm540_vm15, %v508_v58, %v572_v63  ;;  %v302_v14 = vmul.f32 %v842_v7, %v245_v2  ;;  %v850_v7 = vunpack.c.h.bf16 %v878_v1 }
  0xc4   :  { %v632_v5 = vpack.c.bf16 %v604_v4, %v603_v3 }
  0xc5   :  { %v160_v9 = vpop.permute.xlu0 %159 }
  0xc6   :  { %v165_v10 = vpop.permute.xlu1 %164  ;;  %888 = vmatpush3.bf16.msra.mxu0 %v632_v5  ;;  %920 = vmatpush3.bf16.msra.mxu1 %v632_v5  ;;  %v285_v19 = vmul.f32 %v809_v11, %v160_v9  ;;  %v817_v11 = vunpack.c.l.bf16 %v870_v8 }
  0xc7   :  { %v286_v20 = vmul.f32 %v810_v12, %v165_v10  ;;  %v818_v12 = vunpack.c.h.bf16 %v870_v8 }
  0xc9   :  { %v464_v15 = vpop.permute.xlu0 %463 }
  0xca   :  { %v469_v16 = vpop.permute.xlu1 %468  ;;  %v525_v17 = vadd.f32 %v464_v15, %v301_v13 }
  0xcb   :  { %v526_v18 = vadd.f32 %v469_v16, %v302_v14 }
  0xcc   :  { %vm557_vm0 = vcmp.ge.f32.partialorder %v525_v17, 0.0  ;;  %v589_v21 = vmul.f32 0.2, %v525_v17 }
  0xcd   :  { %vm558_vm1 = vcmp.ge.f32.partialorder %v526_v18, 0.0  ;;  %v590_v22 = vmul.f32 0.2, %v526_v18  ;;  %v384_v23 = vpop.permute.xlu0 %383 }
  0xce   :  { %v389_v24 = vpop.permute.xlu1 %388  ;;  %v509_v25 = vadd.f32 %v384_v23, %v285_v19  ;;  %v621_v27 = vsel %vm557_vm0, %v525_v17, %v589_v21  ;;  %vm746_vm0 = vcmask 7168  }
  0xcf   :  { %v510_v26 = vadd.f32 %v389_v24, %v286_v20  ;;  %v622_v28 = vsel %vm558_vm1, %v526_v18, %v590_v22 }
  0xd0   :  { %v641_v29 = vpack.c.bf16 %v622_v28, %v621_v27  ;;  %vm541_vm2 = vcmp.ge.f32.partialorder %v509_v25, 0.0  ;;  %v573_v30 = vmul.f32 0.2, %v509_v25 }
  0xd1   :  { %vm542_vm3 = vcmp.ge.f32.partialorder %v510_v26, 0.0  ;;  %v574_v31 = vmul.f32 0.2, %v510_v26  ;;  %v250_v32 = vpop.permute.xlu0 %249 }
  0xd2   :  { %v255_v34 = vpop.permute.xlu1 %254  ;;  %889 = vmatprep.subr.bf16.mxu0 %v641_v29  ;;  %913 = vmatprep.subr.bf16.mxu1 %v641_v29  ;;  %v605_v35 = vsel %vm541_vm2, %v509_v25, %v573_v30  ;;  %v303_v45 = vmul.f32 %v845_v38, %v250_v32  ;;  %v853_v38 = vunpack.c.l.bf16 %v879_v33 }
  0xd3   :  { %v606_v36 = vsel %vm542_vm3, %v510_v26, %v574_v31  ;;  %v304_v46 = vmul.f32 %v846_v39, %v255_v34  ;;  %v854_v39 = vunpack.c.h.bf16 %v879_v33 }
  0xd4   :  { %v633_v37 = vpack.c.bf16 %v606_v36, %v605_v35 }
  0xd5   :  { %v170_v41 = vpop.permute.xlu0 %169 }
  0xd6   :  { %v175_v42 = vpop.permute.xlu1 %174  ;;  %890 = vmatpush3.bf16.msra.mxu0 %v633_v37  ;;  %921 = vmatpush3.bf16.msra.mxu1 %v633_v37  ;;  %v287_v51 = vmul.f32 %v813_v43, %v170_v41  ;;  %v821_v43 = vunpack.c.l.bf16 %v871_v40 }
  0xd7   :  { %v288_v52 = vmul.f32 %v814_v44, %v175_v42  ;;  %v822_v44 = vunpack.c.h.bf16 %v871_v40 }
  0xd9   :  { %v474_v47 = vpop.permute.xlu0 %473 }
  0xda   :  { %v479_v48 = vpop.permute.xlu1 %478  ;;  %v527_v49 = vadd.f32 %v474_v47, %v303_v45 }
  0xdb   :  { %v528_v50 = vadd.f32 %v479_v48, %v304_v46 }
  0xdc   :  { %vm559_vm4 = vcmp.ge.f32.partialorder %v527_v49, 0.0  ;;  %v591_v53 = vmul.f32 0.2, %v527_v49 }
  0xdd   :  { %vm560_vm5 = vcmp.ge.f32.partialorder %v528_v50, 0.0  ;;  %v592_v54 = vmul.f32 0.2, %v528_v50  ;;  %v394_v55 = vpop.permute.xlu0 %393 }
  0xde   :  { %v399_v56 = vpop.permute.xlu1 %398  ;;  %v511_v57 = vadd.f32 %v394_v55, %v287_v51  ;;  %v623_v59 = vsel %vm559_vm4, %v527_v49, %v591_v53 }
  0xdf   :  { %v512_v58 = vadd.f32 %v399_v56, %v288_v52  ;;  %v624_v60 = vsel %vm560_vm5, %v528_v50, %v592_v54 }
  0xe0   :  { %v642_v61 = vpack.c.bf16 %v624_v60, %v623_v59  ;;  %vm543_vm6 = vcmp.ge.f32.partialorder %v511_v57, 0.0  ;;  %v575_v62 = vmul.f32 0.2, %v511_v57 }
  0xe1   :  { %vm544_vm7 = vcmp.ge.f32.partialorder %v512_v58, 0.0  ;;  %v576_v63 = vmul.f32 0.2, %v512_v58  ;;  %v260_v0 = vpop.permute.xlu0 %259 }
  0xe2   :  { %v265_v2 = vpop.permute.xlu1 %264  ;;  %891 = vmatprep.subr.bf16.mxu0 %v642_v61  ;;  %914 = vmatprep.subr.bf16.mxu1 %v642_v61  ;;  %v607_v3 = vsel %vm543_vm6, %v511_v57, %v575_v62  ;;  %v305_v13 = vmul.f32 %v849_v6, %v260_v0 }
  0xe3   :  { %v608_v4 = vsel %vm544_vm7, %v512_v58, %v576_v63  ;;  %v306_v14 = vmul.f32 %v850_v7, %v265_v2 }
  0xe4   :  { %v634_v5 = vpack.c.bf16 %v608_v4, %v607_v3  ;;  %v928_v3 = vld [vmem:[%s1263_s0] ss:$8 sps:$4 sm:$0xff]   ;;  %v931_v4 = vld [vmem:[%s1263_s0 + $0x10] ss:$8 sps:$4 sm:$0xff]  }
  0xe5   :  { %v180_v9 = vpop.permute.xlu0 %179 }
  0xe6   :  { %v185_v10 = vpop.permute.xlu1 %184  ;;  %892 = vmatpush3.bf16.msra.mxu0 %v634_v5  ;;  %922 = vmatpush3.bf16.msra.mxu1 %v634_v5  ;;  %v289_v19 = vmul.f32 %v817_v11, %v180_v9 }
  0xe7   :  { %v290_v20 = vmul.f32 %v818_v12, %v185_v10 }
  0xe9   :  { %v484_v15 = vpop.permute.xlu0 %483 }
  0xea   :  { %v489_v16 = vpop.permute.xlu1 %488  ;;  %v529_v17 = vadd.f32 %v484_v15, %v305_v13 }
  0xeb   :  { %v530_v18 = vadd.f32 %v489_v16, %v306_v14 }
  0xec   :  { %vm561_vm8 = vcmp.ge.f32.partialorder %v529_v17, 0.0  ;;  %v593_v21 = vmul.f32 0.2, %v529_v17 }
  0xed   :  { %vm562_vm9 = vcmp.ge.f32.partialorder %v530_v18, 0.0  ;;  %v594_v22 = vmul.f32 0.2, %v530_v18  ;;  %v404_v23 = vpop.permute.xlu0 %403 }
  0xee   :  { %v409_v24 = vpop.permute.xlu1 %408  ;;  %v513_v25 = vadd.f32 %v404_v23, %v289_v19  ;;  %v625_v27 = vsel %vm561_vm8, %v529_v17, %v593_v21 }
  0xef   :  { %v514_v26 = vadd.f32 %v409_v24, %v290_v20  ;;  %v626_v28 = vsel %vm562_vm9, %v530_v18, %v594_v22 }
  0xf0   :  { %v643_v29 = vpack.c.bf16 %v626_v28, %v625_v27  ;;  %vm545_vm10 = vcmp.ge.f32.partialorder %v513_v25, 0.0  ;;  %v577_v30 = vmul.f32 0.2, %v513_v25 }
  0xf1   :  { %vm546_vm11 = vcmp.ge.f32.partialorder %v514_v26, 0.0  ;;  %v578_v31 = vmul.f32 0.2, %v514_v26  ;;  %v270_v32 = vpop.permute.xlu0 %269 }
  0xf2   :  { %v275_v34 = vpop.permute.xlu1 %274  ;;  %893 = vmatprep.subr.bf16.mxu0 %v643_v29  ;;  %915 = vmatprep.subr.bf16.mxu1 %v643_v29  ;;  %v609_v35 = vsel %vm545_vm10, %v513_v25, %v577_v30  ;;  %v307_v45 = vmul.f32 %v853_v38, %v270_v32 }
  0xf3   :  { %v610_v36 = vsel %vm546_vm11, %v514_v26, %v578_v31  ;;  %v308_v46 = vmul.f32 %v854_v39, %v275_v34 }
  0xf4   :  { %v635_v37 = vpack.c.bf16 %v610_v36, %v609_v35 }
  0xf5   :  { %v190_v41 = vpop.permute.xlu0 %189 }
  0xf6   :  { %v195_v42 = vpop.permute.xlu1 %194  ;;  %894 = vmatpush3.bf16.msra.mxu0 %v635_v37  ;;  %923 = vmatpush3.bf16.msra.mxu1 %v635_v37  ;;  %v291_v51 = vmul.f32 %v821_v43, %v190_v41 }
  0xf7   :  { %v292_v52 = vmul.f32 %v822_v44, %v195_v42 }
  0xf9   :  { %v494_v47 = vpop.permute.xlu0 %493 }
  0xfa   :  { %v499_v48 = vpop.permute.xlu1 %498  ;;  %v531_v49 = vadd.f32 %v494_v47, %v307_v45 }
  0xfb   :  { %v532_v50 = vadd.f32 %v499_v48, %v308_v46 }
  0xfc   :  { %vm563_vm12 = vcmp.ge.f32.partialorder %v531_v49, 0.0  ;;  %v595_v53 = vmul.f32 0.2, %v531_v49 }
  0xfd   :  { %vm564_vm13 = vcmp.ge.f32.partialorder %v532_v50, 0.0  ;;  %v596_v54 = vmul.f32 0.2, %v532_v50  ;;  %v414_v55 = vpop.permute.xlu0 %413 }
  0xfe   :  { %v419_v56 = vpop.permute.xlu1 %418  ;;  %v515_v57 = vadd.f32 %v414_v55, %v291_v51  ;;  %v627_v59 = vsel %vm563_vm12, %v531_v49, %v595_v53 }
  0xff   :  { %v516_v58 = vadd.f32 %v419_v56, %v292_v52  ;;  %v628_v60 = vsel %vm564_vm13, %v532_v50, %v596_v54 }
 0x100   :  { %v644_v61 = vpack.c.bf16 %v628_v60, %v627_v59  ;;  %vm547_vm14 = vcmp.ge.f32.partialorder %v515_v57, 0.0  ;;  %v579_v62 = vmul.f32 0.2, %v515_v57 }
 0x101   :  { %vm548_vm15 = vcmp.ge.f32.partialorder %v516_v58, 0.0  ;;  %v580_v63 = vmul.f32 0.2, %v516_v58 }
 0x102   :  { %895 = vmatprep.subr.bf16.mxu0 %v644_v61  ;;  %916 = vmatprep.subr.bf16.mxu1 %v644_v61  ;;  %v611_v0 = vsel %vm547_vm14, %v515_v57, %v579_v62 }
 0x103   :  { %v612_v1 = vsel %vm548_vm15, %v516_v58, %v580_v63 }
 0x104   :  { %v636_v2 = vpack.c.bf16 %v612_v1, %v611_v0 }
 0x106   :  { %896 = vmatpush3.bf16.msra.mxu0 %v636_v2  ;;  %924 = vmatpush3.bf16.msra.mxu1 %v636_v2 }
 0x109   :  { %702 = vmatmul.mubr.bf16.vlgmr.msra.gmra.mrb[0].mxu0 %v928_v3  ;;  %710 = vmatmul.mubr.bf16.vlgmr.msra.gmra.mrb[0].mxu1 %v931_v4 }
 0x1dc   :  { %v897_v5 = vpop.f32.mrb[0].mxu0  ;;  %v903_v6 = vpop.f32.mrb[0].mxu1 }
 0x1dd   :  { %v898_v7 = vpop.f32.mrb[1].mxu0  ;;  %v904_v8 = vpop.f32.mrb[1].mxu1 }
 0x1de   :  { %v899_v9 = vadd.f32 %v898_v7, %v897_v5  ;;  %v900_v10 = vpop.f32.mrb[2].mxu0  ;;  %v905_v11 = vadd.f32 %v904_v8, %v903_v6  ;;  %v906_v12 = vpop.f32.mrb[2].mxu1 }
 0x1df   :  { %v901_v13 = vpop.f32.mrb[3].mxu0  ;;  %v907_v14 = vpop.f32.mrb[3].mxu1 }
 0x1e0   :  { %v902_v15 = vadd.f32 %v901_v13, %v900_v10  ;;  %v908_v16 = vadd.f32 %v907_v14, %v906_v12  ;;  %738 = vadd.xlane.f32.xlu0 %v899_v9  ;;  %v751_v19 = vmul.f32 %v899_v9, %v899_v9  ;;  %v753_v20 = vmul.f32 %v905_v11, %v905_v11 }
 0x1e2   :  { %v858_v17 = vpack.c.bf16 %v902_v15, %v899_v9  ;;  %v863_v18 = vpack.c.bf16 %v908_v16, %v905_v11  ;;  %740 = vadd.xlane.f32.xlu1 %v902_v15  ;;  %v752_v21 = vmul.f32 %v902_v15, %v902_v15  ;;  %v754_v22 = vmul.f32 %v908_v16, %v908_v16 }
 0x1e4   :  { %859 = vst [vmem:[%s1264_s4] sm:$0xff] %v858_v17   ;;  %880 = vst [vmem:[%s1264_s4 + $0x8] sm:$0xff] %v863_v18   ;;  %742 = vadd.xlane.f32.xlu0 %v905_v11 }
 0x1e6   :  { %755 = vadd.xlane.f32.xlu1 %v751_v19 }
 0x1e8   :  { %744 = vadd.xlane.f32.xlu0 %v908_v16 }
 0x1ea   :  { %759 = vadd.xlane.f32.xlu1 %v753_v20 }
 0x1ec   :  { %757 = vadd.xlane.f32.xlu0 %v752_v21 }
 0x1f0   :  { %761 = vadd.xlane.f32.xlu0 %v754_v22 }
 0x26d   :  { %v739_v23 = vpop.xlane.xlu0 %738 }
 0x26e   :  { %747 = vst.msk [vmem:[%s1265_s5] sm:$0xff] %vm746_vm0, %v739_v23 }
 0x26f   :  { %v741_v24 = vpop.xlane.xlu1 %740 }
 0x270   :  { %748 = vst.msk [vmem:[%s1265_s5 + $0x8] sm:$0xff] %vm746_vm0, %v741_v24 }
 0x271   :  { %v743_v25 = vpop.xlane.xlu0 %742 }
 0x272   :  { %749 = vst.msk [vmem:[%s1265_s5 + $0x10] sm:$0xff] %vm746_vm0, %v743_v25 }
 0x273   :  { %v756_v26 = vpop.xlane.xlu1 %755 }
 0x274   :  { %763 = vst.msk [vmem:[%s1266_s6] sm:$0xff] %vm746_vm0, %v756_v26 }
 0x275   :  { %v745_v27 = vpop.xlane.xlu0 %744 }
 0x276   :  { %750 = vst.msk [vmem:[%s1265_s5 + $0x18] sm:$0xff] %vm746_vm0, %v745_v27 }
 0x277   :  { %v760_v28 = vpop.xlane.xlu1 %759 }
 0x278   :  { %765 = vst.msk [vmem:[%s1266_s6 + $0x10] sm:$0xff] %vm746_vm0, %v760_v28 }
 0x279   :  { %v758_v29 = vpop.xlane.xlu0 %757 }
 0x27a   :  { %764 = vst.msk [vmem:[%s1266_s6 + $0x8] sm:$0xff] %vm746_vm0, %v758_v29 }
 0x27d   :  { %v762_v30 = vpop.xlane.xlu0 %761 }
 0x27e   :  { %766 = vst.msk [vmem:[%s1266_s6 + $0x18] sm:$0xff] %vm746_vm0, %v762_v30 }

// kernel: tile.33
= control target key start
LH: loop header
LB: loop body
LE: loop exit
PB: predicated region body
PF: predicated region fallthrough
CT: control target
= control target key end

     0   :  { %s28_s0 = inlined_call_operand.vmem [shape: f32[32], index: 0, kind: input, shape index: {}]   ;;  %s29_s1 = inlined_call_operand.vmem [shape: f32[16,32], index: 1, kind: output, shape index: {}]  }
   0x1   :  { %v4_v0 = vld [vmem:[%s28_s0] ss:$0 sm:$0xff] }
   0x2   :  { %5 = vst [vmem:[%s29_s1] sm:$0xff] %v4_v0  ;;  %8 = vst [vmem:[%s29_s1 + $0x8] sm:$0xff] %v4_v0 }

// kernel: tile.2
= control target key start
LH: loop header
LB: loop body
LE: loop exit
PB: predicated region body
PF: predicated region fallthrough
CT: control target
= control target key end

     0   :  { %s1883_s8 = smov 126   ;;  %s1884_s9 = smov 127   ;;  %vm3_vm0 = vcmask 7168   ;;  %s4050_s0 = inlined_call_operand.vmem [shape: f32[16,32], index: 0, kind: input, shape index: {}]   ;;  %s4051_s1 = inlined_call_operand.vmem [shape: f32[512,1], index: 1, kind: output, shape index: {}]  }
   0x1   :  { %v1927_v0 = vld [vmem:[%s4050_s0] sm:$0xff]   ;;  %v1934_v1 = vld [vmem:[%s4050_s0 + $0x8] sm:$0xff]   ;;  %s1885_s12 = smov 125   ;;  %s1886_s13 = smov 124  }
   0x2   :  { %80 = vrot.lane.b32.xlu1 %v1927_v0, %s1883_s8  ;;  %39 = vrot.lane.b32.xlu0 %v1927_v0, %s1884_s9  ;;  %s1887_s14 = smov 123   ;;  %s1888_s15 = smov 122   ;;  %v2_v2 = vld [vmem:[%s4050_s0] sm:$0xff]   ;;  %v1316_v3 = vld [vmem:[%s4050_s0 + $0x8] sm:$0xff]  }
   0x3   :  { %s1889_s16 = smov 121   ;;  %s1890_s17 = smov 120   ;;  %4 = vst.msk [vmem:[%s4051_s1] sm:$0x1] %vm3_vm0, %v2_v2   ;;  %1309 = vst.msk [vmem:[%s4051_s1 + $0x1f] sm:$0x2] %vm3_vm0, %v2_v2  }
   0x4   :  { %s1891_s18 = smov 119   ;;  %s1892_s19 = smov 118   ;;  %1310 = vst.msk [vmem:[%s4051_s1 + $0x3e] sm:$0x4] %vm3_vm0, %v2_v2   ;;  %1311 = vst.msk [vmem:[%s4051_s1 + $0x5d] sm:$0x8] %vm3_vm0, %v2_v2  }
   0x5   :  { %s1893_s20 = smov 117   ;;  %s1894_s21 = smov 116   ;;  %1312 = vst.msk [vmem:[%s4051_s1 + $0x7c] sm:$0x10] %vm3_vm0, %v2_v2   ;;  %1313 = vst.msk [vmem:[%s4051_s1 + $0x9b] sm:$0x20] %vm3_vm0, %v2_v2  }
   0x6   :  { %101 = vrot.lane.b32.xlu1 %v1934_v1, %s1883_s8  ;;  %60 = vrot.lane.b32.xlu0 %v1934_v1, %s1884_s9  ;;  %s1895_s22 = smov 115   ;;  %s1896_s23 = smov 114   ;;  %1314 = vst.msk [vmem:[%s4051_s1 + $0xba] sm:$0x40] %vm3_vm0, %v2_v2   ;;  %1315 = vst.msk [vmem:[%s4051_s1 + $0xd9] sm:$0x80] %vm3_vm0, %v2_v2  }
   0x7   :  { %s1897_s24 = smov 113   ;;  %s1898_s25 = smov 112   ;;  %1317 = vst.msk [vmem:[%s4051_s1 + $0x100] sm:$0x1] %vm3_vm0, %v1316_v3   ;;  %1318 = vst.msk [vmem:[%s4051_s1 + $0x11f] sm:$0x2] %vm3_vm0, %v1316_v3  }
   0x8   :  { %s1899_s26 = smov 111   ;;  %s1900_s27 = smov 110   ;;  %1319 = vst.msk [vmem:[%s4051_s1 + $0x13e] sm:$0x4] %vm3_vm0, %v1316_v3   ;;  %1320 = vst.msk [vmem:[%s4051_s1 + $0x15d] sm:$0x8] %vm3_vm0, %v1316_v3  }
   0x9   :  { %s1901_s28 = smov 109   ;;  %s1902_s29 = smov 108   ;;  %1321 = vst.msk [vmem:[%s4051_s1 + $0x17c] sm:$0x10] %vm3_vm0, %v1316_v3   ;;  %1322 = vst.msk [vmem:[%s4051_s1 + $0x19b] sm:$0x20] %vm3_vm0, %v1316_v3  }
   0xa   :  { %142 = vrot.lane.b32.xlu1 %v1934_v1, %s1885_s12  ;;  %121 = vrot.lane.b32.xlu0 %v1927_v0, %s1885_s12  ;;  %s1903_s30 = smov 107   ;;  %s1904_s2 = smov 106   ;;  %1323 = vst.msk [vmem:[%s4051_s1 + $0x1ba] sm:$0x40] %vm3_vm0, %v1316_v3   ;;  %1324 = vst.msk [vmem:[%s4051_s1 + $0x1d9] sm:$0x80] %vm3_vm0, %v1316_v3  }
   0xb   :  { %s1905_s3 = smov 105   ;;  %s1906_s4 = smov 104  }
   0xc   :  { %s1907_s5 = smov 103   ;;  %s1908_s6 = smov 102  }
   0xd   :  { %s1909_s7 = smov 101  }
   0xe   :  { %183 = vrot.lane.b32.xlu1 %v1934_v1, %s1886_s13  ;;  %162 = vrot.lane.b32.xlu0 %v1927_v0, %s1886_s13  ;;  %s1910_s13 = smov 100  }
  0x12   :  { %224 = vrot.lane.b32.xlu1 %v1934_v1, %s1887_s14  ;;  %203 = vrot.lane.b32.xlu0 %v1927_v0, %s1887_s14  ;;  %s1911_s14 = smov 99  }
  0x16   :  { %265 = vrot.lane.b32.xlu1 %v1934_v1, %s1888_s15  ;;  %244 = vrot.lane.b32.xlu0 %v1927_v0, %s1888_s15 }
  0x1a   :  { %306 = vrot.lane.b32.xlu1 %v1934_v1, %s1889_s16  ;;  %285 = vrot.lane.b32.xlu0 %v1927_v0, %s1889_s16 }
  0x1e   :  { %347 = vrot.lane.b32.xlu1 %v1934_v1, %s1890_s17  ;;  %326 = vrot.lane.b32.xlu0 %v1927_v0, %s1890_s17  ;;  %s1912_s17 = smov 98  }
  0x22   :  { %388 = vrot.lane.b32.xlu1 %v1934_v1, %s1891_s18  ;;  %367 = vrot.lane.b32.xlu0 %v1927_v0, %s1891_s18 }
  0x26   :  { %429 = vrot.lane.b32.xlu1 %v1934_v1, %s1892_s19  ;;  %408 = vrot.lane.b32.xlu0 %v1927_v0, %s1892_s19 }
  0x2a   :  { %470 = vrot.lane.b32.xlu1 %v1934_v1, %s1893_s20  ;;  %449 = vrot.lane.b32.xlu0 %v1927_v0, %s1893_s20  ;;  %s1913_s20 = smov 97  }
  0x2e   :  { %511 = vrot.lane.b32.xlu1 %v1934_v1, %s1894_s21  ;;  %490 = vrot.lane.b32.xlu0 %v1927_v0, %s1894_s21 }
  0x32   :  { %552 = vrot.lane.b32.xlu1 %v1934_v1, %s1895_s22  ;;  %531 = vrot.lane.b32.xlu0 %v1927_v0, %s1895_s22 }
  0x36   :  { %593 = vrot.lane.b32.xlu1 %v1934_v1, %s1896_s23  ;;  %572 = vrot.lane.b32.xlu0 %v1927_v0, %s1896_s23 }
  0x3a   :  { %634 = vrot.lane.b32.xlu1 %v1934_v1, %s1897_s24  ;;  %613 = vrot.lane.b32.xlu0 %v1927_v0, %s1897_s24 }
  0x3e   :  { %675 = vrot.lane.b32.xlu1 %v1934_v1, %s1898_s25  ;;  %654 = vrot.lane.b32.xlu0 %v1927_v0, %s1898_s25 }
  0x42   :  { %716 = vrot.lane.b32.xlu1 %v1934_v1, %s1899_s26  ;;  %695 = vrot.lane.b32.xlu0 %v1927_v0, %s1899_s26 }
  0x46   :  { %757 = vrot.lane.b32.xlu1 %v1934_v1, %s1900_s27  ;;  %736 = vrot.lane.b32.xlu0 %v1927_v0, %s1900_s27 }
  0x4a   :  { %798 = vrot.lane.b32.xlu1 %v1934_v1, %s1901_s28  ;;  %777 = vrot.lane.b32.xlu0 %v1927_v0, %s1901_s28 }
  0x4e   :  { %839 = vrot.lane.b32.xlu1 %v1934_v1, %s1902_s29  ;;  %818 = vrot.lane.b32.xlu0 %v1927_v0, %s1902_s29 }
  0x52   :  { %880 = vrot.lane.b32.xlu1 %v1934_v1, %s1903_s30  ;;  %859 = vrot.lane.b32.xlu0 %v1927_v0, %s1903_s30 }
  0x56   :  { %921 = vrot.lane.b32.xlu1 %v1934_v1, %s1904_s2  ;;  %900 = vrot.lane.b32.xlu0 %v1927_v0, %s1904_s2 }
  0x5a   :  { %962 = vrot.lane.b32.xlu1 %v1934_v1, %s1905_s3  ;;  %941 = vrot.lane.b32.xlu0 %v1927_v0, %s1905_s3 }
  0x5e   :  { %1003 = vrot.lane.b32.xlu1 %v1934_v1, %s1906_s4  ;;  %982 = vrot.lane.b32.xlu0 %v1927_v0, %s1906_s4 }
  0x62   :  { %1044 = vrot.lane.b32.xlu1 %v1934_v1, %s1907_s5  ;;  %1023 = vrot.lane.b32.xlu0 %v1927_v0, %s1907_s5 }
  0x66   :  { %1085 = vrot.lane.b32.xlu1 %v1934_v1, %s1908_s6  ;;  %1064 = vrot.lane.b32.xlu0 %v1927_v0, %s1908_s6 }
  0x6a   :  { %1126 = vrot.lane.b32.xlu1 %v1934_v1, %s1909_s7  ;;  %1105 = vrot.lane.b32.xlu0 %v1927_v0, %s1909_s7 }
  0x6e   :  { %1167 = vrot.lane.b32.xlu1 %v1934_v1, %s1910_s13  ;;  %1146 = vrot.lane.b32.xlu0 %v1927_v0, %s1910_s13 }
  0x72   :  { %1208 = vrot.lane.b32.xlu1 %v1934_v1, %s1911_s14  ;;  %1187 = vrot.lane.b32.xlu0 %v1927_v0, %s1911_s14 }
  0x74   :  { %v81_v4 = vpop.permute.xlu1 %80   ;;  %v40_v5 = vpop.permute.xlu0 %39  }
  0x75   :  { %1342 = vst.msk [vmem:[%s4051_s1 + $0x2] sm:$0x1] %vm3_vm0, %v81_v4   ;;  %1343 = vst.msk [vmem:[%s4051_s1 + $0x21] sm:$0x2] %vm3_vm0, %v81_v4  }
  0x76   :  { %1344 = vst.msk [vmem:[%s4051_s1 + $0x40] sm:$0x4] %vm3_vm0, %v81_v4   ;;  %1345 = vst.msk [vmem:[%s4051_s1 + $0x5f] sm:$0x8] %vm3_vm0, %v81_v4   ;;  %1249 = vrot.lane.b32.xlu1 %v1934_v1, %s1912_s17  ;;  %1228 = vrot.lane.b32.xlu0 %v1927_v0, %s1912_s17 }
  0x77   :  { %1346 = vst.msk [vmem:[%s4051_s1 + $0x7e] sm:$0x10] %vm3_vm0, %v81_v4   ;;  %1347 = vst.msk [vmem:[%s4051_s1 + $0x9d] sm:$0x20] %vm3_vm0, %v81_v4  }
  0x78   :  { %1348 = vst.msk [vmem:[%s4051_s1 + $0xbc] sm:$0x40] %vm3_vm0, %v81_v4   ;;  %1349 = vst.msk [vmem:[%s4051_s1 + $0xdb] sm:$0x80] %vm3_vm0, %v81_v4   ;;  %v102_v6 = vpop.permute.xlu1 %101   ;;  %v61_v7 = vpop.permute.xlu0 %60  }
  0x79   :  { %1325 = vst.msk [vmem:[%s4051_s1 + $0x1] sm:$0x1] %vm3_vm0, %v40_v5   ;;  %1326 = vst.msk [vmem:[%s4051_s1 + $0x20] sm:$0x2] %vm3_vm0, %v40_v5  }
  0x7a   :  { %1327 = vst.msk [vmem:[%s4051_s1 + $0x3f] sm:$0x4] %vm3_vm0, %v40_v5   ;;  %1328 = vst.msk [vmem:[%s4051_s1 + $0x5e] sm:$0x8] %vm3_vm0, %v40_v5   ;;  %1290 = vrot.lane.b32.xlu1 %v1934_v1, %s1913_s20  ;;  %1269 = vrot.lane.b32.xlu0 %v1927_v0, %s1913_s20 }
  0x7b   :  { %1329 = vst.msk [vmem:[%s4051_s1 + $0x7d] sm:$0x10] %vm3_vm0, %v40_v5   ;;  %1330 = vst.msk [vmem:[%s4051_s1 + $0x9c] sm:$0x20] %vm3_vm0, %v40_v5  }
  0x7c   :  { %1331 = vst.msk [vmem:[%s4051_s1 + $0xbb] sm:$0x40] %vm3_vm0, %v40_v5   ;;  %1332 = vst.msk [vmem:[%s4051_s1 + $0xda] sm:$0x80] %vm3_vm0, %v40_v5   ;;  %v143_v8 = vpop.permute.xlu1 %142   ;;  %v122_v9 = vpop.permute.xlu0 %121  }
  0x7d   :  { %1351 = vst.msk [vmem:[%s4051_s1 + $0x102] sm:$0x1] %vm3_vm0, %v102_v6   ;;  %1352 = vst.msk [vmem:[%s4051_s1 + $0x121] sm:$0x2] %vm3_vm0, %v102_v6  }
  0x7e   :  { %1353 = vst.msk [vmem:[%s4051_s1 + $0x140] sm:$0x4] %vm3_vm0, %v102_v6   ;;  %1354 = vst.msk [vmem:[%s4051_s1 + $0x15f] sm:$0x8] %vm3_vm0, %v102_v6  }
  0x7f   :  { %1355 = vst.msk [vmem:[%s4051_s1 + $0x17e] sm:$0x10] %vm3_vm0, %v102_v6   ;;  %1356 = vst.msk [vmem:[%s4051_s1 + $0x19d] sm:$0x20] %vm3_vm0, %v102_v6  }
  0x80   :  { %1357 = vst.msk [vmem:[%s4051_s1 + $0x1bc] sm:$0x40] %vm3_vm0, %v102_v6   ;;  %1358 = vst.msk [vmem:[%s4051_s1 + $0x1db] sm:$0x80] %vm3_vm0, %v102_v6   ;;  %v184_v10 = vpop.permute.xlu1 %183   ;;  %v163_v11 = vpop.permute.xlu0 %162  }
  0x81   :  { %1334 = vst.msk [vmem:[%s4051_s1 + $0x101] sm:$0x1] %vm3_vm0, %v61_v7   ;;  %1335 = vst.msk [vmem:[%s4051_s1 + $0x120] sm:$0x2] %vm3_vm0, %v61_v7  }
  0x82   :  { %1336 = vst.msk [vmem:[%s4051_s1 + $0x13f] sm:$0x4] %vm3_vm0, %v61_v7   ;;  %1337 = vst.msk [vmem:[%s4051_s1 + $0x15e] sm:$0x8] %vm3_vm0, %v61_v7  }
  0x83   :  { %1338 = vst.msk [vmem:[%s4051_s1 + $0x17d] sm:$0x10] %vm3_vm0, %v61_v7   ;;  %1339 = vst.msk [vmem:[%s4051_s1 + $0x19c] sm:$0x20] %vm3_vm0, %v61_v7  }
  0x84   :  { %1340 = vst.msk [vmem:[%s4051_s1 + $0x1bb] sm:$0x40] %vm3_vm0, %v61_v7   ;;  %1341 = vst.msk [vmem:[%s4051_s1 + $0x1da] sm:$0x80] %vm3_vm0, %v61_v7   ;;  %v225_v12 = vpop.permute.xlu1 %224   ;;  %v204_v13 = vpop.permute.xlu0 %203  }
  0x85   :  { %1368 = vst.msk [vmem:[%s4051_s1 + $0x103] sm:$0x1] %vm3_vm0, %v143_v8   ;;  %1369 = vst.msk [vmem:[%s4051_s1 + $0x122] sm:$0x2] %vm3_vm0, %v143_v8  }
  0x86   :  { %1370 = vst.msk [vmem:[%s4051_s1 + $0x141] sm:$0x4] %vm3_vm0, %v143_v8   ;;  %1371 = vst.msk [vmem:[%s4051_s1 + $0x160] sm:$0x8] %vm3_vm0, %v143_v8  }
  0x87   :  { %1372 = vst.msk [vmem:[%s4051_s1 + $0x17f] sm:$0x10] %vm3_vm0, %v143_v8   ;;  %1373 = vst.msk [vmem:[%s4051_s1 + $0x19e] sm:$0x20] %vm3_vm0, %v143_v8  }
  0x88   :  { %1374 = vst.msk [vmem:[%s4051_s1 + $0x1bd] sm:$0x40] %vm3_vm0, %v143_v8   ;;  %1375 = vst.msk [vmem:[%s4051_s1 + $0x1dc] sm:$0x80] %vm3_vm0, %v143_v8   ;;  %v266_v14 = vpop.permute.xlu1 %265   ;;  %v245_v15 = vpop.permute.xlu0 %244  }
  0x89   :  { %1359 = vst.msk [vmem:[%s4051_s1 + $0x3] sm:$0x1] %vm3_vm0, %v122_v9   ;;  %1360 = vst.msk [vmem:[%s4051_s1 + $0x22] sm:$0x2] %vm3_vm0, %v122_v9  }
  0x8a   :  { %1361 = vst.msk [vmem:[%s4051_s1 + $0x41] sm:$0x4] %vm3_vm0, %v122_v9   ;;  %1362 = vst.msk [vmem:[%s4051_s1 + $0x60] sm:$0x8] %vm3_vm0, %v122_v9  }
  0x8b   :  { %1363 = vst.msk [vmem:[%s4051_s1 + $0x7f] sm:$0x10] %vm3_vm0, %v122_v9   ;;  %1364 = vst.msk [vmem:[%s4051_s1 + $0x9e] sm:$0x20] %vm3_vm0, %v122_v9  }
  0x8c   :  { %1365 = vst.msk [vmem:[%s4051_s1 + $0xbd] sm:$0x40] %vm3_vm0, %v122_v9   ;;  %1366 = vst.msk [vmem:[%s4051_s1 + $0xdc] sm:$0x80] %vm3_vm0, %v122_v9   ;;  %v307_v16 = vpop.permute.xlu1 %306   ;;  %v286_v17 = vpop.permute.xlu0 %285  }
  0x8d   :  { %1385 = vst.msk [vmem:[%s4051_s1 + $0x104] sm:$0x1] %vm3_vm0, %v184_v10   ;;  %1386 = vst.msk [vmem:[%s4051_s1 + $0x123] sm:$0x2] %vm3_vm0, %v184_v10  }
  0x8e   :  { %1387 = vst.msk [vmem:[%s4051_s1 + $0x142] sm:$0x4] %vm3_vm0, %v184_v10   ;;  %1388 = vst.msk [vmem:[%s4051_s1 + $0x161] sm:$0x8] %vm3_vm0, %v184_v10  }
  0x8f   :  { %1389 = vst.msk [vmem:[%s4051_s1 + $0x180] sm:$0x10] %vm3_vm0, %v184_v10   ;;  %1390 = vst.msk [vmem:[%s4051_s1 + $0x19f] sm:$0x20] %vm3_vm0, %v184_v10  }
  0x90   :  { %1391 = vst.msk [vmem:[%s4051_s1 + $0x1be] sm:$0x40] %vm3_vm0, %v184_v10   ;;  %1392 = vst.msk [vmem:[%s4051_s1 + $0x1dd] sm:$0x80] %vm3_vm0, %v184_v10   ;;  %v348_v18 = vpop.permute.xlu1 %347   ;;  %v327_v19 = vpop.permute.xlu0 %326  }
  0x91   :  { %1376 = vst.msk [vmem:[%s4051_s1 + $0x4] sm:$0x1] %vm3_vm0, %v163_v11   ;;  %1377 = vst.msk [vmem:[%s4051_s1 + $0x23] sm:$0x2] %vm3_vm0, %v163_v11  }
  0x92   :  { %1378 = vst.msk [vmem:[%s4051_s1 + $0x42] sm:$0x4] %vm3_vm0, %v163_v11   ;;  %1379 = vst.msk [vmem:[%s4051_s1 + $0x61] sm:$0x8] %vm3_vm0, %v163_v11  }
  0x93   :  { %1380 = vst.msk [vmem:[%s4051_s1 + $0x80] sm:$0x10] %vm3_vm0, %v163_v11   ;;  %1381 = vst.msk [vmem:[%s4051_s1 + $0x9f] sm:$0x20] %vm3_vm0, %v163_v11  }
  0x94   :  { %1382 = vst.msk [vmem:[%s4051_s1 + $0xbe] sm:$0x40] %vm3_vm0, %v163_v11   ;;  %1383 = vst.msk [vmem:[%s4051_s1 + $0xdd] sm:$0x80] %vm3_vm0, %v163_v11   ;;  %v389_v20 = vpop.permute.xlu1 %388   ;;  %v368_v21 = vpop.permute.xlu0 %367  }
  0x95   :  { %1402 = vst.msk [vmem:[%s4051_s1 + $0x105] sm:$0x1] %vm3_vm0, %v225_v12   ;;  %1403 = vst.msk [vmem:[%s4051_s1 + $0x124] sm:$0x2] %vm3_vm0, %v225_v12  }
  0x96   :  { %1404 = vst.msk [vmem:[%s4051_s1 + $0x143] sm:$0x4] %vm3_vm0, %v225_v12   ;;  %1405 = vst.msk [vmem:[%s4051_s1 + $0x162] sm:$0x8] %vm3_vm0, %v225_v12  }
  0x97   :  { %1406 = vst.msk [vmem:[%s4051_s1 + $0x181] sm:$0x10] %vm3_vm0, %v225_v12   ;;  %1407 = vst.msk [vmem:[%s4051_s1 + $0x1a0] sm:$0x20] %vm3_vm0, %v225_v12  }
  0x98   :  { %1408 = vst.msk [vmem:[%s4051_s1 + $0x1bf] sm:$0x40] %vm3_vm0, %v225_v12   ;;  %1409 = vst.msk [vmem:[%s4051_s1 + $0x1de] sm:$0x80] %vm3_vm0, %v225_v12   ;;  %v430_v22 = vpop.permute.xlu1 %429   ;;  %v409_v23 = vpop.permute.xlu0 %408  }
  0x99   :  { %1393 = vst.msk [vmem:[%s4051_s1 + $0x5] sm:$0x1] %vm3_vm0, %v204_v13   ;;  %1394 = vst.msk [vmem:[%s4051_s1 + $0x24] sm:$0x2] %vm3_vm0, %v204_v13  }
  0x9a   :  { %1395 = vst.msk [vmem:[%s4051_s1 + $0x43] sm:$0x4] %vm3_vm0, %v204_v13   ;;  %1396 = vst.msk [vmem:[%s4051_s1 + $0x62] sm:$0x8] %vm3_vm0, %v204_v13  }
  0x9b   :  { %1397 = vst.msk [vmem:[%s4051_s1 + $0x81] sm:$0x10] %vm3_vm0, %v204_v13   ;;  %1398 = vst.msk [vmem:[%s4051_s1 + $0xa0] sm:$0x20] %vm3_vm0, %v204_v13  }
  0x9c   :  { %1399 = vst.msk [vmem:[%s4051_s1 + $0xbf] sm:$0x40] %vm3_vm0, %v204_v13   ;;  %1400 = vst.msk [vmem:[%s4051_s1 + $0xde] sm:$0x80] %vm3_vm0, %v204_v13   ;;  %v471_v24 = vpop.permute.xlu1 %470   ;;  %v450_v25 = vpop.permute.xlu0 %449  }
  0x9d   :  { %1419 = vst.msk [vmem:[%s4051_s1 + $0x106] sm:$0x1] %vm3_vm0, %v266_v14   ;;  %1420 = vst.msk [vmem:[%s4051_s1 + $0x125] sm:$0x2] %vm3_vm0, %v266_v14  }
  0x9e   :  { %1421 = vst.msk [vmem:[%s4051_s1 + $0x144] sm:$0x4] %vm3_vm0, %v266_v14   ;;  %1422 = vst.msk [vmem:[%s4051_s1 + $0x163] sm:$0x8] %vm3_vm0, %v266_v14  }
  0x9f   :  { %1423 = vst.msk [vmem:[%s4051_s1 + $0x182] sm:$0x10] %vm3_vm0, %v266_v14   ;;  %1424 = vst.msk [vmem:[%s4051_s1 + $0x1a1] sm:$0x20] %vm3_vm0, %v266_v14  }
  0xa0   :  { %1425 = vst.msk [vmem:[%s4051_s1 + $0x1c0] sm:$0x40] %vm3_vm0, %v266_v14   ;;  %1426 = vst.msk [vmem:[%s4051_s1 + $0x1df] sm:$0x80] %vm3_vm0, %v266_v14   ;;  %v512_v26 = vpop.permute.xlu1 %511   ;;  %v491_v27 = vpop.permute.xlu0 %490  }
  0xa1   :  { %1410 = vst.msk [vmem:[%s4051_s1 + $0x6] sm:$0x1] %vm3_vm0, %v245_v15   ;;  %1411 = vst.msk [vmem:[%s4051_s1 + $0x25] sm:$0x2] %vm3_vm0, %v245_v15  }
  0xa2   :  { %1412 = vst.msk [vmem:[%s4051_s1 + $0x44] sm:$0x4] %vm3_vm0, %v245_v15   ;;  %1413 = vst.msk [vmem:[%s4051_s1 + $0x63] sm:$0x8] %vm3_vm0, %v245_v15  }
  0xa3   :  { %1414 = vst.msk [vmem:[%s4051_s1 + $0x82] sm:$0x10] %vm3_vm0, %v245_v15   ;;  %1415 = vst.msk [vmem:[%s4051_s1 + $0xa1] sm:$0x20] %vm3_vm0, %v245_v15  }
  0xa4   :  { %1416 = vst.msk [vmem:[%s4051_s1 + $0xc0] sm:$0x40] %vm3_vm0, %v245_v15   ;;  %1417 = vst.msk [vmem:[%s4051_s1 + $0xdf] sm:$0x80] %vm3_vm0, %v245_v15   ;;  %v553_v28 = vpop.permute.xlu1 %552   ;;  %v532_v29 = vpop.permute.xlu0 %531  }
  0xa5   :  { %1436 = vst.msk [vmem:[%s4051_s1 + $0x107] sm:$0x1] %vm3_vm0, %v307_v16   ;;  %1437 = vst.msk [vmem:[%s4051_s1 + $0x126] sm:$0x2] %vm3_vm0, %v307_v16  }
  0xa6   :  { %1438 = vst.msk [vmem:[%s4051_s1 + $0x145] sm:$0x4] %vm3_vm0, %v307_v16   ;;  %1439 = vst.msk [vmem:[%s4051_s1 + $0x164] sm:$0x8] %vm3_vm0, %v307_v16  }
  0xa7   :  { %1440 = vst.msk [vmem:[%s4051_s1 + $0x183] sm:$0x10] %vm3_vm0, %v307_v16   ;;  %1441 = vst.msk [vmem:[%s4051_s1 + $0x1a2] sm:$0x20] %vm3_vm0, %v307_v16  }
  0xa8   :  { %1442 = vst.msk [vmem:[%s4051_s1 + $0x1c1] sm:$0x40] %vm3_vm0, %v307_v16   ;;  %1443 = vst.msk [vmem:[%s4051_s1 + $0x1e0] sm:$0x80] %vm3_vm0, %v307_v16   ;;  %v594_v30 = vpop.permute.xlu1 %593   ;;  %v573_v31 = vpop.permute.xlu0 %572  }
  0xa9   :  { %1427 = vst.msk [vmem:[%s4051_s1 + $0x7] sm:$0x1] %vm3_vm0, %v286_v17   ;;  %1428 = vst.msk [vmem:[%s4051_s1 + $0x26] sm:$0x2] %vm3_vm0, %v286_v17  }
  0xaa   :  { %1429 = vst.msk [vmem:[%s4051_s1 + $0x45] sm:$0x4] %vm3_vm0, %v286_v17   ;;  %1430 = vst.msk [vmem:[%s4051_s1 + $0x64] sm:$0x8] %vm3_vm0, %v286_v17  }
  0xab   :  { %1431 = vst.msk [vmem:[%s4051_s1 + $0x83] sm:$0x10] %vm3_vm0, %v286_v17   ;;  %1432 = vst.msk [vmem:[%s4051_s1 + $0xa2] sm:$0x20] %vm3_vm0, %v286_v17  }
  0xac   :  { %1433 = vst.msk [vmem:[%s4051_s1 + $0xc1] sm:$0x40] %vm3_vm0, %v286_v17   ;;  %1434 = vst.msk [vmem:[%s4051_s1 + $0xe0] sm:$0x80] %vm3_vm0, %v286_v17   ;;  %v635_v32 = vpop.permute.xlu1 %634   ;;  %v614_v33 = vpop.permute.xlu0 %613  }
  0xad   :  { %1453 = vst.msk [vmem:[%s4051_s1 + $0x108] sm:$0x1] %vm3_vm0, %v348_v18   ;;  %1454 = vst.msk [vmem:[%s4051_s1 + $0x127] sm:$0x2] %vm3_vm0, %v348_v18  }
  0xae   :  { %1455 = vst.msk [vmem:[%s4051_s1 + $0x146] sm:$0x4] %vm3_vm0, %v348_v18   ;;  %1456 = vst.msk [vmem:[%s4051_s1 + $0x165] sm:$0x8] %vm3_vm0, %v348_v18  }
  0xaf   :  { %1457 = vst.msk [vmem:[%s4051_s1 + $0x184] sm:$0x10] %vm3_vm0, %v348_v18   ;;  %1458 = vst.msk [vmem:[%s4051_s1 + $0x1a3] sm:$0x20] %vm3_vm0, %v348_v18  }
  0xb0   :  { %1459 = vst.msk [vmem:[%s4051_s1 + $0x1c2] sm:$0x40] %vm3_vm0, %v348_v18   ;;  %1460 = vst.msk [vmem:[%s4051_s1 + $0x1e1] sm:$0x80] %vm3_vm0, %v348_v18   ;;  %v676_v34 = vpop.permute.xlu1 %675   ;;  %v655_v35 = vpop.permute.xlu0 %654  }
  0xb1   :  { %1444 = vst.msk [vmem:[%s4051_s1 + $0x8] sm:$0x1] %vm3_vm0, %v327_v19   ;;  %1445 = vst.msk [vmem:[%s4051_s1 + $0x27] sm:$0x2] %vm3_vm0, %v327_v19  }
  0xb2   :  { %1446 = vst.msk [vmem:[%s4051_s1 + $0x46] sm:$0x4] %vm3_vm0, %v327_v19   ;;  %1447 = vst.msk [vmem:[%s4051_s1 + $0x65] sm:$0x8] %vm3_vm0, %v327_v19  }
  0xb3   :  { %1448 = vst.msk [vmem:[%s4051_s1 + $0x84] sm:$0x10] %vm3_vm0, %v327_v19   ;;  %1449 = vst.msk [vmem:[%s4051_s1 + $0xa3] sm:$0x20] %vm3_vm0, %v327_v19  }
  0xb4   :  { %1450 = vst.msk [vmem:[%s4051_s1 + $0xc2] sm:$0x40] %vm3_vm0, %v327_v19   ;;  %1451 = vst.msk [vmem:[%s4051_s1 + $0xe1] sm:$0x80] %vm3_vm0, %v327_v19   ;;  %v717_v36 = vpop.permute.xlu1 %716   ;;  %v696_v37 = vpop.permute.xlu0 %695  }
  0xb5   :  { %1470 = vst.msk [vmem:[%s4051_s1 + $0x109] sm:$0x1] %vm3_vm0, %v389_v20   ;;  %1471 = vst.msk [vmem:[%s4051_s1 + $0x128] sm:$0x2] %vm3_vm0, %v389_v20  }
  0xb6   :  { %1472 = vst.msk [vmem:[%s4051_s1 + $0x147] sm:$0x4] %vm3_vm0, %v389_v20   ;;  %1473 = vst.msk [vmem:[%s4051_s1 + $0x166] sm:$0x8] %vm3_vm0, %v389_v20  }
  0xb7   :  { %1474 = vst.msk [vmem:[%s4051_s1 + $0x185] sm:$0x10] %vm3_vm0, %v389_v20   ;;  %1475 = vst.msk [vmem:[%s4051_s1 + $0x1a4] sm:$0x20] %vm3_vm0, %v389_v20  }
  0xb8   :  { %1476 = vst.msk [vmem:[%s4051_s1 + $0x1c3] sm:$0x40] %vm3_vm0, %v389_v20   ;;  %1477 = vst.msk [vmem:[%s4051_s1 + $0x1e2] sm:$0x80] %vm3_vm0, %v389_v20   ;;  %v758_v38 = vpop.permute.xlu1 %757   ;;  %v737_v39 = vpop.permute.xlu0 %736  }
  0xb9   :  { %1461 = vst.msk [vmem:[%s4051_s1 + $0x9] sm:$0x1] %vm3_vm0, %v368_v21   ;;  %1462 = vst.msk [vmem:[%s4051_s1 + $0x28] sm:$0x2] %vm3_vm0, %v368_v21  }
  0xba   :  { %1463 = vst.msk [vmem:[%s4051_s1 + $0x47] sm:$0x4] %vm3_vm0, %v368_v21   ;;  %1464 = vst.msk [vmem:[%s4051_s1 + $0x66] sm:$0x8] %vm3_vm0, %v368_v21  }
  0xbb   :  { %1465 = vst.msk [vmem:[%s4051_s1 + $0x85] sm:$0x10] %vm3_vm0, %v368_v21   ;;  %1466 = vst.msk [vmem:[%s4051_s1 + $0xa4] sm:$0x20] %vm3_vm0, %v368_v21  }
  0xbc   :  { %1467 = vst.msk [vmem:[%s4051_s1 + $0xc3] sm:$0x40] %vm3_vm0, %v368_v21   ;;  %1468 = vst.msk [vmem:[%s4051_s1 + $0xe2] sm:$0x80] %vm3_vm0, %v368_v21   ;;  %v799_v40 = vpop.permute.xlu1 %798   ;;  %v778_v41 = vpop.permute.xlu0 %777  }
  0xbd   :  { %1487 = vst.msk [vmem:[%s4051_s1 + $0x10a] sm:$0x1] %vm3_vm0, %v430_v22   ;;  %1488 = vst.msk [vmem:[%s4051_s1 + $0x129] sm:$0x2] %vm3_vm0, %v430_v22  }
  0xbe   :  { %1489 = vst.msk [vmem:[%s4051_s1 + $0x148] sm:$0x4] %vm3_vm0, %v430_v22   ;;  %1490 = vst.msk [vmem:[%s4051_s1 + $0x167] sm:$0x8] %vm3_vm0, %v430_v22  }
  0xbf   :  { %1491 = vst.msk [vmem:[%s4051_s1 + $0x186] sm:$0x10] %vm3_vm0, %v430_v22   ;;  %1492 = vst.msk [vmem:[%s4051_s1 + $0x1a5] sm:$0x20] %vm3_vm0, %v430_v22  }
  0xc0   :  { %1493 = vst.msk [vmem:[%s4051_s1 + $0x1c4] sm:$0x40] %vm3_vm0, %v430_v22   ;;  %1494 = vst.msk [vmem:[%s4051_s1 + $0x1e3] sm:$0x80] %vm3_vm0, %v430_v22   ;;  %v840_v42 = vpop.permute.xlu1 %839   ;;  %v819_v43 = vpop.permute.xlu0 %818  }
  0xc1   :  { %1478 = vst.msk [vmem:[%s4051_s1 + $0xa] sm:$0x1] %vm3_vm0, %v409_v23   ;;  %1479 = vst.msk [vmem:[%s4051_s1 + $0x29] sm:$0x2] %vm3_vm0, %v409_v23  }
  0xc2   :  { %1480 = vst.msk [vmem:[%s4051_s1 + $0x48] sm:$0x4] %vm3_vm0, %v409_v23   ;;  %1481 = vst.msk [vmem:[%s4051_s1 + $0x67] sm:$0x8] %vm3_vm0, %v409_v23  }
  0xc3   :  { %1482 = vst.msk [vmem:[%s4051_s1 + $0x86] sm:$0x10] %vm3_vm0, %v409_v23   ;;  %1483 = vst.msk [vmem:[%s4051_s1 + $0xa5] sm:$0x20] %vm3_vm0, %v409_v23  }
  0xc4   :  { %1484 = vst.msk [vmem:[%s4051_s1 + $0xc4] sm:$0x40] %vm3_vm0, %v409_v23   ;;  %1485 = vst.msk [vmem:[%s4051_s1 + $0xe3] sm:$0x80] %vm3_vm0, %v409_v23   ;;  %v881_v44 = vpop.permute.xlu1 %880   ;;  %v860_v45 = vpop.permute.xlu0 %859  }
  0xc5   :  { %1504 = vst.msk [vmem:[%s4051_s1 + $0x10b] sm:$0x1] %vm3_vm0, %v471_v24   ;;  %1505 = vst.msk [vmem:[%s4051_s1 + $0x12a] sm:$0x2] %vm3_vm0, %v471_v24  }
  0xc6   :  { %1506 = vst.msk [vmem:[%s4051_s1 + $0x149] sm:$0x4] %vm3_vm0, %v471_v24   ;;  %1507 = vst.msk [vmem:[%s4051_s1 + $0x168] sm:$0x8] %vm3_vm0, %v471_v24  }
  0xc7   :  { %1508 = vst.msk [vmem:[%s4051_s1 + $0x187] sm:$0x10] %vm3_vm0, %v471_v24   ;;  %1509 = vst.msk [vmem:[%s4051_s1 + $0x1a6] sm:$0x20] %vm3_vm0, %v471_v24  }
  0xc8   :  { %1510 = vst.msk [vmem:[%s4051_s1 + $0x1c5] sm:$0x40] %vm3_vm0, %v471_v24   ;;  %1511 = vst.msk [vmem:[%s4051_s1 + $0x1e4] sm:$0x80] %vm3_vm0, %v471_v24   ;;  %v922_v46 = vpop.permute.xlu1 %921   ;;  %v901_v47 = vpop.permute.xlu0 %900  }
  0xc9   :  { %1495 = vst.msk [vmem:[%s4051_s1 + $0xb] sm:$0x1] %vm3_vm0, %v450_v25   ;;  %1496 = vst.msk [vmem:[%s4051_s1 + $0x2a] sm:$0x2] %vm3_vm0, %v450_v25  }
  0xca   :  { %1497 = vst.msk [vmem:[%s4051_s1 + $0x49] sm:$0x4] %vm3_vm0, %v450_v25   ;;  %1498 = vst.msk [vmem:[%s4051_s1 + $0x68] sm:$0x8] %vm3_vm0, %v450_v25  }
  0xcb   :  { %1499 = vst.msk [vmem:[%s4051_s1 + $0x87] sm:$0x10] %vm3_vm0, %v450_v25   ;;  %1500 = vst.msk [vmem:[%s4051_s1 + $0xa6] sm:$0x20] %vm3_vm0, %v450_v25  }
  0xcc   :  { %1501 = vst.msk [vmem:[%s4051_s1 + $0xc5] sm:$0x40] %vm3_vm0, %v450_v25   ;;  %1502 = vst.msk [vmem:[%s4051_s1 + $0xe4] sm:$0x80] %vm3_vm0, %v450_v25   ;;  %v963_v48 = vpop.permute.xlu1 %962   ;;  %v942_v49 = vpop.permute.xlu0 %941  }
  0xcd   :  { %1521 = vst.msk [vmem:[%s4051_s1 + $0x10c] sm:$0x1] %vm3_vm0, %v512_v26   ;;  %1522 = vst.msk [vmem:[%s4051_s1 + $0x12b] sm:$0x2] %vm3_vm0, %v512_v26  }
  0xce   :  { %1523 = vst.msk [vmem:[%s4051_s1 + $0x14a] sm:$0x4] %vm3_vm0, %v512_v26   ;;  %1524 = vst.msk [vmem:[%s4051_s1 + $0x169] sm:$0x8] %vm3_vm0, %v512_v26  }
  0xcf   :  { %1525 = vst.msk [vmem:[%s4051_s1 + $0x188] sm:$0x10] %vm3_vm0, %v512_v26   ;;  %1526 = vst.msk [vmem:[%s4051_s1 + $0x1a7] sm:$0x20] %vm3_vm0, %v512_v26  }
  0xd0   :  { %1527 = vst.msk [vmem:[%s4051_s1 + $0x1c6] sm:$0x40] %vm3_vm0, %v512_v26   ;;  %1528 = vst.msk [vmem:[%s4051_s1 + $0x1e5] sm:$0x80] %vm3_vm0, %v512_v26   ;;  %v1004_v50 = vpop.permute.xlu1 %1003   ;;  %v983_v51 = vpop.permute.xlu0 %982  }
  0xd1   :  { %1512 = vst.msk [vmem:[%s4051_s1 + $0xc] sm:$0x1] %vm3_vm0, %v491_v27   ;;  %1513 = vst.msk [vmem:[%s4051_s1 + $0x2b] sm:$0x2] %vm3_vm0, %v491_v27  }
  0xd2   :  { %1514 = vst.msk [vmem:[%s4051_s1 + $0x4a] sm:$0x4] %vm3_vm0, %v491_v27   ;;  %1515 = vst.msk [vmem:[%s4051_s1 + $0x69] sm:$0x8] %vm3_vm0, %v491_v27  }
  0xd3   :  { %1516 = vst.msk [vmem:[%s4051_s1 + $0x88] sm:$0x10] %vm3_vm0, %v491_v27   ;;  %1517 = vst.msk [vmem:[%s4051_s1 + $0xa7] sm:$0x20] %vm3_vm0, %v491_v27  }
  0xd4   :  { %1518 = vst.msk [vmem:[%s4051_s1 + $0xc6] sm:$0x40] %vm3_vm0, %v491_v27   ;;  %1519 = vst.msk [vmem:[%s4051_s1 + $0xe5] sm:$0x80] %vm3_vm0, %v491_v27   ;;  %v1045_v52 = vpop.permute.xlu1 %1044   ;;  %v1024_v53 = vpop.permute.xlu0 %1023  }
  0xd5   :  { %1538 = vst.msk [vmem:[%s4051_s1 + $0x10d] sm:$0x1] %vm3_vm0, %v553_v28   ;;  %1539 = vst.msk [vmem:[%s4051_s1 + $0x12c] sm:$0x2] %vm3_vm0, %v553_v28  }
  0xd6   :  { %1540 = vst.msk [vmem:[%s4051_s1 + $0x14b] sm:$0x4] %vm3_vm0, %v553_v28   ;;  %1541 = vst.msk [vmem:[%s4051_s1 + $0x16a] sm:$0x8] %vm3_vm0, %v553_v28  }
  0xd7   :  { %1542 = vst.msk [vmem:[%s4051_s1 + $0x189] sm:$0x10] %vm3_vm0, %v553_v28   ;;  %1543 = vst.msk [vmem:[%s4051_s1 + $0x1a8] sm:$0x20] %vm3_vm0, %v553_v28  }
  0xd8   :  { %1544 = vst.msk [vmem:[%s4051_s1 + $0x1c7] sm:$0x40] %vm3_vm0, %v553_v28   ;;  %1545 = vst.msk [vmem:[%s4051_s1 + $0x1e6] sm:$0x80] %vm3_vm0, %v553_v28   ;;  %v1086_v54 = vpop.permute.xlu1 %1085   ;;  %v1065_v55 = vpop.permute.xlu0 %1064  }
  0xd9   :  { %1529 = vst.msk [vmem:[%s4051_s1 + $0xd] sm:$0x1] %vm3_vm0, %v532_v29   ;;  %1530 = vst.msk [vmem:[%s4051_s1 + $0x2c] sm:$0x2] %vm3_vm0, %v532_v29  }
  0xda   :  { %1531 = vst.msk [vmem:[%s4051_s1 + $0x4b] sm:$0x4] %vm3_vm0, %v532_v29   ;;  %1532 = vst.msk [vmem:[%s4051_s1 + $0x6a] sm:$0x8] %vm3_vm0, %v532_v29  }
  0xdb   :  { %1533 = vst.msk [vmem:[%s4051_s1 + $0x89] sm:$0x10] %vm3_vm0, %v532_v29   ;;  %1534 = vst.msk [vmem:[%s4051_s1 + $0xa8] sm:$0x20] %vm3_vm0, %v532_v29  }
  0xdc   :  { %1535 = vst.msk [vmem:[%s4051_s1 + $0xc7] sm:$0x40] %vm3_vm0, %v532_v29   ;;  %1536 = vst.msk [vmem:[%s4051_s1 + $0xe6] sm:$0x80] %vm3_vm0, %v532_v29   ;;  %v1127_v56 = vpop.permute.xlu1 %1126   ;;  %v1106_v57 = vpop.permute.xlu0 %1105  }
  0xdd   :  { %1555 = vst.msk [vmem:[%s4051_s1 + $0x10e] sm:$0x1] %vm3_vm0, %v594_v30   ;;  %1556 = vst.msk [vmem:[%s4051_s1 + $0x12d] sm:$0x2] %vm3_vm0, %v594_v30  }
  0xde   :  { %1557 = vst.msk [vmem:[%s4051_s1 + $0x14c] sm:$0x4] %vm3_vm0, %v594_v30   ;;  %1558 = vst.msk [vmem:[%s4051_s1 + $0x16b] sm:$0x8] %vm3_vm0, %v594_v30  }
  0xdf   :  { %1559 = vst.msk [vmem:[%s4051_s1 + $0x18a] sm:$0x10] %vm3_vm0, %v594_v30   ;;  %1560 = vst.msk [vmem:[%s4051_s1 + $0x1a9] sm:$0x20] %vm3_vm0, %v594_v30  }
  0xe0   :  { %1561 = vst.msk [vmem:[%s4051_s1 + $0x1c8] sm:$0x40] %vm3_vm0, %v594_v30   ;;  %1562 = vst.msk [vmem:[%s4051_s1 + $0x1e7] sm:$0x80] %vm3_vm0, %v594_v30   ;;  %v1168_v58 = vpop.permute.xlu1 %1167   ;;  %v1147_v59 = vpop.permute.xlu0 %1146  }
  0xe1   :  { %1546 = vst.msk [vmem:[%s4051_s1 + $0xe] sm:$0x1] %vm3_vm0, %v573_v31   ;;  %1547 = vst.msk [vmem:[%s4051_s1 + $0x2d] sm:$0x2] %vm3_vm0, %v573_v31  }
  0xe2   :  { %1548 = vst.msk [vmem:[%s4051_s1 + $0x4c] sm:$0x4] %vm3_vm0, %v573_v31   ;;  %1549 = vst.msk [vmem:[%s4051_s1 + $0x6b] sm:$0x8] %vm3_vm0, %v573_v31  }
  0xe3   :  { %1550 = vst.msk [vmem:[%s4051_s1 + $0x8a] sm:$0x10] %vm3_vm0, %v573_v31   ;;  %1551 = vst.msk [vmem:[%s4051_s1 + $0xa9] sm:$0x20] %vm3_vm0, %v573_v31  }
  0xe4   :  { %1552 = vst.msk [vmem:[%s4051_s1 + $0xc8] sm:$0x40] %vm3_vm0, %v573_v31   ;;  %1553 = vst.msk [vmem:[%s4051_s1 + $0xe7] sm:$0x80] %vm3_vm0, %v573_v31   ;;  %v1209_v60 = vpop.permute.xlu1 %1208   ;;  %v1188_v61 = vpop.permute.xlu0 %1187  }
  0xe5   :  { %1572 = vst.msk [vmem:[%s4051_s1 + $0x10f] sm:$0x1] %vm3_vm0, %v635_v32   ;;  %1573 = vst.msk [vmem:[%s4051_s1 + $0x12e] sm:$0x2] %vm3_vm0, %v635_v32  }
  0xe6   :  { %1574 = vst.msk [vmem:[%s4051_s1 + $0x14d] sm:$0x4] %vm3_vm0, %v635_v32   ;;  %1575 = vst.msk [vmem:[%s4051_s1 + $0x16c] sm:$0x8] %vm3_vm0, %v635_v32  }
  0xe7   :  { %1576 = vst.msk [vmem:[%s4051_s1 + $0x18b] sm:$0x10] %vm3_vm0, %v635_v32   ;;  %1577 = vst.msk [vmem:[%s4051_s1 + $0x1aa] sm:$0x20] %vm3_vm0, %v635_v32  }
  0xe8   :  { %1578 = vst.msk [vmem:[%s4051_s1 + $0x1c9] sm:$0x40] %vm3_vm0, %v635_v32   ;;  %1579 = vst.msk [vmem:[%s4051_s1 + $0x1e8] sm:$0x80] %vm3_vm0, %v635_v32   ;;  %v1250_v62 = vpop.permute.xlu1 %1249   ;;  %v1229_v63 = vpop.permute.xlu0 %1228  }
  0xe9   :  { %1563 = vst.msk [vmem:[%s4051_s1 + $0xf] sm:$0x1] %vm3_vm0, %v614_v33   ;;  %1564 = vst.msk [vmem:[%s4051_s1 + $0x2e] sm:$0x2] %vm3_vm0, %v614_v33  }
  0xea   :  { %1565 = vst.msk [vmem:[%s4051_s1 + $0x4d] sm:$0x4] %vm3_vm0, %v614_v33   ;;  %1566 = vst.msk [vmem:[%s4051_s1 + $0x6c] sm:$0x8] %vm3_vm0, %v614_v33  }
  0xeb   :  { %1567 = vst.msk [vmem:[%s4051_s1 + $0x8b] sm:$0x10] %vm3_vm0, %v614_v33   ;;  %1568 = vst.msk [vmem:[%s4051_s1 + $0xaa] sm:$0x20] %vm3_vm0, %v614_v33  }
  0xec   :  { %1569 = vst.msk [vmem:[%s4051_s1 + $0xc9] sm:$0x40] %vm3_vm0, %v614_v33   ;;  %1570 = vst.msk [vmem:[%s4051_s1 + $0xe8] sm:$0x80] %vm3_vm0, %v614_v33   ;;  %v1291_v0 = vpop.permute.xlu1 %1290   ;;  %v1270_v1 = vpop.permute.xlu0 %1269  }
  0xed   :  { %1589 = vst.msk [vmem:[%s4051_s1 + $0x110] sm:$0x1] %vm3_vm0, %v676_v34   ;;  %1590 = vst.msk [vmem:[%s4051_s1 + $0x12f] sm:$0x2] %vm3_vm0, %v676_v34  }
  0xee   :  { %1591 = vst.msk [vmem:[%s4051_s1 + $0x14e] sm:$0x4] %vm3_vm0, %v676_v34   ;;  %1592 = vst.msk [vmem:[%s4051_s1 + $0x16d] sm:$0x8] %vm3_vm0, %v676_v34  }
  0xef   :  { %1593 = vst.msk [vmem:[%s4051_s1 + $0x18c] sm:$0x10] %vm3_vm0, %v676_v34   ;;  %1594 = vst.msk [vmem:[%s4051_s1 + $0x1ab] sm:$0x20] %vm3_vm0, %v676_v34  }
  0xf0   :  { %1595 = vst.msk [vmem:[%s4051_s1 + $0x1ca] sm:$0x40] %vm3_vm0, %v676_v34   ;;  %1596 = vst.msk [vmem:[%s4051_s1 + $0x1e9] sm:$0x80] %vm3_vm0, %v676_v34  }
  0xf1   :  { %1580 = vst.msk [vmem:[%s4051_s1 + $0x10] sm:$0x1] %vm3_vm0, %v655_v35   ;;  %1581 = vst.msk [vmem:[%s4051_s1 + $0x2f] sm:$0x2] %vm3_vm0, %v655_v35  }
  0xf2   :  { %1582 = vst.msk [vmem:[%s4051_s1 + $0x4e] sm:$0x4] %vm3_vm0, %v655_v35   ;;  %1583 = vst.msk [vmem:[%s4051_s1 + $0x6d] sm:$0x8] %vm3_vm0, %v655_v35  }
  0xf3   :  { %1584 = vst.msk [vmem:[%s4051_s1 + $0x8c] sm:$0x10] %vm3_vm0, %v655_v35   ;;  %1585 = vst.msk [vmem:[%s4051_s1 + $0xab] sm:$0x20] %vm3_vm0, %v655_v35  }
  0xf4   :  { %1586 = vst.msk [vmem:[%s4051_s1 + $0xca] sm:$0x40] %vm3_vm0, %v655_v35   ;;  %1587 = vst.msk [vmem:[%s4051_s1 + $0xe9] sm:$0x80] %vm3_vm0, %v655_v35  }
  0xf5   :  { %1606 = vst.msk [vmem:[%s4051_s1 + $0x111] sm:$0x1] %vm3_vm0, %v717_v36   ;;  %1607 = vst.msk [vmem:[%s4051_s1 + $0x130] sm:$0x2] %vm3_vm0, %v717_v36  }
  0xf6   :  { %1608 = vst.msk [vmem:[%s4051_s1 + $0x14f] sm:$0x4] %vm3_vm0, %v717_v36   ;;  %1609 = vst.msk [vmem:[%s4051_s1 + $0x16e] sm:$0x8] %vm3_vm0, %v717_v36  }
  0xf7   :  { %1610 = vst.msk [vmem:[%s4051_s1 + $0x18d] sm:$0x10] %vm3_vm0, %v717_v36   ;;  %1611 = vst.msk [vmem:[%s4051_s1 + $0x1ac] sm:$0x20] %vm3_vm0, %v717_v36  }
  0xf8   :  { %1612 = vst.msk [vmem:[%s4051_s1 + $0x1cb] sm:$0x40] %vm3_vm0, %v717_v36   ;;  %1613 = vst.msk [vmem:[%s4051_s1 + $0x1ea] sm:$0x80] %vm3_vm0, %v717_v36  }
  0xf9   :  { %1597 = vst.msk [vmem:[%s4051_s1 + $0x11] sm:$0x1] %vm3_vm0, %v696_v37   ;;  %1598 = vst.msk [vmem:[%s4051_s1 + $0x30] sm:$0x2] %vm3_vm0, %v696_v37  }
  0xfa   :  { %1599 = vst.msk [vmem:[%s4051_s1 + $0x4f] sm:$0x4] %vm3_vm0, %v696_v37   ;;  %1600 = vst.msk [vmem:[%s4051_s1 + $0x6e] sm:$0x8] %vm3_vm0, %v696_v37  }
  0xfb   :  { %1601 = vst.msk [vmem:[%s4051_s1 + $0x8d] sm:$0x10] %vm3_vm0, %v696_v37   ;;  %1602 = vst.msk [vmem:[%s4051_s1 + $0xac] sm:$0x20] %vm3_vm0, %v696_v37  }
  0xfc   :  { %1603 = vst.msk [vmem:[%s4051_s1 + $0xcb] sm:$0x40] %vm3_vm0, %v696_v37   ;;  %1604 = vst.msk [vmem:[%s4051_s1 + $0xea] sm:$0x80] %vm3_vm0, %v696_v37  }
  0xfd   :  { %1623 = vst.msk [vmem:[%s4051_s1 + $0x112] sm:$0x1] %vm3_vm0, %v758_v38   ;;  %1624 = vst.msk [vmem:[%s4051_s1 + $0x131] sm:$0x2] %vm3_vm0, %v758_v38  }
  0xfe   :  { %1625 = vst.msk [vmem:[%s4051_s1 + $0x150] sm:$0x4] %vm3_vm0, %v758_v38   ;;  %1626 = vst.msk [vmem:[%s4051_s1 + $0x16f] sm:$0x8] %vm3_vm0, %v758_v38  }
  0xff   :  { %1627 = vst.msk [vmem:[%s4051_s1 + $0x18e] sm:$0x10] %vm3_vm0, %v758_v38   ;;  %1628 = vst.msk [vmem:[%s4051_s1 + $0x1ad] sm:$0x20] %vm3_vm0, %v758_v38  }
 0x100   :  { %1629 = vst.msk [vmem:[%s4051_s1 + $0x1cc] sm:$0x40] %vm3_vm0, %v758_v38   ;;  %1630 = vst.msk [vmem:[%s4051_s1 + $0x1eb] sm:$0x80] %vm3_vm0, %v758_v38  }
 0x101   :  { %1614 = vst.msk [vmem:[%s4051_s1 + $0x12] sm:$0x1] %vm3_vm0, %v737_v39   ;;  %1615 = vst.msk [vmem:[%s4051_s1 + $0x31] sm:$0x2] %vm3_vm0, %v737_v39  }
 0x102   :  { %1616 = vst.msk [vmem:[%s4051_s1 + $0x50] sm:$0x4] %vm3_vm0, %v737_v39   ;;  %1617 = vst.msk [vmem:[%s4051_s1 + $0x6f] sm:$0x8] %vm3_vm0, %v737_v39  }
 0x103   :  { %1618 = vst.msk [vmem:[%s4051_s1 + $0x8e] sm:$0x10] %vm3_vm0, %v737_v39   ;;  %1619 = vst.msk [vmem:[%s4051_s1 + $0xad] sm:$0x20] %vm3_vm0, %v737_v39  }
 0x104   :  { %1620 = vst.msk [vmem:[%s4051_s1 + $0xcc] sm:$0x40] %vm3_vm0, %v737_v39   ;;  %1621 = vst.msk [vmem:[%s4051_s1 + $0xeb] sm:$0x80] %vm3_vm0, %v737_v39  }
 0x105   :  { %1640 = vst.msk [vmem:[%s4051_s1 + $0x113] sm:$0x1] %vm3_vm0, %v799_v40   ;;  %1641 = vst.msk [vmem:[%s4051_s1 + $0x132] sm:$0x2] %vm3_vm0, %v799_v40  }
 0x106   :  { %1642 = vst.msk [vmem:[%s4051_s1 + $0x151] sm:$0x4] %vm3_vm0, %v799_v40   ;;  %1643 = vst.msk [vmem:[%s4051_s1 + $0x170] sm:$0x8] %vm3_vm0, %v799_v40  }
 0x107   :  { %1644 = vst.msk [vmem:[%s4051_s1 + $0x18f] sm:$0x10] %vm3_vm0, %v799_v40   ;;  %1645 = vst.msk [vmem:[%s4051_s1 + $0x1ae] sm:$0x20] %vm3_vm0, %v799_v40  }
 0x108   :  { %1646 = vst.msk [vmem:[%s4051_s1 + $0x1cd] sm:$0x40] %vm3_vm0, %v799_v40   ;;  %1647 = vst.msk [vmem:[%s4051_s1 + $0x1ec] sm:$0x80] %vm3_vm0, %v799_v40  }
 0x109   :  { %1631 = vst.msk [vmem:[%s4051_s1 + $0x13] sm:$0x1] %vm3_vm0, %v778_v41   ;;  %1632 = vst.msk [vmem:[%s4051_s1 + $0x32] sm:$0x2] %vm3_vm0, %v778_v41  }
 0x10a   :  { %1633 = vst.msk [vmem:[%s4051_s1 + $0x51] sm:$0x4] %vm3_vm0, %v778_v41   ;;  %1634 = vst.msk [vmem:[%s4051_s1 + $0x70] sm:$0x8] %vm3_vm0, %v778_v41  }
 0x10b   :  { %1635 = vst.msk [vmem:[%s4051_s1 + $0x8f] sm:$0x10] %vm3_vm0, %v778_v41   ;;  %1636 = vst.msk [vmem:[%s4051_s1 + $0xae] sm:$0x20] %vm3_vm0, %v778_v41  }
 0x10c   :  { %1637 = vst.msk [vmem:[%s4051_s1 + $0xcd] sm:$0x40] %vm3_vm0, %v778_v41   ;;  %1638 = vst.msk [vmem:[%s4051_s1 + $0xec] sm:$0x80] %vm3_vm0, %v778_v41  }
 0x10d   :  { %1657 = vst.msk [vmem:[%s4051_s1 + $0x114] sm:$0x1] %vm3_vm0, %v840_v42   ;;  %1658 = vst.msk [vmem:[%s4051_s1 + $0x133] sm:$0x2] %vm3_vm0, %v840_v42  }
 0x10e   :  { %1659 = vst.msk [vmem:[%s4051_s1 + $0x152] sm:$0x4] %vm3_vm0, %v840_v42   ;;  %1660 = vst.msk [vmem:[%s4051_s1 + $0x171] sm:$0x8] %vm3_vm0, %v840_v42  }
 0x10f   :  { %1661 = vst.msk [vmem:[%s4051_s1 + $0x190] sm:$0x10] %vm3_vm0, %v840_v42   ;;  %1662 = vst.msk [vmem:[%s4051_s1 + $0x1af] sm:$0x20] %vm3_vm0, %v840_v42  }
 0x110   :  { %1663 = vst.msk [vmem:[%s4051_s1 + $0x1ce] sm:$0x40] %vm3_vm0, %v840_v42   ;;  %1664 = vst.msk [vmem:[%s4051_s1 + $0x1ed] sm:$0x80] %vm3_vm0, %v840_v42  }
 0x111   :  { %1648 = vst.msk [vmem:[%s4051_s1 + $0x14] sm:$0x1] %vm3_vm0, %v819_v43   ;;  %1649 = vst.msk [vmem:[%s4051_s1 + $0x33] sm:$0x2] %vm3_vm0, %v819_v43  }
 0x112   :  { %1650 = vst.msk [vmem:[%s4051_s1 + $0x52] sm:$0x4] %vm3_vm0, %v819_v43   ;;  %1651 = vst.msk [vmem:[%s4051_s1 + $0x71] sm:$0x8] %vm3_vm0, %v819_v43  }
 0x113   :  { %1652 = vst.msk [vmem:[%s4051_s1 + $0x90] sm:$0x10] %vm3_vm0, %v819_v43   ;;  %1653 = vst.msk [vmem:[%s4051_s1 + $0xaf] sm:$0x20] %vm3_vm0, %v819_v43  }
 0x114   :  { %1654 = vst.msk [vmem:[%s4051_s1 + $0xce] sm:$0x40] %vm3_vm0, %v819_v43   ;;  %1655 = vst.msk [vmem:[%s4051_s1 + $0xed] sm:$0x80] %vm3_vm0, %v819_v43  }
 0x115   :  { %1674 = vst.msk [vmem:[%s4051_s1 + $0x115] sm:$0x1] %vm3_vm0, %v881_v44   ;;  %1675 = vst.msk [vmem:[%s4051_s1 + $0x134] sm:$0x2] %vm3_vm0, %v881_v44  }
 0x116   :  { %1676 = vst.msk [vmem:[%s4051_s1 + $0x153] sm:$0x4] %vm3_vm0, %v881_v44   ;;  %1677 = vst.msk [vmem:[%s4051_s1 + $0x172] sm:$0x8] %vm3_vm0, %v881_v44  }
 0x117   :  { %1678 = vst.msk [vmem:[%s4051_s1 + $0x191] sm:$0x10] %vm3_vm0, %v881_v44   ;;  %1679 = vst.msk [vmem:[%s4051_s1 + $0x1b0] sm:$0x20] %vm3_vm0, %v881_v44  }
 0x118   :  { %1680 = vst.msk [vmem:[%s4051_s1 + $0x1cf] sm:$0x40] %vm3_vm0, %v881_v44   ;;  %1681 = vst.msk [vmem:[%s4051_s1 + $0x1ee] sm:$0x80] %vm3_vm0, %v881_v44  }
 0x119   :  { %1665 = vst.msk [vmem:[%s4051_s1 + $0x15] sm:$0x1] %vm3_vm0, %v860_v45   ;;  %1666 = vst.msk [vmem:[%s4051_s1 + $0x34] sm:$0x2] %vm3_vm0, %v860_v45  }
 0x11a   :  { %1667 = vst.msk [vmem:[%s4051_s1 + $0x53] sm:$0x4] %vm3_vm0, %v860_v45   ;;  %1668 = vst.msk [vmem:[%s4051_s1 + $0x72] sm:$0x8] %vm3_vm0, %v860_v45  }
 0x11b   :  { %1669 = vst.msk [vmem:[%s4051_s1 + $0x91] sm:$0x10] %vm3_vm0, %v860_v45   ;;  %1670 = vst.msk [vmem:[%s4051_s1 + $0xb0] sm:$0x20] %vm3_vm0, %v860_v45  }
 0x11c   :  { %1671 = vst.msk [vmem:[%s4051_s1 + $0xcf] sm:$0x40] %vm3_vm0, %v860_v45   ;;  %1672 = vst.msk [vmem:[%s4051_s1 + $0xee] sm:$0x80] %vm3_vm0, %v860_v45  }
 0x11d   :  { %1691 = vst.msk [vmem:[%s4051_s1 + $0x116] sm:$0x1] %vm3_vm0, %v922_v46   ;;  %1692 = vst.msk [vmem:[%s4051_s1 + $0x135] sm:$0x2] %vm3_vm0, %v922_v46  }
 0x11e   :  { %1693 = vst.msk [vmem:[%s4051_s1 + $0x154] sm:$0x4] %vm3_vm0, %v922_v46   ;;  %1694 = vst.msk [vmem:[%s4051_s1 + $0x173] sm:$0x8] %vm3_vm0, %v922_v46  }
 0x11f   :  { %1695 = vst.msk [vmem:[%s4051_s1 + $0x192] sm:$0x10] %vm3_vm0, %v922_v46   ;;  %1696 = vst.msk [vmem:[%s4051_s1 + $0x1b1] sm:$0x20] %vm3_vm0, %v922_v46  }
 0x120   :  { %1697 = vst.msk [vmem:[%s4051_s1 + $0x1d0] sm:$0x40] %vm3_vm0, %v922_v46   ;;  %1698 = vst.msk [vmem:[%s4051_s1 + $0x1ef] sm:$0x80] %vm3_vm0, %v922_v46  }
 0x121   :  { %1682 = vst.msk [vmem:[%s4051_s1 + $0x16] sm:$0x1] %vm3_vm0, %v901_v47   ;;  %1683 = vst.msk [vmem:[%s4051_s1 + $0x35] sm:$0x2] %vm3_vm0, %v901_v47  }
 0x122   :  { %1684 = vst.msk [vmem:[%s4051_s1 + $0x54] sm:$0x4] %vm3_vm0, %v901_v47   ;;  %1685 = vst.msk [vmem:[%s4051_s1 + $0x73] sm:$0x8] %vm3_vm0, %v901_v47  }
 0x123   :  { %1686 = vst.msk [vmem:[%s4051_s1 + $0x92] sm:$0x10] %vm3_vm0, %v901_v47   ;;  %1687 = vst.msk [vmem:[%s4051_s1 + $0xb1] sm:$0x20] %vm3_vm0, %v901_v47  }
 0x124   :  { %1688 = vst.msk [vmem:[%s4051_s1 + $0xd0] sm:$0x40] %vm3_vm0, %v901_v47   ;;  %1689 = vst.msk [vmem:[%s4051_s1 + $0xef] sm:$0x80] %vm3_vm0, %v901_v47  }
 0x125   :  { %1708 = vst.msk [vmem:[%s4051_s1 + $0x117] sm:$0x1] %vm3_vm0, %v963_v48   ;;  %1709 = vst.msk [vmem:[%s4051_s1 + $0x136] sm:$0x2] %vm3_vm0, %v963_v48  }
 0x126   :  { %1710 = vst.msk [vmem:[%s4051_s1 + $0x155] sm:$0x4] %vm3_vm0, %v963_v48   ;;  %1711 = vst.msk [vmem:[%s4051_s1 + $0x174] sm:$0x8] %vm3_vm0, %v963_v48  }
 0x127   :  { %1712 = vst.msk [vmem:[%s4051_s1 + $0x193] sm:$0x10] %vm3_vm0, %v963_v48   ;;  %1713 = vst.msk [vmem:[%s4051_s1 + $0x1b2] sm:$0x20] %vm3_vm0, %v963_v48  }
 0x128   :  { %1714 = vst.msk [vmem:[%s4051_s1 + $0x1d1] sm:$0x40] %vm3_vm0, %v963_v48   ;;  %1715 = vst.msk [vmem:[%s4051_s1 + $0x1f0] sm:$0x80] %vm3_vm0, %v963_v48  }
 0x129   :  { %1699 = vst.msk [vmem:[%s4051_s1 + $0x17] sm:$0x1] %vm3_vm0, %v942_v49   ;;  %1700 = vst.msk [vmem:[%s4051_s1 + $0x36] sm:$0x2] %vm3_vm0, %v942_v49  }
 0x12a   :  { %1701 = vst.msk [vmem:[%s4051_s1 + $0x55] sm:$0x4] %vm3_vm0, %v942_v49   ;;  %1702 = vst.msk [vmem:[%s4051_s1 + $0x74] sm:$0x8] %vm3_vm0, %v942_v49  }
 0x12b   :  { %1703 = vst.msk [vmem:[%s4051_s1 + $0x93] sm:$0x10] %vm3_vm0, %v942_v49   ;;  %1704 = vst.msk [vmem:[%s4051_s1 + $0xb2] sm:$0x20] %vm3_vm0, %v942_v49  }
 0x12c   :  { %1705 = vst.msk [vmem:[%s4051_s1 + $0xd1] sm:$0x40] %vm3_vm0, %v942_v49   ;;  %1706 = vst.msk [vmem:[%s4051_s1 + $0xf0] sm:$0x80] %vm3_vm0, %v942_v49  }
 0x12d   :  { %1725 = vst.msk [vmem:[%s4051_s1 + $0x118] sm:$0x1] %vm3_vm0, %v1004_v50   ;;  %1726 = vst.msk [vmem:[%s4051_s1 + $0x137] sm:$0x2] %vm3_vm0, %v1004_v50  }
 0x12e   :  { %1727 = vst.msk [vmem:[%s4051_s1 + $0x156] sm:$0x4] %vm3_vm0, %v1004_v50   ;;  %1728 = vst.msk [vmem:[%s4051_s1 + $0x175] sm:$0x8] %vm3_vm0, %v1004_v50  }
 0x12f   :  { %1729 = vst.msk [vmem:[%s4051_s1 + $0x194] sm:$0x10] %vm3_vm0, %v1004_v50   ;;  %1730 = vst.msk [vmem:[%s4051_s1 + $0x1b3] sm:$0x20] %vm3_vm0, %v1004_v50  }
 0x130   :  { %1731 = vst.msk [vmem:[%s4051_s1 + $0x1d2] sm:$0x40] %vm3_vm0, %v1004_v50   ;;  %1732 = vst.msk [vmem:[%s4051_s1 + $0x1f1] sm:$0x80] %vm3_vm0, %v1004_v50  }
 0x131   :  { %1716 = vst.msk [vmem:[%s4051_s1 + $0x18] sm:$0x1] %vm3_vm0, %v983_v51   ;;  %1717 = vst.msk [vmem:[%s4051_s1 + $0x37] sm:$0x2] %vm3_vm0, %v983_v51  }
 0x132   :  { %1718 = vst.msk [vmem:[%s4051_s1 + $0x56] sm:$0x4] %vm3_vm0, %v983_v51   ;;  %1719 = vst.msk [vmem:[%s4051_s1 + $0x75] sm:$0x8] %vm3_vm0, %v983_v51  }
 0x133   :  { %1720 = vst.msk [vmem:[%s4051_s1 + $0x94] sm:$0x10] %vm3_vm0, %v983_v51   ;;  %1721 = vst.msk [vmem:[%s4051_s1 + $0xb3] sm:$0x20] %vm3_vm0, %v983_v51  }
 0x134   :  { %1722 = vst.msk [vmem:[%s4051_s1 + $0xd2] sm:$0x40] %vm3_vm0, %v983_v51   ;;  %1723 = vst.msk [vmem:[%s4051_s1 + $0xf1] sm:$0x80] %vm3_vm0, %v983_v51  }
 0x135   :  { %1742 = vst.msk [vmem:[%s4051_s1 + $0x119] sm:$0x1] %vm3_vm0, %v1045_v52   ;;  %1743 = vst.msk [vmem:[%s4051_s1 + $0x138] sm:$0x2] %vm3_vm0, %v1045_v52  }
 0x136   :  { %1744 = vst.msk [vmem:[%s4051_s1 + $0x157] sm:$0x4] %vm3_vm0, %v1045_v52   ;;  %1745 = vst.msk [vmem:[%s4051_s1 + $0x176] sm:$0x8] %vm3_vm0, %v1045_v52  }
 0x137   :  { %1746 = vst.msk [vmem:[%s4051_s1 + $0x195] sm:$0x10] %vm3_vm0, %v1045_v52   ;;  %1747 = vst.msk [vmem:[%s4051_s1 + $0x1b4] sm:$0x20] %vm3_vm0, %v1045_v52  }
 0x138   :  { %1748 = vst.msk [vmem:[%s4051_s1 + $0x1d3] sm:$0x40] %vm3_vm0, %v1045_v52   ;;  %1749 = vst.msk [vmem:[%s4051_s1 + $0x1f2] sm:$0x80] %vm3_vm0, %v1045_v52  }
 0x139   :  { %1733 = vst.msk [vmem:[%s4051_s1 + $0x19] sm:$0x1] %vm3_vm0, %v1024_v53   ;;  %1734 = vst.msk [vmem:[%s4051_s1 + $0x38] sm:$0x2] %vm3_vm0, %v1024_v53  }
 0x13a   :  { %1735 = vst.msk [vmem:[%s4051_s1 + $0x57] sm:$0x4] %vm3_vm0, %v1024_v53   ;;  %1736 = vst.msk [vmem:[%s4051_s1 + $0x76] sm:$0x8] %vm3_vm0, %v1024_v53  }
 0x13b   :  { %1737 = vst.msk [vmem:[%s4051_s1 + $0x95] sm:$0x10] %vm3_vm0, %v1024_v53   ;;  %1738 = vst.msk [vmem:[%s4051_s1 + $0xb4] sm:$0x20] %vm3_vm0, %v1024_v53  }
 0x13c   :  { %1739 = vst.msk [vmem:[%s4051_s1 + $0xd3] sm:$0x40] %vm3_vm0, %v1024_v53   ;;  %1740 = vst.msk [vmem:[%s4051_s1 + $0xf2] sm:$0x80] %vm3_vm0, %v1024_v53  }
 0x13d   :  { %1759 = vst.msk [vmem:[%s4051_s1 + $0x11a] sm:$0x1] %vm3_vm0, %v1086_v54   ;;  %1760 = vst.msk [vmem:[%s4051_s1 + $0x139] sm:$0x2] %vm3_vm0, %v1086_v54  }
 0x13e   :  { %1761 = vst.msk [vmem:[%s4051_s1 + $0x158] sm:$0x4] %vm3_vm0, %v1086_v54   ;;  %1762 = vst.msk [vmem:[%s4051_s1 + $0x177] sm:$0x8] %vm3_vm0, %v1086_v54  }
 0x13f   :  { %1763 = vst.msk [vmem:[%s4051_s1 + $0x196] sm:$0x10] %vm3_vm0, %v1086_v54   ;;  %1764 = vst.msk [vmem:[%s4051_s1 + $0x1b5] sm:$0x20] %vm3_vm0, %v1086_v54  }
 0x140   :  { %1765 = vst.msk [vmem:[%s4051_s1 + $0x1d4] sm:$0x40] %vm3_vm0, %v1086_v54   ;;  %1766 = vst.msk [vmem:[%s4051_s1 + $0x1f3] sm:$0x80] %vm3_vm0, %v1086_v54  }
 0x141   :  { %1750 = vst.msk [vmem:[%s4051_s1 + $0x1a] sm:$0x1] %vm3_vm0, %v1065_v55   ;;  %1751 = vst.msk [vmem:[%s4051_s1 + $0x39] sm:$0x2] %vm3_vm0, %v1065_v55  }
 0x142   :  { %1752 = vst.msk [vmem:[%s4051_s1 + $0x58] sm:$0x4] %vm3_vm0, %v1065_v55   ;;  %1753 = vst.msk [vmem:[%s4051_s1 + $0x77] sm:$0x8] %vm3_vm0, %v1065_v55  }
 0x143   :  { %1754 = vst.msk [vmem:[%s4051_s1 + $0x96] sm:$0x10] %vm3_vm0, %v1065_v55   ;;  %1755 = vst.msk [vmem:[%s4051_s1 + $0xb5] sm:$0x20] %vm3_vm0, %v1065_v55  }
 0x144   :  { %1756 = vst.msk [vmem:[%s4051_s1 + $0xd4] sm:$0x40] %vm3_vm0, %v1065_v55   ;;  %1757 = vst.msk [vmem:[%s4051_s1 + $0xf3] sm:$0x80] %vm3_vm0, %v1065_v55  }
 0x145   :  { %1776 = vst.msk [vmem:[%s4051_s1 + $0x11b] sm:$0x1] %vm3_vm0, %v1127_v56   ;;  %1777 = vst.msk [vmem:[%s4051_s1 + $0x13a] sm:$0x2] %vm3_vm0, %v1127_v56  }
 0x146   :  { %1778 = vst.msk [vmem:[%s4051_s1 + $0x159] sm:$0x4] %vm3_vm0, %v1127_v56   ;;  %1779 = vst.msk [vmem:[%s4051_s1 + $0x178] sm:$0x8] %vm3_vm0, %v1127_v56  }
 0x147   :  { %1780 = vst.msk [vmem:[%s4051_s1 + $0x197] sm:$0x10] %vm3_vm0, %v1127_v56   ;;  %1781 = vst.msk [vmem:[%s4051_s1 + $0x1b6] sm:$0x20] %vm3_vm0, %v1127_v56  }
 0x148   :  { %1782 = vst.msk [vmem:[%s4051_s1 + $0x1d5] sm:$0x40] %vm3_vm0, %v1127_v56   ;;  %1783 = vst.msk [vmem:[%s4051_s1 + $0x1f4] sm:$0x80] %vm3_vm0, %v1127_v56  }
 0x149   :  { %1767 = vst.msk [vmem:[%s4051_s1 + $0x1b] sm:$0x1] %vm3_vm0, %v1106_v57   ;;  %1768 = vst.msk [vmem:[%s4051_s1 + $0x3a] sm:$0x2] %vm3_vm0, %v1106_v57  }
 0x14a   :  { %1769 = vst.msk [vmem:[%s4051_s1 + $0x59] sm:$0x4] %vm3_vm0, %v1106_v57   ;;  %1770 = vst.msk [vmem:[%s4051_s1 + $0x78] sm:$0x8] %vm3_vm0, %v1106_v57  }
 0x14b   :  { %1771 = vst.msk [vmem:[%s4051_s1 + $0x97] sm:$0x10] %vm3_vm0, %v1106_v57   ;;  %1772 = vst.msk [vmem:[%s4051_s1 + $0xb6] sm:$0x20] %vm3_vm0, %v1106_v57  }
 0x14c   :  { %1773 = vst.msk [vmem:[%s4051_s1 + $0xd5] sm:$0x40] %vm3_vm0, %v1106_v57   ;;  %1774 = vst.msk [vmem:[%s4051_s1 + $0xf4] sm:$0x80] %vm3_vm0, %v1106_v57  }
 0x14d   :  { %1793 = vst.msk [vmem:[%s4051_s1 + $0x11c] sm:$0x1] %vm3_vm0, %v1168_v58   ;;  %1794 = vst.msk [vmem:[%s4051_s1 + $0x13b] sm:$0x2] %vm3_vm0, %v1168_v58  }
 0x14e   :  { %1795 = vst.msk [vmem:[%s4051_s1 + $0x15a] sm:$0x4] %vm3_vm0, %v1168_v58   ;;  %1796 = vst.msk [vmem:[%s4051_s1 + $0x179] sm:$0x8] %vm3_vm0, %v1168_v58  }
 0x14f   :  { %1797 = vst.msk [vmem:[%s4051_s1 + $0x198] sm:$0x10] %vm3_vm0, %v1168_v58   ;;  %1798 = vst.msk [vmem:[%s4051_s1 + $0x1b7] sm:$0x20] %vm3_vm0, %v1168_v58  }
 0x150   :  { %1799 = vst.msk [vmem:[%s4051_s1 + $0x1d6] sm:$0x40] %vm3_vm0, %v1168_v58   ;;  %1800 = vst.msk [vmem:[%s4051_s1 + $0x1f5] sm:$0x80] %vm3_vm0, %v1168_v58  }
 0x151   :  { %1784 = vst.msk [vmem:[%s4051_s1 + $0x1c] sm:$0x1] %vm3_vm0, %v1147_v59   ;;  %1785 = vst.msk [vmem:[%s4051_s1 + $0x3b] sm:$0x2] %vm3_vm0, %v1147_v59  }
 0x152   :  { %1786 = vst.msk [vmem:[%s4051_s1 + $0x5a] sm:$0x4] %vm3_vm0, %v1147_v59   ;;  %1787 = vst.msk [vmem:[%s4051_s1 + $0x79] sm:$0x8] %vm3_vm0, %v1147_v59  }
 0x153   :  { %1788 = vst.msk [vmem:[%s4051_s1 + $0x98] sm:$0x10] %vm3_vm0, %v1147_v59   ;;  %1789 = vst.msk [vmem:[%s4051_s1 + $0xb7] sm:$0x20] %vm3_vm0, %v1147_v59  }
 0x154   :  { %1790 = vst.msk [vmem:[%s4051_s1 + $0xd6] sm:$0x40] %vm3_vm0, %v1147_v59   ;;  %1791 = vst.msk [vmem:[%s4051_s1 + $0xf5] sm:$0x80] %vm3_vm0, %v1147_v59  }
 0x155   :  { %1810 = vst.msk [vmem:[%s4051_s1 + $0x11d] sm:$0x1] %vm3_vm0, %v1209_v60   ;;  %1811 = vst.msk [vmem:[%s4051_s1 + $0x13c] sm:$0x2] %vm3_vm0, %v1209_v60  }
 0x156   :  { %1812 = vst.msk [vmem:[%s4051_s1 + $0x15b] sm:$0x4] %vm3_vm0, %v1209_v60   ;;  %1813 = vst.msk [vmem:[%s4051_s1 + $0x17a] sm:$0x8] %vm3_vm0, %v1209_v60  }
 0x157   :  { %1814 = vst.msk [vmem:[%s4051_s1 + $0x199] sm:$0x10] %vm3_vm0, %v1209_v60   ;;  %1815 = vst.msk [vmem:[%s4051_s1 + $0x1b8] sm:$0x20] %vm3_vm0, %v1209_v60  }
 0x158   :  { %1816 = vst.msk [vmem:[%s4051_s1 + $0x1d7] sm:$0x40] %vm3_vm0, %v1209_v60   ;;  %1817 = vst.msk [vmem:[%s4051_s1 + $0x1f6] sm:$0x80] %vm3_vm0, %v1209_v60  }
 0x159   :  { %1801 = vst.msk [vmem:[%s4051_s1 + $0x1d] sm:$0x1] %vm3_vm0, %v1188_v61   ;;  %1802 = vst.msk [vmem:[%s4051_s1 + $0x3c] sm:$0x2] %vm3_vm0, %v1188_v61  }
 0x15a   :  { %1803 = vst.msk [vmem:[%s4051_s1 + $0x5b] sm:$0x4] %vm3_vm0, %v1188_v61   ;;  %1804 = vst.msk [vmem:[%s4051_s1 + $0x7a] sm:$0x8] %vm3_vm0, %v1188_v61  }
 0x15b   :  { %1805 = vst.msk [vmem:[%s4051_s1 + $0x99] sm:$0x10] %vm3_vm0, %v1188_v61   ;;  %1806 = vst.msk [vmem:[%s4051_s1 + $0xb8] sm:$0x20] %vm3_vm0, %v1188_v61  }
 0x15c   :  { %1807 = vst.msk [vmem:[%s4051_s1 + $0xd7] sm:$0x40] %vm3_vm0, %v1188_v61   ;;  %1808 = vst.msk [vmem:[%s4051_s1 + $0xf6] sm:$0x80] %vm3_vm0, %v1188_v61  }
 0x15d   :  { %1827 = vst.msk [vmem:[%s4051_s1 + $0x11e] sm:$0x1] %vm3_vm0, %v1250_v62   ;;  %1828 = vst.msk [vmem:[%s4051_s1 + $0x13d] sm:$0x2] %vm3_vm0, %v1250_v62  }
 0x15e   :  { %1829 = vst.msk [vmem:[%s4051_s1 + $0x15c] sm:$0x4] %vm3_vm0, %v1250_v62   ;;  %1830 = vst.msk [vmem:[%s4051_s1 + $0x17b] sm:$0x8] %vm3_vm0, %v1250_v62  }
 0x15f   :  { %1831 = vst.msk [vmem:[%s4051_s1 + $0x19a] sm:$0x10] %vm3_vm0, %v1250_v62   ;;  %1832 = vst.msk [vmem:[%s4051_s1 + $0x1b9] sm:$0x20] %vm3_vm0, %v1250_v62  }
 0x160   :  { %1833 = vst.msk [vmem:[%s4051_s1 + $0x1d8] sm:$0x40] %vm3_vm0, %v1250_v62   ;;  %1834 = vst.msk [vmem:[%s4051_s1 + $0x1f7] sm:$0x80] %vm3_vm0, %v1250_v62  }
 0x161   :  { %1818 = vst.msk [vmem:[%s4051_s1 + $0x1e] sm:$0x1] %vm3_vm0, %v1229_v63   ;;  %1819 = vst.msk [vmem:[%s4051_s1 + $0x3d] sm:$0x2] %vm3_vm0, %v1229_v63  }
 0x162   :  { %1820 = vst.msk [vmem:[%s4051_s1 + $0x5c] sm:$0x4] %vm3_vm0, %v1229_v63   ;;  %1821 = vst.msk [vmem:[%s4051_s1 + $0x7b] sm:$0x8] %vm3_vm0, %v1229_v63  }
 0x163   :  { %1822 = vst.msk [vmem:[%s4051_s1 + $0x9a] sm:$0x10] %vm3_vm0, %v1229_v63   ;;  %1823 = vst.msk [vmem:[%s4051_s1 + $0xb9] sm:$0x20] %vm3_vm0, %v1229_v63  }
 0x164   :  { %1824 = vst.msk [vmem:[%s4051_s1 + $0xd8] sm:$0x40] %vm3_vm0, %v1229_v63   ;;  %1825 = vst.msk [vmem:[%s4051_s1 + $0xf7] sm:$0x80] %vm3_vm0, %v1229_v63  }
 0x165   :  { %1844 = vst.msk [vmem:[%s4051_s1 + $0x11f] sm:$0x1] %vm3_vm0, %v1291_v0   ;;  %1845 = vst.msk [vmem:[%s4051_s1 + $0x13e] sm:$0x2] %vm3_vm0, %v1291_v0  }
 0x166   :  { %1846 = vst.msk [vmem:[%s4051_s1 + $0x15d] sm:$0x4] %vm3_vm0, %v1291_v0   ;;  %1847 = vst.msk [vmem:[%s4051_s1 + $0x17c] sm:$0x8] %vm3_vm0, %v1291_v0  }
 0x167   :  { %1848 = vst.msk [vmem:[%s4051_s1 + $0x19b] sm:$0x10] %vm3_vm0, %v1291_v0   ;;  %1849 = vst.msk [vmem:[%s4051_s1 + $0x1ba] sm:$0x20] %vm3_vm0, %v1291_v0  }
 0x168   :  { %1850 = vst.msk [vmem:[%s4051_s1 + $0x1d9] sm:$0x40] %vm3_vm0, %v1291_v0   ;;  %1851 = vst.msk [vmem:[%s4051_s1 + $0x1f8] sm:$0x80] %vm3_vm0, %v1291_v0  }
 0x169   :  { %1835 = vst.msk [vmem:[%s4051_s1 + $0x1f] sm:$0x1] %vm3_vm0, %v1270_v1   ;;  %1836 = vst.msk [vmem:[%s4051_s1 + $0x3e] sm:$0x2] %vm3_vm0, %v1270_v1  }
 0x16a   :  { %1837 = vst.msk [vmem:[%s4051_s1 + $0x5d] sm:$0x4] %vm3_vm0, %v1270_v1   ;;  %1838 = vst.msk [vmem:[%s4051_s1 + $0x7c] sm:$0x8] %vm3_vm0, %v1270_v1  }
 0x16b   :  { %1839 = vst.msk [vmem:[%s4051_s1 + $0x9b] sm:$0x10] %vm3_vm0, %v1270_v1   ;;  %1840 = vst.msk [vmem:[%s4051_s1 + $0xba] sm:$0x20] %vm3_vm0, %v1270_v1  }
 0x16c   :  { %1841 = vst.msk [vmem:[%s4051_s1 + $0xd9] sm:$0x40] %vm3_vm0, %v1270_v1   ;;  %1842 = vst.msk [vmem:[%s4051_s1 + $0xf8] sm:$0x80] %vm3_vm0, %v1270_v1  }

// kernel: discriminator_forward.7
= control target key start
LH: loop header
LB: loop body
LE: loop exit
PB: predicated region body
PF: predicated region fallthrough
CT: control target
= control target key end

     0   :  { %v1920_v0 = vmov 0   ;;  %s2698_s2 = inlined_call_operand.vmem [shape: f32[512,1], index: 2, kind: input, shape index: {}]   ;;  %s2699_s3 = inlined_call_operand.vmem [shape: f32[512,1], index: 3, kind: input, shape index: {}]   ;;  %s2700_s1 = inlined_call_operand.vmem [shape: bf16[512,32], index: 1, kind: input, shape index: {}]   ;;  %s2701_s0 = inlined_call_operand.vmem [shape: bf16[64,512], index: 0, kind: input, shape index: {}]   ;;  %s2702_s4 = inlined_call_operand.vmem [shape: bf16[64,32], index: 4, kind: output, shape index: {0}]   ;;  %s2703_s5 = inlined_call_operand.vmem [shape: f32[1,64,1], index: 5, kind: output, shape index: {1}]   ;;  %s2704_s6 = inlined_call_operand.vmem [shape: f32[1,64,1], index: 6, kind: output, shape index: {2}]  }
   0x1   :  { %1895 = vset.pattern.permute.xlu1 %v1920_v0  ;;  %1894 = vset.pattern.permute.xlu0 %v1920_v0  ;;  %v151_v1 = vld [vmem:[%s2698_s2 + $0x10] sm:$0xff]  ;;  %v149_v2 = vld [vmem:[%s2698_s2] sm:$0xff]  ;;  %v152_v3 = vld [vmem:[%s2698_s2 + $0x18] sm:$0xff] }
   0x2   :  { %225 = vperm.xlu1 %1895, %v151_v1   ;;  %215 = vperm.xlu0 %1894, %v149_v2   ;;  %v150_v4 = vld [vmem:[%s2698_s2 + $0x8] sm:$0xff]  ;;  %v153_v6 = vld [vmem:[%s2698_s2 + $0x20] sm:$0xff]  ;;  %v156_v7 = vld [vmem:[%s2698_s2 + $0x38] sm:$0xff] }
   0x3   :  { %v154_v5 = vld [vmem:[%s2698_s2 + $0x28] sm:$0xff]  ;;  %v155_v8 = vld [vmem:[%s2698_s2 + $0x30] sm:$0xff]  ;;  %v157_v10 = vld [vmem:[%s2698_s2 + $0x40] sm:$0xff] }
   0x4   :  { %v158_v9 = vld [vmem:[%s2698_s2 + $0x48] sm:$0xff]  ;;  %v160_v11 = vld [vmem:[%s2698_s2 + $0x58] sm:$0xff]  ;;  %v159_v12 = vld [vmem:[%s2698_s2 + $0x50] sm:$0xff] }
   0x5   :  { %v162_v13 = vld [vmem:[%s2698_s2 + $0x68] sm:$0xff]  ;;  %v161_v14 = vld [vmem:[%s2698_s2 + $0x60] sm:$0xff]  ;;  %v164_v15 = vld [vmem:[%s2698_s2 + $0x78] sm:$0xff] }
   0x6   :  { %230 = vperm.xlu1 %1895, %v152_v3   ;;  %220 = vperm.xlu0 %1894, %v150_v4   ;;  %v163_v16 = vld [vmem:[%s2698_s2 + $0x70] sm:$0xff]  ;;  %v166_v17 = vld [vmem:[%s2698_s2 + $0x88] sm:$0xff]  ;;  %v165_v18 = vld [vmem:[%s2698_s2 + $0x80] sm:$0xff] }
   0x7   :  { %v168_v19 = vld [vmem:[%s2698_s2 + $0x98] sm:$0xff]  ;;  %v167_v20 = vld [vmem:[%s2698_s2 + $0x90] sm:$0xff]  ;;  %v170_v21 = vld [vmem:[%s2698_s2 + $0xa8] sm:$0xff] }
   0x8   :  { %v169_v22 = vld [vmem:[%s2698_s2 + $0xa0] sm:$0xff]  ;;  %v172_v23 = vld [vmem:[%s2698_s2 + $0xb8] sm:$0xff]  ;;  %v171_v24 = vld [vmem:[%s2698_s2 + $0xb0] sm:$0xff] }
   0x9   :  { %v174_v25 = vld [vmem:[%s2698_s2 + $0xc8] sm:$0xff]  ;;  %v173_v26 = vld [vmem:[%s2698_s2 + $0xc0] sm:$0xff]  ;;  %v176_v27 = vld [vmem:[%s2698_s2 + $0xd8] sm:$0xff] }
   0xa   :  { %240 = vperm.xlu1 %1895, %v154_v5   ;;  %235 = vperm.xlu0 %1894, %v153_v6   ;;  %v175_v28 = vld [vmem:[%s2698_s2 + $0xd0] sm:$0xff]  ;;  %v178_v29 = vld [vmem:[%s2698_s2 + $0xe8] sm:$0xff]  ;;  %v177_v30 = vld [vmem:[%s2698_s2 + $0xe0] sm:$0xff] }
   0xb   :  { %v180_v31 = vld [vmem:[%s2698_s2 + $0xf8] sm:$0xff]  ;;  %v179_v32 = vld [vmem:[%s2698_s2 + $0xf0] sm:$0xff]  ;;  %v182_v33 = vld [vmem:[%s2698_s2 + $0x108] sm:$0xff] }
   0xc   :  { %v181_v34 = vld [vmem:[%s2698_s2 + $0x100] sm:$0xff]  ;;  %v198_v35 = vld [vmem:[%s2698_s2 + $0x188] sm:$0xff]  ;;  %v200_v45 = vld [vmem:[%s2698_s2 + $0x198] sm:$0xff] }
   0xd   :  { %v197_v36 = vld [vmem:[%s2698_s2 + $0x180] sm:$0xff]  ;;  %v614_v37 = vld [vmem:[%s2699_s3 + $0x88] sm:$0xff]  ;;  %v199_v46 = vld [vmem:[%s2698_s2 + $0x190] sm:$0xff] }
   0xe   :  { %250 = vperm.xlu1 %1895, %v156_v7   ;;  %245 = vperm.xlu0 %1894, %v155_v8   ;;  %v613_v38 = vld [vmem:[%s2699_s3 + $0x80] sm:$0xff]  ;;  %v646_v39 = vld [vmem:[%s2699_s3 + $0x188] sm:$0xff]  ;;  %v184_v47 = vld [vmem:[%s2698_s2 + $0x118] sm:$0xff] }
   0xf   :  { %v645_v40 = vld [vmem:[%s2699_s3 + $0x180] sm:$0xff]  ;;  %v598_v41 = vld [vmem:[%s2699_s3 + $0x8] sm:$0xff]  ;;  %v183_v48 = vld [vmem:[%s2698_s2 + $0x110] sm:$0xff] }
  0x10   :  { %v597_v42 = vld [vmem:[%s2699_s3] sm:$0xff]  ;;  %v630_v43 = vld [vmem:[%s2699_s3 + $0x108] sm:$0xff]  ;;  %v616_v49 = vld [vmem:[%s2699_s3 + $0x98] sm:$0xff] }
  0x11   :  { %v629_v44 = vld [vmem:[%s2699_s3 + $0x100] sm:$0xff]  ;;  %v615_v50 = vld [vmem:[%s2699_s3 + $0x90] sm:$0xff]  ;;  %v648_v51 = vld [vmem:[%s2699_s3 + $0x198] sm:$0xff] }
  0x12   :  { %260 = vperm.xlu1 %1895, %v158_v9   ;;  %255 = vperm.xlu0 %1894, %v157_v10   ;;  %v647_v52 = vld [vmem:[%s2699_s3 + $0x190] sm:$0xff]  ;;  %v600_v53 = vld [vmem:[%s2699_s3 + $0x18] sm:$0xff]  ;;  %v202_v57 = vld [vmem:[%s2698_s2 + $0x1a8] sm:$0xff] }
  0x13   :  { %v599_v54 = vld [vmem:[%s2699_s3 + $0x10] sm:$0xff]  ;;  %v632_v55 = vld [vmem:[%s2699_s3 + $0x118] sm:$0xff]  ;;  %v201_v58 = vld [vmem:[%s2698_s2 + $0x1a0] sm:$0xff] }
  0x14   :  { %v631_v56 = vld [vmem:[%s2699_s3 + $0x110] sm:$0xff]  ;;  %v186_v59 = vld [vmem:[%s2698_s2 + $0x128] sm:$0xff]  ;;  %v185_v60 = vld [vmem:[%s2698_s2 + $0x120] sm:$0xff] }
  0x15   :  { %v618_v61 = vld [vmem:[%s2699_s3 + $0xa8] sm:$0xff]  ;;  %v617_v62 = vld [vmem:[%s2699_s3 + $0xa0] sm:$0xff]  ;;  %v204_v9 = vld [vmem:[%s2698_s2 + $0x1b8] sm:$0xff] }
  0x16   :  { %270 = vperm.xlu1 %1895, %v160_v11   ;;  %265 = vperm.xlu0 %1894, %v159_v12   ;;  %v650_v63 = vld [vmem:[%s2699_s3 + $0x1a8] sm:$0xff]  ;;  %v649_v0 = vld [vmem:[%s2699_s3 + $0x1a0] sm:$0xff]  ;;  %v203_v10 = vld [vmem:[%s2698_s2 + $0x1b0] sm:$0xff] }
  0x17   :  { %v602_v1 = vld [vmem:[%s2699_s3 + $0x28] sm:$0xff]  ;;  %v601_v2 = vld [vmem:[%s2699_s3 + $0x20] sm:$0xff] }
  0x18   :  { %v634_v5 = vld [vmem:[%s2699_s3 + $0x128] sm:$0xff]  ;;  %v633_v6 = vld [vmem:[%s2699_s3 + $0x120] sm:$0xff] }
  0x1a   :  { %280 = vperm.xlu1 %1895, %v162_v13   ;;  %275 = vperm.xlu0 %1894, %v161_v14   ;;  %v188_v13 = vld [vmem:[%s2698_s2 + $0x138] sm:$0xff]  ;;  %v187_v14 = vld [vmem:[%s2698_s2 + $0x130] sm:$0xff] }
  0x1e   :  { %290 = vperm.xlu1 %1895, %v164_v15   ;;  %285 = vperm.xlu0 %1894, %v163_v16  }
  0x22   :  { %300 = vperm.xlu1 %1895, %v166_v17   ;;  %295 = vperm.xlu0 %1894, %v165_v18   ;;  %v620_v17 = vld [vmem:[%s2699_s3 + $0xb8] sm:$0xff]  ;;  %v619_v18 = vld [vmem:[%s2699_s3 + $0xb0] sm:$0xff] }
  0x26   :  { %310 = vperm.xlu1 %1895, %v168_v19   ;;  %305 = vperm.xlu0 %1894, %v167_v20  }
  0x2a   :  { %320 = vperm.xlu1 %1895, %v170_v21   ;;  %315 = vperm.xlu0 %1894, %v169_v22   ;;  %v652_v21 = vld [vmem:[%s2699_s3 + $0x1b8] sm:$0xff]  ;;  %v651_v22 = vld [vmem:[%s2699_s3 + $0x1b0] sm:$0xff] }
  0x2e   :  { %330 = vperm.xlu1 %1895, %v172_v23   ;;  %325 = vperm.xlu0 %1894, %v171_v24  }
  0x32   :  { %340 = vperm.xlu1 %1895, %v174_v25   ;;  %335 = vperm.xlu0 %1894, %v173_v26   ;;  %v604_v25 = vld [vmem:[%s2699_s3 + $0x38] sm:$0xff]  ;;  %v603_v26 = vld [vmem:[%s2699_s3 + $0x30] sm:$0xff] }
  0x36   :  { %350 = vperm.xlu1 %1895, %v176_v27   ;;  %345 = vperm.xlu0 %1894, %v175_v28  }
  0x3a   :  { %360 = vperm.xlu1 %1895, %v178_v29   ;;  %355 = vperm.xlu0 %1894, %v177_v30   ;;  %v636_v29 = vld [vmem:[%s2699_s3 + $0x138] sm:$0xff]  ;;  %v635_v30 = vld [vmem:[%s2699_s3 + $0x130] sm:$0xff] }
  0x3e   :  { %370 = vperm.xlu1 %1895, %v180_v31   ;;  %365 = vperm.xlu0 %1894, %v179_v32  }
  0x42   :  { %380 = vperm.xlu1 %1895, %v182_v33   ;;  %375 = vperm.xlu0 %1894, %v181_v34   ;;  %v206_v33 = vld [vmem:[%s2698_s2 + $0x1c8] sm:$0xff]  ;;  %v205_v34 = vld [vmem:[%s2698_s2 + $0x1c0] sm:$0xff] }
  0x46   :  { %460 = vperm.xlu1 %1895, %v198_v35   ;;  %455 = vperm.xlu0 %1894, %v197_v36  }
  0x4a   :  { %748 = vperm.xlu1 %1895, %v614_v37   ;;  %743 = vperm.xlu0 %1894, %v613_v38   ;;  %v190_v37 = vld [vmem:[%s2698_s2 + $0x148] sm:$0xff]  ;;  %v189_v38 = vld [vmem:[%s2698_s2 + $0x140] sm:$0xff] }
  0x4e   :  { %908 = vperm.xlu1 %1895, %v646_v39   ;;  %903 = vperm.xlu0 %1894, %v645_v40  }
  0x52   :  { %668 = vperm.xlu1 %1895, %v598_v41   ;;  %663 = vperm.xlu0 %1894, %v597_v42   ;;  %v622_v41 = vld [vmem:[%s2699_s3 + $0xc8] sm:$0xff]  ;;  %v621_v42 = vld [vmem:[%s2699_s3 + $0xc0] sm:$0xff] }
  0x56   :  { %828 = vperm.xlu1 %1895, %v630_v43   ;;  %823 = vperm.xlu0 %1894, %v629_v44  }
  0x5a   :  { %470 = vperm.xlu1 %1895, %v200_v45   ;;  %465 = vperm.xlu0 %1894, %v199_v46   ;;  %v654_v45 = vld [vmem:[%s2699_s3 + $0x1c8] sm:$0xff]  ;;  %v653_v46 = vld [vmem:[%s2699_s3 + $0x1c0] sm:$0xff] }
  0x5e   :  { %390 = vperm.xlu1 %1895, %v184_v47   ;;  %385 = vperm.xlu0 %1894, %v183_v48  }
  0x62   :  { %758 = vperm.xlu1 %1895, %v616_v49   ;;  %753 = vperm.xlu0 %1894, %v615_v50   ;;  %v606_v49 = vld [vmem:[%s2699_s3 + $0x48] sm:$0xff]  ;;  %v605_v50 = vld [vmem:[%s2699_s3 + $0x40] sm:$0xff] }
  0x66   :  { %918 = vperm.xlu1 %1895, %v648_v51   ;;  %913 = vperm.xlu0 %1894, %v647_v52  }
  0x6a   :  { %678 = vperm.xlu1 %1895, %v600_v53   ;;  %673 = vperm.xlu0 %1894, %v599_v54   ;;  %v638_v53 = vld [vmem:[%s2699_s3 + $0x148] sm:$0xff]  ;;  %v637_v54 = vld [vmem:[%s2699_s3 + $0x140] sm:$0xff] }
  0x6e   :  { %838 = vperm.xlu1 %1895, %v632_v55   ;;  %833 = vperm.xlu0 %1894, %v631_v56  }
  0x72   :  { %480 = vperm.xlu1 %1895, %v202_v57   ;;  %475 = vperm.xlu0 %1894, %v201_v58   ;;  %v208_v57 = vld [vmem:[%s2698_s2 + $0x1d8] sm:$0xff]  ;;  %v207_v58 = vld [vmem:[%s2698_s2 + $0x1d0] sm:$0xff] }
  0x76   :  { %400 = vperm.xlu1 %1895, %v186_v59   ;;  %395 = vperm.xlu0 %1894, %v185_v60  }
  0x7a   :  { %768 = vperm.xlu1 %1895, %v618_v61   ;;  %763 = vperm.xlu0 %1894, %v617_v62   ;;  %v192_v61 = vld [vmem:[%s2698_s2 + $0x158] sm:$0xff]  ;;  %v191_v62 = vld [vmem:[%s2698_s2 + $0x150] sm:$0xff] }
  0x7e   :  { %928 = vperm.xlu1 %1895, %v650_v63   ;;  %923 = vperm.xlu0 %1894, %v649_v0  }
  0x81   :  { %v2154_v3 = vpop.permute.xlu1 %225  ;;  %v2156_v4 = vpop.permute.xlu0 %215 }
  0x82   :  { %688 = vperm.xlu1 %1895, %v602_v1   ;;  %683 = vperm.xlu0 %1894, %v601_v2   ;;  %v624_v1 = vld [vmem:[%s2699_s3 + $0xd8] sm:$0xff]  ;;  %v623_v2 = vld [vmem:[%s2699_s3 + $0xd0] sm:$0xff] }
  0x85   :  { %v2164_v7 = vpop.permute.xlu1 %230  ;;  %v2166_v8 = vpop.permute.xlu0 %220 }
  0x86   :  { %848 = vperm.xlu1 %1895, %v634_v5   ;;  %843 = vperm.xlu0 %1894, %v633_v6   ;;  %v1789_v5 = vld [vmem:[%s2700_s1 + $0x40] sm:$0xff]  }
  0x89   :  { %v2174_v11 = vpop.permute.xlu1 %240  ;;  %v2176_v12 = vpop.permute.xlu0 %235 }
  0x8a   :  { %490 = vperm.xlu1 %1895, %v204_v9   ;;  %485 = vperm.xlu0 %1894, %v203_v10   ;;  %v656_v10 = vld [vmem:[%s2699_s3 + $0x1d8] sm:$0xff] }
  0x8d   :  { %v2184_v15 = vpop.permute.xlu1 %250  ;;  %v2186_v16 = vpop.permute.xlu0 %245 }
  0x8e   :  { %410 = vperm.xlu1 %1895, %v188_v13   ;;  %405 = vperm.xlu0 %1894, %v187_v14   ;;  %v655_v13 = vld [vmem:[%s2699_s3 + $0x1d0] sm:$0xff]  ;;  %v1689_v14 = vunpack.c.h.bf16 %v1789_v5 }
  0x91   :  { %v2194_v19 = vpop.permute.xlu1 %260  ;;  %v2196_v20 = vpop.permute.xlu0 %255 }
  0x92   :  { %778 = vperm.xlu1 %1895, %v620_v17   ;;  %773 = vperm.xlu0 %1894, %v619_v18   ;;  %v1688_v17 = vunpack.c.l.bf16 %v1789_v5  ;;  %v1805_v18 = vld [vmem:[%s2700_s1 + $0xc0] sm:$0xff]  }
  0x95   :  { %v2204_v23 = vpop.permute.xlu1 %270  ;;  %v2206_v24 = vpop.permute.xlu0 %265 }
  0x96   :  { %938 = vperm.xlu1 %1895, %v652_v21   ;;  %933 = vperm.xlu0 %1894, %v651_v22  }
  0x99   :  { %v2214_v27 = vpop.permute.xlu1 %280  ;;  %v2216_v28 = vpop.permute.xlu0 %275 }
  0x9a   :  { %698 = vperm.xlu1 %1895, %v604_v25   ;;  %693 = vperm.xlu0 %1894, %v603_v26   ;;  %v1753_v25 = vunpack.c.h.bf16 %v1805_v18  ;;  %v1752_v26 = vunpack.c.l.bf16 %v1805_v18 }
  0x9d   :  { %v2224_v31 = vpop.permute.xlu1 %290  ;;  %v2226_v32 = vpop.permute.xlu0 %285 }
  0x9e   :  { %858 = vperm.xlu1 %1895, %v636_v29   ;;  %853 = vperm.xlu0 %1894, %v635_v30   ;;  %v608_v29 = vld [vmem:[%s2699_s3 + $0x58] sm:$0xff]  ;;  %v607_v30 = vld [vmem:[%s2699_s3 + $0x50] sm:$0xff] }
  0xa1   :  { %v2234_v35 = vpop.permute.xlu1 %300  ;;  %v2236_v36 = vpop.permute.xlu0 %295 }
  0xa2   :  { %500 = vperm.xlu1 %1895, %v206_v33   ;;  %495 = vperm.xlu0 %1894, %v205_v34   ;;  %v1655_v33 = vld [vmem:[%s2700_s1] sm:$0xff]   ;;  %v550_v34 = vmul.f32 %v1689_v14, %v2234_v35  ;;  %v640_v35 = vld [vmem:[%s2699_s3 + $0x158] sm:$0xff] }
  0xa5   :  { %v2244_v39 = vpop.permute.xlu1 %310  ;;  %v2246_v40 = vpop.permute.xlu0 %305 }
  0xa6   :  { %420 = vperm.xlu1 %1895, %v190_v37   ;;  %415 = vperm.xlu0 %1894, %v189_v38   ;;  %v549_v37 = vmul.f32 %v1688_v17, %v2236_v36  ;;  %v639_v36 = vld [vmem:[%s2699_s3 + $0x150] sm:$0xff] }
  0xa9   :  { %v2254_v43 = vpop.permute.xlu1 %320  ;;  %v2256_v44 = vpop.permute.xlu0 %315 }
  0xaa   :  { %788 = vperm.xlu1 %1895, %v622_v41   ;;  %783 = vperm.xlu0 %1894, %v621_v42  }
  0xad   :  { %v2264_v47 = vpop.permute.xlu1 %330  ;;  %v2266_v48 = vpop.permute.xlu0 %325 }
  0xae   :  { %948 = vperm.xlu1 %1895, %v654_v45   ;;  %943 = vperm.xlu0 %1894, %v653_v46   ;;  %v1656_v46 = vunpack.c.l.bf16 %v1655_v33 }
  0xb1   :  { %v2274_v51 = vpop.permute.xlu1 %340  ;;  %v2276_v52 = vpop.permute.xlu0 %335 }
  0xb2   :  { %708 = vperm.xlu1 %1895, %v606_v49   ;;  %703 = vperm.xlu0 %1894, %v605_v50   ;;  %v1657_v49 = vunpack.c.h.bf16 %v1655_v33  ;;  %v1797_v50 = vld [vmem:[%s2700_s1 + $0x80] sm:$0xff]  }
  0xb3   :  { %v1720_v17 = vunpack.c.l.bf16 %v1797_v50 }
  0xb4   :  { %v534_v14 = vmul.f32 %v1657_v49, %v2166_v8 }
  0xb5   :  { %v2284_v55 = vpop.permute.xlu1 %350  ;;  %v2286_v56 = vpop.permute.xlu0 %345 }
  0xb6   :  { %868 = vperm.xlu1 %1895, %v638_v53   ;;  %863 = vperm.xlu0 %1894, %v637_v54  }
  0xb9   :  { %v2294_v59 = vpop.permute.xlu1 %360  ;;  %v2296_v60 = vpop.permute.xlu0 %355 }
  0xba   :  { %510 = vperm.xlu1 %1895, %v208_v57   ;;  %505 = vperm.xlu0 %1894, %v207_v58  }
  0xbd   :  { %v2304_v63 = vpop.permute.xlu1 %370  ;;  %v2306_v0 = vpop.permute.xlu0 %365 }
  0xbe   :  { %430 = vperm.xlu1 %1895, %v192_v61   ;;  %425 = vperm.xlu0 %1894, %v191_v62  }
  0xc1   :  { %v2317_v6 = vpop.permute.xlu1 %380  ;;  %v2319_v9 = vpop.permute.xlu0 %375 }
  0xc2   :  { %798 = vperm.xlu1 %1895, %v624_v1   ;;  %793 = vperm.xlu0 %1894, %v623_v2   ;;  %v1721_v1 = vunpack.c.h.bf16 %v1797_v50  ;;  %v193_v50 = vld [vmem:[%s2698_s2 + $0x160] sm:$0xff] }
  0xc5   :  { %v461_v21 = vpop.permute.xlu1 %460  ;;  %v456_v22 = vpop.permute.xlu0 %455 }
  0xc6   :  { %958 = vperm.xlu1 %1895, %v656_v10   ;;  %953 = vperm.xlu0 %1894, %v655_v13   ;;  %v582_v53 = vmul.f32 %v1753_v25, %v461_v21  ;;  %v581_v54 = vmul.f32 %v1752_v26, %v456_v22  ;;  %v533_v13 = vmul.f32 %v1656_v46, %v2156_v4  ;;  %v210_v21 = vld [vmem:[%s2698_s2 + $0x1e8] sm:$0xff]  ;;  %v209_v25 = vld [vmem:[%s2698_s2 + $0x1e0] sm:$0xff] }
  0xc9   :  { %v749_v38 = vpop.permute.xlu1 %748  ;;  %v744_v41 = vpop.permute.xlu0 %743 }
  0xca   :  { %v998_v42 = vadd.f32 %v749_v38, %v550_v34  ;;  %v997_v45 = vadd.f32 %v744_v41, %v549_v37  ;;  %718 = vperm.xlu1 %1895, %v608_v29   ;;  %713 = vperm.xlu0 %1894, %v607_v30   ;;  %v566_v37 = vmul.f32 %v1721_v1, %v2317_v6  ;;  %v625_v1 = vld [vmem:[%s2699_s3 + $0xe0] sm:$0xff] }
  0xcb   :  { %v565_v38 = vmul.f32 %v1720_v17, %v2319_v9  ;;  %v658_v17 = vld [vmem:[%s2699_s3 + $0x1e8] sm:$0xff] }
  0xcc   :  { %vm1061_vm0 = vcmp.ge.f32.partialorder %v997_v45, 0.0  ;;  %vm1062_vm1 = vcmp.ge.f32.partialorder %v998_v42, 0.0  ;;  %v1125_v57 = vmul.f32 0.2, %v997_v45  ;;  %v1126_v58 = vmul.f32 0.2, %v998_v42 }
  0xcd   :  { %v909_v61 = vpop.permute.xlu1 %908  ;;  %v904_v62 = vpop.permute.xlu0 %903 }
  0xce   :  { %v1030_v2 = vadd.f32 %v909_v61, %v582_v53  ;;  %v1029_v5 = vadd.f32 %v904_v62, %v581_v54  ;;  %878 = vperm.xlu1 %1895, %v640_v35   ;;  %873 = vperm.xlu0 %1894, %v639_v36   ;;  %v1189_v10 = vsel %vm1061_vm0, %v997_v45, %v1125_v57  ;;  %v626_v57 = vld [vmem:[%s2699_s3 + $0xe8] sm:$0xff] }
  0xcf   :  { %v1190_v18 = vsel %vm1062_vm1, %v998_v42, %v1126_v58  ;;  %v194_v42 = vld [vmem:[%s2698_s2 + $0x168] sm:$0xff] }
  0xd0   :  { %v1245_v22 = vpack.c.bf16 %v1190_v18, %v1189_v10  ;;  %vm1093_vm2 = vcmp.ge.f32.partialorder %v1029_v5, 0.0  ;;  %vm1094_vm3 = vcmp.ge.f32.partialorder %v1030_v2, 0.0  ;;  %v1157_v26 = vmul.f32 0.2, %v1029_v5 }
  0xd1   :  { %v669_v29 = vpop.permute.xlu1 %668  ;;  %v664_v30 = vpop.permute.xlu0 %663  ;;  %v1158_v33 = vmul.f32 0.2, %v1030_v2 }
  0xd2   :  { %v982_v4 = vadd.f32 %v669_v29, %v534_v14  ;;  %v981_v34 = vadd.f32 %v664_v30, %v533_v13  ;;  %1813 = vmatprep.subr.bf16.mxu0 %v1245_v22  ;;  %520 = vperm.xlu1 %1895, %v210_v21   ;;  %v1221_v8 = vsel %vm1093_vm2, %v1029_v5, %v1157_v26  ;;  %v1806_v22 = vld [vmem:[%s2700_s1 + $0xc8] sm:$0xff]   ;;  %v657_v26 = vld [vmem:[%s2699_s3 + $0x1e0] sm:$0xff] }
  0xd3   :  { %515 = vperm.xlu0 %1894, %v209_v25   ;;  %v1222_v41 = vsel %vm1094_vm3, %v1030_v2, %v1158_v33  ;;  %v1790_v2 = vld [vmem:[%s2700_s1 + $0x48] sm:$0xff]   ;;  %v1757_v33 = vunpack.c.h.bf16 %v1806_v22 }
  0xd4   :  { %v1110_v45 = vmul.f32 0.2, %v982_v4  ;;  %v1109_v46 = vmul.f32 0.2, %v981_v34  ;;  %v1261_v49 = vpack.c.bf16 %v1222_v41, %v1221_v8  ;;  %vm1045_vm4 = vcmp.ge.f32.partialorder %v981_v34, 0.0  ;;  %v1782_v8 = vld [vmem:[%s2700_s1 + $0x8] sm:$0xff]  }
  0xd5   :  { %v829_v53 = vpop.permute.xlu1 %828  ;;  %v824_v54 = vpop.permute.xlu0 %823  ;;  %vm1046_vm5 = vcmp.ge.f32.partialorder %v982_v4, 0.0  ;;  %v1693_v18 = vunpack.c.h.bf16 %v1790_v2  ;;  %v1692_v21 = vunpack.c.l.bf16 %v1790_v2  ;;  %v609_v41 = vld [vmem:[%s2699_s3 + $0x60] sm:$0xff] }
  0xd6   :  { %v1014_v6 = vadd.f32 %v829_v53, %v566_v37  ;;  %v1013_v35 = vadd.f32 %v824_v54, %v565_v38  ;;  %1853 = vmatprep.subr.bf16.mxu1 %v1261_v49  ;;  %440 = vperm.xlu1 %1895, %v194_v42   ;;  %v1173_v9 = vsel %vm1045_vm4, %v981_v34, %v1109_v46  ;;  %v610_v34 = vld [vmem:[%s2699_s3 + $0x68] sm:$0xff]  ;;  %v1660_v53 = vunpack.c.l.bf16 %v1782_v8 }
  0xd7   :  { %435 = vperm.xlu0 %1894, %v193_v50   ;;  %v1174_v36 = vsel %vm1046_vm5, %v982_v4, %v1110_v45  ;;  %v1756_v4 = vunpack.c.l.bf16 %v1806_v22  ;;  %v552_v37 = vmul.f32 %v1693_v18, %v2244_v39  ;;  %v551_v38 = vmul.f32 %v1692_v21, %v2246_v40  ;;  %v1798_v46 = vld [vmem:[%s2700_s1 + $0x88] sm:$0xff]   ;;  %v641_v40 = vld [vmem:[%s2699_s3 + $0x160] sm:$0xff]  ;;  %v212_v18 = vld [vmem:[%s2698_s2 + $0x1f8] sm:$0xff] }
  0xd8   :  { %v1142_v58 = vmul.f32 0.2, %v1014_v6  ;;  %v1141_v61 = vmul.f32 0.2, %v1013_v35  ;;  %v1237_v62 = vpack.c.bf16 %v1174_v36, %v1173_v9  ;;  %vm1077_vm6 = vcmp.ge.f32.partialorder %v1013_v35, 0.0  ;;  %v642_v39 = vld [vmem:[%s2699_s3 + $0x168] sm:$0xff] }
  0xd9   :  { %v471_v5 = vpop.permute.xlu1 %470  ;;  %v466_v10 = vpop.permute.xlu0 %465  ;;  %vm1078_vm7 = vcmp.ge.f32.partialorder %v1014_v6, 0.0  ;;  %v1661_v54 = vunpack.c.h.bf16 %v1782_v8  ;;  %v211_v21 = vld [vmem:[%s2698_s2 + $0x1f0] sm:$0xff] }
  0xda   :  { %1814 = vmatpush3.bf16.msra.mxu0 %v1237_v62  ;;  %808 = vperm.xlu1 %1895, %v626_v57   ;;  %v1205_v13 = vsel %vm1077_vm6, %v1013_v35, %v1141_v61  ;;  %v1206_v14 = vsel %vm1078_vm7, %v1014_v6, %v1142_v58  ;;  %v584_v6 = vmul.f32 %v1757_v33, %v471_v5  ;;  %v1725_v57 = vunpack.c.h.bf16 %v1798_v46 }
  0xdb   :  { %803 = vperm.xlu0 %1894, %v625_v1   ;;  %v1253_v25 = vpack.c.bf16 %v1206_v14, %v1205_v13  ;;  %v583_v35 = vmul.f32 %v1756_v4, %v466_v10  ;;  %v535_v10 = vmul.f32 %v1660_v53, %v2154_v3  ;;  %v536_v13 = vmul.f32 %v1661_v54, %v2164_v7 }
  0xdc   :  { %v1724_v14 = vunpack.c.l.bf16 %v1798_v46 }
  0xdd   :  { %v391_v29 = vpop.permute.xlu1 %390  ;;  %v386_v30 = vpop.permute.xlu0 %385  ;;  %1854 = vmatpush3.bf16.msra.mxu1 %v1253_v25 }
  0xde   :  { %968 = vperm.xlu1 %1895, %v658_v17   ;;  %v568_v8 = vmul.f32 %v1725_v57, %v391_v29 }
  0xdf   :  { %963 = vperm.xlu0 %1894, %v657_v26  }
  0xe1   :  { %v759_v42 = vpop.permute.xlu1 %758  ;;  %v754_v45 = vpop.permute.xlu0 %753 }
  0xe2   :  { %v1000_v49 = vadd.f32 %v759_v42, %v552_v37  ;;  %v999_v50 = vadd.f32 %v754_v45, %v551_v38  ;;  %728 = vperm.xlu1 %1895, %v610_v34   ;;  %v567_v37 = vmul.f32 %v1724_v14, %v386_v30  ;;  %v195_v42 = vld [vmem:[%s2698_s2 + $0x170] sm:$0xff] }
  0xe3   :  { %723 = vperm.xlu0 %1894, %v609_v41   ;;  %v196_v41 = vld [vmem:[%s2698_s2 + $0x178] sm:$0xff]  ;;  %v659_v14 = vld [vmem:[%s2699_s3 + $0x1f0] sm:$0xff] }
  0xe4   :  { %vm1064_vm8 = vcmp.ge.f32.partialorder %v1000_v49, 0.0  ;;  %v1128_v9 = vmul.f32 0.2, %v1000_v49  ;;  %vm1063_vm9 = vcmp.ge.f32.partialorder %v999_v50, 0.0  ;;  %v1127_v36 = vmul.f32 0.2, %v999_v50 }
  0xe5   :  { %v919_v58 = vpop.permute.xlu1 %918  ;;  %v914_v61 = vpop.permute.xlu0 %913 }
  0xe6   :  { %v1032_v62 = vadd.f32 %v919_v58, %v584_v6  ;;  %v1031_v1 = vadd.f32 %v914_v61, %v583_v35  ;;  %888 = vperm.xlu1 %1895, %v642_v39   ;;  %v1191_v2 = vsel %vm1063_vm9, %v999_v50, %v1127_v36  ;;  %v1192_v5 = vsel %vm1064_vm8, %v1000_v49, %v1128_v9  ;;  %v628_v35 = vld [vmem:[%s2699_s3 + $0xf8] sm:$0xff]  ;;  %v627_v39 = vld [vmem:[%s2699_s3 + $0xf0] sm:$0xff] }
  0xe7   :  { %883 = vperm.xlu0 %1894, %v641_v40   ;;  %v1246_v17 = vpack.c.bf16 %v1192_v5, %v1191_v2  ;;  %v1791_v36 = vld [vmem:[%s2700_s1 + $0x50] sm:$0xff]   ;;  %v660_v2 = vld [vmem:[%s2699_s3 + $0x1f8] sm:$0xff] }
  0xe8   :  { %vm1096_vm10 = vcmp.ge.f32.partialorder %v1032_v62, 0.0  ;;  %v1160_v22 = vmul.f32 0.2, %v1032_v62  ;;  %vm1095_vm11 = vcmp.ge.f32.partialorder %v1031_v1, 0.0  ;;  %v1159_v25 = vmul.f32 0.2, %v1031_v1 }
  0xe9   :  { %v679_v26 = vpop.permute.xlu1 %678  ;;  %v674_v33 = vpop.permute.xlu0 %673  ;;  %1815 = vmatprep.subr.bf16.mxu0 %v1246_v17  ;;  %v1697_v5 = vunpack.c.h.bf16 %v1791_v36 }
  0xea   :  { %v984_v3 = vadd.f32 %v679_v26, %v536_v13  ;;  %v983_v7 = vadd.f32 %v674_v33, %v535_v10  ;;  %530 = vperm.xlu1 %1895, %v212_v18   ;;  %v1223_v4 = vsel %vm1095_vm11, %v1031_v1, %v1159_v25  ;;  %v1224_v34 = vsel %vm1096_vm10, %v1032_v62, %v1160_v22  ;;  %v1807_v13 = vld [vmem:[%s2700_s1 + $0xd0] sm:$0xff]   ;;  %v612_v25 = vld [vmem:[%s2699_s3 + $0x78] sm:$0xff] }
  0xeb   :  { %525 = vperm.xlu0 %1894, %v211_v21   ;;  %v1262_v38 = vpack.c.bf16 %v1224_v34, %v1223_v4  ;;  %v1696_v10 = vunpack.c.l.bf16 %v1791_v36  ;;  %v1761_v21 = vunpack.c.h.bf16 %v1807_v13  ;;  %v1760_v22 = vunpack.c.l.bf16 %v1807_v13  ;;  %v1783_v26 = vld [vmem:[%s2700_s1 + $0x10] sm:$0xff]  }
  0xec   :  { %vm1048_vm12 = vcmp.ge.f32.partialorder %v984_v3, 0.0  ;;  %v1112_v45 = vmul.f32 0.2, %v984_v3  ;;  %vm1047_vm13 = vcmp.ge.f32.partialorder %v983_v7, 0.0  ;;  %v1111_v46 = vmul.f32 0.2, %v983_v7 }
  0xed   :  { %v839_v49 = vpop.permute.xlu1 %838  ;;  %v834_v50 = vpop.permute.xlu0 %833  ;;  %1855 = vmatprep.subr.bf16.mxu1 %v1262_v38  ;;  %v554_v33 = vmul.f32 %v1697_v5, %v2254_v43  ;;  %v644_v43 = vld [vmem:[%s2699_s3 + $0x178] sm:$0xff] }
  0xee   :  { %v1016_v53 = vadd.f32 %v839_v49, %v568_v8  ;;  %v1015_v29 = vadd.f32 %v834_v50, %v567_v37  ;;  %450 = vperm.xlu1 %1895, %v196_v41   ;;  %v1175_v30 = vsel %vm1047_vm13, %v983_v7, %v1111_v46  ;;  %v1176_v54 = vsel %vm1048_vm12, %v984_v3, %v1112_v45  ;;  %v611_v7 = vld [vmem:[%s2699_s3 + $0x70] sm:$0xff] }
  0xef   :  { %445 = vperm.xlu0 %1894, %v195_v42   ;;  %v1238_v6 = vpack.c.bf16 %v1176_v54, %v1175_v30  ;;  %v553_v3 = vmul.f32 %v1696_v10, %v2256_v44  ;;  %v1799_v8 = vld [vmem:[%s2700_s1 + $0x90] sm:$0xff]   ;;  %v1665_v41 = vunpack.c.h.bf16 %v1783_v26  ;;  %v1664_v42 = vunpack.c.l.bf16 %v1783_v26 }
  0xf0   :  { %vm1080_vm14 = vcmp.ge.f32.partialorder %v1016_v53, 0.0  ;;  %v1144_v40 = vmul.f32 0.2, %v1016_v53  ;;  %vm1079_vm15 = vcmp.ge.f32.partialorder %v1015_v29, 0.0  ;;  %v1143_v9 = vmul.f32 0.2, %v1015_v29 }
  0xf1   :  { %v481_v57 = vpop.permute.xlu1 %480  ;;  %v476_v58 = vpop.permute.xlu0 %475  ;;  %1816 = vmatpush3.bf16.msra.mxu0 %v1238_v6  ;;  %v643_v44 = vld [vmem:[%s2699_s3 + $0x170] sm:$0xff]  ;;  %v1728_v36 = vunpack.c.l.bf16 %v1799_v8 }
  0xf2   :  { %818 = vperm.xlu1 %1895, %v628_v35   ;;  %v1207_v61 = vsel %vm1079_vm15, %v1015_v29, %v1143_v9  ;;  %v1208_v62 = vsel %vm1080_vm14, %v1016_v53, %v1144_v40  ;;  %v586_v45 = vmul.f32 %v1761_v21, %v481_v57  ;;  %v585_v46 = vmul.f32 %v1760_v22, %v476_v58 }
  0xf3   :  { %813 = vperm.xlu0 %1894, %v627_v39   ;;  %v1254_v1 = vpack.c.bf16 %v1208_v62, %v1207_v61  ;;  %v1729_v53 = vunpack.c.h.bf16 %v1799_v8  ;;  %v538_v40 = vmul.f32 %v1665_v41, %v2174_v11  ;;  %v537_v9 = vmul.f32 %v1664_v42, %v2176_v12 }
  0xf5   :  { %v401_v17 = vpop.permute.xlu1 %400  ;;  %v396_v18 = vpop.permute.xlu0 %395  ;;  %1856 = vmatpush3.bf16.msra.mxu1 %v1254_v1 }
  0xf6   :  { %978 = vperm.xlu1 %1895, %v660_v2   ;;  %v569_v21 = vmul.f32 %v1728_v36, %v396_v18  ;;  %v1800_v36 = vld [vmem:[%s2700_s1 + $0x98] sm:$0xff]  }
  0xf7   :  { %973 = vperm.xlu0 %1894, %v659_v14   ;;  %v570_v14 = vmul.f32 %v1729_v53, %v401_v17  ;;  %v1901_v17 = vld [vmem:[%s2701_s0 + $0xc] ss:$16 sps:$4 sm:$0xff]  }
  0xf8   :  { %1462 = vmatprep.mubr.bf16.mxu1 %v1901_v17 }
  0xf9   :  { %v769_v4 = vpop.permute.xlu1 %768  ;;  %v764_v34 = vpop.permute.xlu0 %763 }
  0xfa   :  { %v1002_v37 = vadd.f32 %v769_v4, %v554_v33  ;;  %v1001_v38 = vadd.f32 %v764_v34, %v553_v3  ;;  %738 = vperm.xlu1 %1895, %v612_v25   ;;  %v1898_v33 = vld [vmem:[%s2701_s0 + $0x4] ss:$16 sps:$4 sm:$0xff]  }
  0xfb   :  { %733 = vperm.xlu0 %1894, %v611_v7   ;;  %1397 = vmatprep.mubr.bf16.mxu0 %v1898_v33 }
  0xfc   :  { %vm1066_vm0 = vcmp.ge.f32.partialorder %v1002_v37, 0.0  ;;  %v1130_v49 = vmul.f32 0.2, %v1002_v37  ;;  %vm1065_vm1 = vcmp.ge.f32.partialorder %v1001_v38, 0.0  ;;  %v1129_v50 = vmul.f32 0.2, %v1001_v38 }
  0xfd   :  { %v929_v29 = vpop.permute.xlu1 %928  ;;  %v924_v30 = vpop.permute.xlu0 %923 }
  0xfe   :  { %v1034_v54 = vadd.f32 %v929_v29, %v586_v45  ;;  %v1033_v6 = vadd.f32 %v924_v30, %v585_v46  ;;  %898 = vperm.xlu1 %1895, %v644_v43   ;;  %v1193_v35 = vsel %vm1065_vm1, %v1001_v38, %v1129_v50  ;;  %v1194_v39 = vsel %vm1066_vm0, %v1002_v37, %v1130_v49  ;;  %v1792_v38 = vld [vmem:[%s2700_s1 + $0x58] sm:$0xff]  }
  0xff   :  { %893 = vperm.xlu0 %1894, %v643_v44   ;;  %v1247_v57 = vpack.c.bf16 %v1194_v39, %v1193_v35  ;;  %v1701_v44 = vunpack.c.h.bf16 %v1792_v38  ;;  %v1700_v49 = vunpack.c.l.bf16 %v1792_v38  ;;  %v1808_v50 = vld [vmem:[%s2700_s1 + $0xd8] sm:$0xff]  }
 0x100   :  { %vm1098_vm2 = vcmp.ge.f32.partialorder %v1034_v54, 0.0  ;;  %v1162_v58 = vmul.f32 0.2, %v1034_v54  ;;  %vm1097_vm3 = vcmp.ge.f32.partialorder %v1033_v6, 0.0  ;;  %v1161_v61 = vmul.f32 0.2, %v1033_v6 }
 0x101   :  { %v689_v62 = vpop.permute.xlu1 %688  ;;  %v684_v1 = vpop.permute.xlu0 %683  ;;  %1817 = vmatprep.subr.bf16.mxu0 %v1247_v57  ;;  %v1765_v30 = vunpack.c.h.bf16 %v1808_v50  ;;  %v556_v35 = vmul.f32 %v1701_v44, %v2264_v47  ;;  %v555_v39 = vmul.f32 %v1700_v49, %v2266_v48 }
 0x102   :  { %v986_v2 = vadd.f32 %v689_v62, %v538_v40  ;;  %v985_v5 = vadd.f32 %v684_v1, %v537_v9  ;;  %v1225_v10 = vsel %vm1097_vm3, %v1033_v6, %v1161_v61  ;;  %v1226_v13 = vsel %vm1098_vm2, %v1034_v54, %v1162_v58  ;;  %v1784_v6 = vld [vmem:[%s2700_s1 + $0x18] sm:$0xff]  }
 0x103   :  { %v1263_v22 = vpack.c.bf16 %v1226_v13, %v1225_v10  ;;  %v1764_v54 = vunpack.c.l.bf16 %v1808_v50  ;;  %v1669_v61 = vunpack.c.h.bf16 %v1784_v6  ;;  %v1668_v62 = vunpack.c.l.bf16 %v1784_v6 }
 0x104   :  { %vm1050_vm4 = vcmp.ge.f32.partialorder %v986_v2, 0.0  ;;  %v1114_v11 = vmul.f32 0.2, %v986_v2  ;;  %vm1049_vm5 = vcmp.ge.f32.partialorder %v985_v5, 0.0  ;;  %v1113_v12 = vmul.f32 0.2, %v985_v5 }
 0x105   :  { %v849_v25 = vpop.permute.xlu1 %848  ;;  %v844_v26 = vpop.permute.xlu0 %843  ;;  %1857 = vmatprep.subr.bf16.mxu1 %v1263_v22  ;;  %v1733_v13 = vunpack.c.h.bf16 %v1800_v36 }
 0x106   :  { %v1018_v3 = vadd.f32 %v849_v25, %v570_v14  ;;  %v1017_v7 = vadd.f32 %v844_v26, %v569_v21  ;;  %v1177_v4 = vsel %vm1049_vm5, %v985_v5, %v1113_v12  ;;  %v1178_v34 = vsel %vm1050_vm4, %v986_v2, %v1114_v11 }
 0x107   :  { %v1239_v18 = vpack.c.bf16 %v1178_v34, %v1177_v4  ;;  %v540_v12 = vmul.f32 %v1669_v61, %v2184_v15  ;;  %v539_v25 = vmul.f32 %v1668_v62, %v2186_v16  ;;  %v1732_v26 = vunpack.c.l.bf16 %v1800_v36 }
 0x108   :  { %vm1082_vm6 = vcmp.ge.f32.partialorder %v1018_v3, 0.0  ;;  %v1146_v8 = vmul.f32 0.2, %v1018_v3  ;;  %vm1081_vm7 = vcmp.ge.f32.partialorder %v1017_v7, 0.0  ;;  %v1145_v37 = vmul.f32 0.2, %v1017_v7 }
 0x109   :  { %v491_v41 = vpop.permute.xlu1 %490  ;;  %v486_v42 = vpop.permute.xlu0 %485  ;;  %1818 = vmatpush3.bf16.msra.mxu0 %v1239_v18 }
 0x10a   :  { %v1209_v45 = vsel %vm1081_vm7, %v1017_v7, %v1145_v37  ;;  %v1210_v46 = vsel %vm1082_vm6, %v1018_v3, %v1146_v8  ;;  %v588_v1 = vmul.f32 %v1765_v30, %v491_v41  ;;  %v587_v2 = vmul.f32 %v1764_v54, %v486_v42 }
 0x10b   :  { %v1255_v43 = vpack.c.bf16 %v1210_v46, %v1209_v45 }
 0x10d   :  { %v411_v53 = vpop.permute.xlu1 %410  ;;  %v406_v29 = vpop.permute.xlu0 %405  ;;  %1858 = vmatpush3.bf16.msra.mxu1 %v1255_v43 }
 0x10e   :  { %v572_v38 = vmul.f32 %v1733_v13, %v411_v53  ;;  %v571_v41 = vmul.f32 %v1732_v26, %v406_v29  ;;  %v1793_v53 = vld [vmem:[%s2700_s1 + $0x60] sm:$0xff]  }
 0x10f   :  { %v1705_v36 = vunpack.c.h.bf16 %v1793_v53  ;;  %v1801_v26 = vld [vmem:[%s2700_s1 + $0xa0] sm:$0xff]  }
 0x111   :  { %v779_v40 = vpop.permute.xlu1 %778  ;;  %v774_v9 = vpop.permute.xlu0 %773 }
 0x112   :  { %v1004_v57 = vadd.f32 %v779_v40, %v556_v35  ;;  %v1003_v58 = vadd.f32 %v774_v9, %v555_v39 }
 0x114   :  { %vm1068_vm8 = vcmp.ge.f32.partialorder %v1004_v57, 0.0  ;;  %v1132_v5 = vmul.f32 0.2, %v1004_v57  ;;  %vm1067_vm9 = vcmp.ge.f32.partialorder %v1003_v58, 0.0  ;;  %v1131_v10 = vmul.f32 0.2, %v1003_v58 }
 0x115   :  { %v939_v47 = vpop.permute.xlu1 %938  ;;  %v934_v14 = vpop.permute.xlu0 %933 }
 0x116   :  { %v1036_v48 = vadd.f32 %v939_v47, %v588_v1  ;;  %v1035_v21 = vadd.f32 %v934_v14, %v587_v2  ;;  %v1195_v22 = vsel %vm1067_vm9, %v1003_v58, %v1131_v10  ;;  %v1196_v11 = vsel %vm1068_vm8, %v1004_v57, %v1132_v5  ;;  %v1809_v58 = vld [vmem:[%s2700_s1 + $0xe0] sm:$0xff]  }
 0x117   :  { %v1248_v33 = vpack.c.bf16 %v1196_v11, %v1195_v22  ;;  %v1704_v57 = vunpack.c.l.bf16 %v1793_v53  ;;  %v1785_v1 = vld [vmem:[%s2700_s1 + $0x20] sm:$0xff]   ;;  %v1769_v2 = vunpack.c.h.bf16 %v1809_v58  ;;  %v1768_v5 = vunpack.c.l.bf16 %v1809_v58  ;;  %v1794_v58 = vld [vmem:[%s2700_s1 + $0x68] sm:$0xff]  }
 0x118   :  { %vm1100_vm10 = vcmp.ge.f32.partialorder %v1036_v48, 0.0  ;;  %v1164_v3 = vmul.f32 0.2, %v1036_v48  ;;  %vm1099_vm11 = vcmp.ge.f32.partialorder %v1035_v21, 0.0  ;;  %v1163_v7 = vmul.f32 0.2, %v1035_v21 }
 0x119   :  { %v699_v4 = vpop.permute.xlu1 %698  ;;  %v694_v34 = vpop.permute.xlu0 %693  ;;  %1819 = vmatprep.subr.bf16.mxu0 %v1248_v33  ;;  %v558_v10 = vmul.f32 %v1705_v36, %v2274_v51  ;;  %v557_v13 = vmul.f32 %v1704_v57, %v2276_v52  ;;  %v1673_v47 = vunpack.c.h.bf16 %v1785_v1  ;;  %v1672_v11 = vunpack.c.l.bf16 %v1785_v1 }
 0x11a   :  { %v988_v17 = vadd.f32 %v699_v4, %v540_v12  ;;  %v987_v18 = vadd.f32 %v694_v34, %v539_v25  ;;  %v1227_v8 = vsel %vm1099_vm11, %v1035_v21, %v1163_v7  ;;  %v1228_v37 = vsel %vm1100_vm10, %v1036_v48, %v1164_v3 }
 0x11b   :  { %v1264_v42 = vpack.c.bf16 %v1228_v37, %v1227_v8  ;;  %v542_v51 = vmul.f32 %v1673_v47, %v2194_v19  ;;  %v541_v8 = vmul.f32 %v1672_v11, %v2196_v20  ;;  %v1737_v37 = vunpack.c.h.bf16 %v1801_v26  ;;  %v1810_v47 = vld [vmem:[%s2700_s1 + $0xe8] sm:$0xff]  }
 0x11c   :  { %vm1052_vm12 = vcmp.ge.f32.partialorder %v988_v17, 0.0  ;;  %v1116_v15 = vmul.f32 0.2, %v988_v17  ;;  %vm1051_vm13 = vcmp.ge.f32.partialorder %v987_v18, 0.0  ;;  %v1115_v16 = vmul.f32 0.2, %v987_v18 }
 0x11d   :  { %v859_v45 = vpop.permute.xlu1 %858  ;;  %v854_v46 = vpop.permute.xlu0 %853  ;;  %1859 = vmatprep.subr.bf16.mxu1 %v1264_v42  ;;  %v1772_v11 = vunpack.c.l.bf16 %v1810_v47 }
 0x11e   :  { %v1020_v43 = vadd.f32 %v859_v45, %v572_v38  ;;  %v1019_v44 = vadd.f32 %v854_v46, %v571_v41  ;;  %v1179_v49 = vsel %vm1051_vm13, %v987_v18, %v1115_v16  ;;  %v1180_v50 = vsel %vm1052_vm12, %v988_v17, %v1116_v15 }
 0x11f   :  { %v1240_v30 = vpack.c.bf16 %v1180_v50, %v1179_v49  ;;  %v1736_v38 = vunpack.c.l.bf16 %v1801_v26 }
 0x120   :  { %vm1084_vm14 = vcmp.ge.f32.partialorder %v1020_v43, 0.0  ;;  %v1148_v54 = vmul.f32 0.2, %v1020_v43  ;;  %vm1083_vm15 = vcmp.ge.f32.partialorder %v1019_v44, 0.0  ;;  %v1147_v6 = vmul.f32 0.2, %v1019_v44 }
 0x121   :  { %v501_v29 = vpop.permute.xlu1 %500  ;;  %v496_v35 = vpop.permute.xlu0 %495  ;;  %1820 = vmatpush3.bf16.msra.mxu0 %v1240_v30 }
 0x122   :  { %v1211_v39 = vsel %vm1083_vm15, %v1019_v44, %v1147_v6  ;;  %v1212_v40 = vsel %vm1084_vm14, %v1020_v43, %v1148_v54  ;;  %v590_v12 = vmul.f32 %v1769_v2, %v501_v29  ;;  %v589_v25 = vmul.f32 %v1768_v5, %v496_v35 }
 0x123   :  { %v1256_v9 = vpack.c.bf16 %v1212_v40, %v1211_v39 }
 0x125   :  { %v421_v61 = vpop.permute.xlu1 %420  ;;  %v416_v62 = vpop.permute.xlu0 %415  ;;  %1860 = vmatpush3.bf16.msra.mxu1 %v1256_v9 }
 0x126   :  { %v574_v49 = vmul.f32 %v1737_v37, %v421_v61  ;;  %v573_v50 = vmul.f32 %v1736_v38, %v416_v62 }
 0x129   :  { %v789_v14 = vpop.permute.xlu1 %788  ;;  %v784_v48 = vpop.permute.xlu0 %783 }
 0x12a   :  { %v1006_v21 = vadd.f32 %v789_v14, %v558_v10  ;;  %v1005_v22 = vadd.f32 %v784_v48, %v557_v13  ;;  %v1709_v10 = vunpack.c.h.bf16 %v1794_v58  ;;  %v1708_v13 = vunpack.c.l.bf16 %v1794_v58 }
 0x12c   :  { %vm1070_vm0 = vcmp.ge.f32.partialorder %v1006_v21, 0.0  ;;  %v1134_v33 = vmul.f32 0.2, %v1006_v21  ;;  %vm1069_vm1 = vcmp.ge.f32.partialorder %v1005_v22, 0.0  ;;  %v1133_v3 = vmul.f32 0.2, %v1005_v22 }
 0x12d   :  { %v949_v7 = vpop.permute.xlu1 %948  ;;  %v944_v52 = vpop.permute.xlu0 %943 }
 0x12e   :  { %v1038_v4 = vadd.f32 %v949_v7, %v590_v12  ;;  %v1037_v34 = vadd.f32 %v944_v52, %v589_v25  ;;  %v1197_v17 = vsel %vm1069_vm1, %v1005_v22, %v1133_v3  ;;  %v1198_v18 = vsel %vm1070_vm0, %v1006_v21, %v1134_v33  ;;  %v1786_v21 = vld [vmem:[%s2700_s1 + $0x28] sm:$0xff]  }
 0x12f   :  { %v1249_v41 = vpack.c.bf16 %v1198_v18, %v1197_v17  ;;  %v1773_v22 = vunpack.c.h.bf16 %v1810_v47  ;;  %v560_v12 = vmul.f32 %v1709_v10, %v2284_v55  ;;  %v559_v25 = vmul.f32 %v1708_v13, %v2286_v56  ;;  %v1802_v17 = vld [vmem:[%s2700_s1 + $0xa8] sm:$0xff]  }
 0x130   :  { %vm1102_vm2 = vcmp.ge.f32.partialorder %v1038_v4, 0.0  ;;  %v1166_v42 = vmul.f32 0.2, %v1038_v4  ;;  %vm1101_vm3 = vcmp.ge.f32.partialorder %v1037_v34, 0.0  ;;  %v1165_v15 = vmul.f32 0.2, %v1037_v34 }
 0x131   :  { %v709_v16 = vpop.permute.xlu1 %708  ;;  %v704_v45 = vpop.permute.xlu0 %703  ;;  %1821 = vmatprep.subr.bf16.mxu0 %v1249_v41  ;;  %v1677_v26 = vunpack.c.h.bf16 %v1786_v21  ;;  %v1676_v52 = vunpack.c.l.bf16 %v1786_v21 }
 0x132   :  { %v990_v46 = vadd.f32 %v709_v16, %v542_v51  ;;  %v989_v19 = vadd.f32 %v704_v45, %v541_v8  ;;  %v1229_v43 = vsel %vm1101_vm3, %v1037_v34, %v1165_v15  ;;  %v1230_v44 = vsel %vm1102_vm2, %v1038_v4, %v1166_v42 }
 0x133   :  { %v1265_v30 = vpack.c.bf16 %v1230_v44, %v1229_v43  ;;  %v544_v55 = vmul.f32 %v1677_v26, %v2204_v23  ;;  %v543_v16 = vmul.f32 %v1676_v52, %v2206_v24  ;;  %v1741_v45 = vunpack.c.h.bf16 %v1802_v17 }
 0x134   :  { %vm1054_vm4 = vcmp.ge.f32.partialorder %v990_v46, 0.0  ;;  %v1118_v54 = vmul.f32 0.2, %v990_v46  ;;  %vm1053_vm5 = vcmp.ge.f32.partialorder %v989_v19, 0.0  ;;  %v1117_v20 = vmul.f32 0.2, %v989_v19 }
 0x135   :  { %v869_v6 = vpop.permute.xlu1 %868  ;;  %v864_v53 = vpop.permute.xlu0 %863  ;;  %1861 = vmatprep.subr.bf16.mxu1 %v1265_v30 }
 0x136   :  { %v1022_v29 = vadd.f32 %v869_v6, %v574_v49  ;;  %v1021_v35 = vadd.f32 %v864_v53, %v573_v50  ;;  %v1181_v39 = vsel %vm1053_vm5, %v989_v19, %v1117_v20  ;;  %v1182_v40 = vsel %vm1054_vm4, %v990_v46, %v1118_v54 }
 0x137   :  { %v1241_v9 = vpack.c.bf16 %v1182_v40, %v1181_v39  ;;  %v1740_v46 = vunpack.c.l.bf16 %v1802_v17 }
 0x138   :  { %vm1086_vm6 = vcmp.ge.f32.partialorder %v1022_v29, 0.0  ;;  %v1150_v36 = vmul.f32 0.2, %v1022_v29  ;;  %vm1085_vm7 = vcmp.ge.f32.partialorder %v1021_v35, 0.0  ;;  %v1149_v57 = vmul.f32 0.2, %v1021_v35 }
 0x139   :  { %v511_v61 = vpop.permute.xlu1 %510  ;;  %v506_v62 = vpop.permute.xlu0 %505  ;;  %1822 = vmatpush3.bf16.msra.mxu0 %v1241_v9 }
 0x13a   :  { %v1213_v1 = vsel %vm1085_vm7, %v1021_v35, %v1149_v57  ;;  %v1214_v2 = vsel %vm1086_vm6, %v1022_v29, %v1150_v36  ;;  %v592_v4 = vmul.f32 %v1773_v22, %v511_v61  ;;  %v591_v34 = vmul.f32 %v1772_v11, %v506_v62  ;;  %v1811_v22 = vld [vmem:[%s2700_s1 + $0xf0] sm:$0xff]  }
 0x13b   :  { %v1257_v5 = vpack.c.bf16 %v1214_v2, %v1213_v1  ;;  %v1795_v2 = vld [vmem:[%s2700_s1 + $0x70] sm:$0xff]  }
 0x13c   :  { %v1712_v21 = vunpack.c.l.bf16 %v1795_v2 }
 0x13d   :  { %v431_v14 = vpop.permute.xlu1 %430  ;;  %v426_v48 = vpop.permute.xlu0 %425  ;;  %1862 = vmatpush3.bf16.msra.mxu1 %v1257_v5 }
 0x13e   :  { %v576_v6 = vmul.f32 %v1741_v45, %v431_v14  ;;  %v575_v53 = vmul.f32 %v1740_v46, %v426_v48  ;;  %v1713_v48 = vunpack.c.h.bf16 %v1795_v2 }
 0x140   :  { %v562_v26 = vmul.f32 %v1713_v48, %v2294_v59 }
 0x141   :  { %v799_v33 = vpop.permute.xlu1 %798  ;;  %v794_v3 = vpop.permute.xlu0 %793 }
 0x142   :  { %v1008_v51 = vadd.f32 %v799_v33, %v560_v12  ;;  %v1007_v7 = vadd.f32 %v794_v3, %v559_v25  ;;  %v1787_v25 = vld [vmem:[%s2700_s1 + $0x30] sm:$0xff]   ;;  %v1777_v33 = vunpack.c.h.bf16 %v1811_v22  ;;  %v561_v3 = vmul.f32 %v1712_v21, %v2296_v60 }
 0x144   :  { %vm1072_vm8 = vcmp.ge.f32.partialorder %v1008_v51, 0.0  ;;  %v1136_v18 = vmul.f32 0.2, %v1008_v51  ;;  %vm1071_vm9 = vcmp.ge.f32.partialorder %v1007_v7, 0.0  ;;  %v1135_v8 = vmul.f32 0.2, %v1007_v7 }
 0x145   :  { %v959_v37 = vpop.permute.xlu1 %958  ;;  %v954_v56 = vpop.permute.xlu0 %953 }
 0x146   :  { %v1040_v38 = vadd.f32 %v959_v37, %v592_v4  ;;  %v1039_v41 = vadd.f32 %v954_v56, %v591_v34  ;;  %v1199_v42 = vsel %vm1071_vm9, %v1007_v7, %v1135_v8  ;;  %v1200_v15 = vsel %vm1072_vm8, %v1008_v51, %v1136_v18  ;;  %v1803_v56 = vld [vmem:[%s2700_s1 + $0xb0] sm:$0xff]  }
 0x147   :  { %v1250_v19 = vpack.c.bf16 %v1200_v15, %v1199_v42  ;;  %v1776_v51 = vunpack.c.l.bf16 %v1811_v22  ;;  %v1681_v34 = vunpack.c.h.bf16 %v1787_v25  ;;  %v1745_v46 = vunpack.c.h.bf16 %v1803_v56  ;;  %v1812_v22 = vld [vmem:[%s2700_s1 + $0xf8] sm:$0xff]  }
 0x148   :  { %vm1104_vm10 = vcmp.ge.f32.partialorder %v1040_v38, 0.0  ;;  %v1168_v43 = vmul.f32 0.2, %v1040_v38  ;;  %vm1103_vm11 = vcmp.ge.f32.partialorder %v1039_v41, 0.0  ;;  %v1167_v44 = vmul.f32 0.2, %v1039_v41 }
 0x149   :  { %v719_v49 = vpop.permute.xlu1 %718  ;;  %v714_v50 = vpop.permute.xlu0 %713  ;;  %1823 = vmatprep.subr.bf16.mxu0 %v1250_v19  ;;  %v546_v15 = vmul.f32 %v1681_v34, %v2214_v27 }
 0x14a   :  { %v992_v30 = vadd.f32 %v719_v49, %v544_v55  ;;  %v991_v23 = vadd.f32 %v714_v50, %v543_v16  ;;  %v1231_v54 = vsel %vm1103_vm11, %v1039_v41, %v1167_v44  ;;  %v1232_v20 = vsel %vm1104_vm10, %v1040_v38, %v1168_v43 }
 0x14b   :  { %v1266_v29 = vpack.c.bf16 %v1232_v20, %v1231_v54  ;;  %v1680_v55 = vunpack.c.l.bf16 %v1787_v25  ;;  %v1744_v49 = vunpack.c.l.bf16 %v1803_v56  ;;  %v1788_v25 = vld [vmem:[%s2700_s1 + $0x38] sm:$0xff]  }
 0x14c   :  { %vm1056_vm12 = vcmp.ge.f32.partialorder %v992_v30, 0.0  ;;  %v1120_v35 = vmul.f32 0.2, %v992_v30  ;;  %vm1055_vm13 = vcmp.ge.f32.partialorder %v991_v23, 0.0  ;;  %v1119_v24 = vmul.f32 0.2, %v991_v23 }
 0x14d   :  { %v879_v39 = vpop.permute.xlu1 %878  ;;  %v874_v40 = vpop.permute.xlu0 %873  ;;  %1863 = vmatprep.subr.bf16.mxu1 %v1266_v29  ;;  %v545_v44 = vmul.f32 %v1680_v55, %v2216_v28  ;;  %v1685_v34 = vunpack.c.h.bf16 %v1788_v25  ;;  %v1684_v55 = vunpack.c.l.bf16 %v1788_v25  ;;  %v1804_v56 = vld [vmem:[%s2700_s1 + $0xb8] sm:$0xff]   ;;  %v1916_v25 = vld [vmem:[%s2701_s0 + $0x60] ss:$16 sps:$4 sm:$0xff]  }
 0x14e   :  { %v1024_v9 = vadd.f32 %v879_v39, %v576_v6  ;;  %v1023_v36 = vadd.f32 %v874_v40, %v575_v53  ;;  %v1183_v57 = vsel %vm1055_vm13, %v991_v23, %v1119_v24  ;;  %v1184_v58 = vsel %vm1056_vm12, %v992_v30, %v1120_v35 }
 0x14f   :  { %v1242_v61 = vpack.c.bf16 %v1184_v58, %v1183_v57 }
 0x150   :  { %vm1088_vm14 = vcmp.ge.f32.partialorder %v1024_v9, 0.0  ;;  %v1152_v62 = vmul.f32 0.2, %v1024_v9  ;;  %vm1087_vm15 = vcmp.ge.f32.partialorder %v1023_v36, 0.0  ;;  %v1151_v1 = vmul.f32 0.2, %v1023_v36 }
 0x151   :  { %v521_v5 = vpop.permute.xlu1 %520  ;;  %1824 = vmatpush3.bf16.msra.mxu0 %v1242_v61 }
 0x152   :  { %v516_v10 = vpop.permute.xlu0 %515  ;;  %v1215_v13 = vsel %vm1087_vm15, %v1023_v36, %v1151_v1  ;;  %v1216_v47 = vsel %vm1088_vm14, %v1024_v9, %v1152_v62  ;;  %v594_v18 = vmul.f32 %v1777_v33, %v521_v5  ;;  %v1796_v1 = vld [vmem:[%s2700_s1 + $0x78] sm:$0xff]   ;;  %v1781_v33 = vunpack.c.h.bf16 %v1812_v22 }
 0x153   :  { %v1258_v14 = vpack.c.bf16 %v1216_v47, %v1215_v13  ;;  %v593_v37 = vmul.f32 %v1776_v51, %v516_v10  ;;  %v1716_v21 = vunpack.c.l.bf16 %v1796_v1  ;;  %v1780_v51 = vunpack.c.l.bf16 %v1812_v22  ;;  %v1914_v22 = vld [vmem:[%s2701_s0 + $0x64] ss:$16 sps:$4 sm:$0xff]  }
 0x155   :  { %v441_v11 = vpop.permute.xlu1 %440  ;;  %1864 = vmatpush3.bf16.msra.mxu1 %v1258_v14  ;;  %v1717_v14 = vunpack.c.h.bf16 %v1796_v1 }
 0x156   :  { %v436_v12 = vpop.permute.xlu0 %435  ;;  %v578_v29 = vmul.f32 %v1745_v46, %v441_v11 }
 0x157   :  { %v577_v24 = vmul.f32 %v1744_v49, %v436_v12 }
 0x159   :  { %v809_v7 = vpop.permute.xlu1 %808 }
 0x15a   :  { %v1010_v52 = vadd.f32 %v809_v7, %v562_v26  ;;  %v804_v4 = vpop.permute.xlu0 %803  ;;  %v564_v26 = vmul.f32 %v1717_v14, %v2304_v63  ;;  %v1907_v14 = vld [vmem:[%s2701_s0 + $0x28] ss:$16 sps:$4 sm:$0xff]  }
 0x15b   :  { %v1009_v17 = vadd.f32 %v804_v4, %v561_v3  ;;  %v563_v3 = vmul.f32 %v1716_v21, %v2306_v0  ;;  %v1910_v21 = vld [vmem:[%s2701_s0 + $0x40] ss:$16 sps:$4 sm:$0xff]  }
 0x15c   :  { %vm1074_vm0 = vcmp.ge.f32.partialorder %v1010_v52, 0.0  ;;  %v1138_v8 = vmul.f32 0.2, %v1010_v52 }
 0x15d   :  { %vm1073_vm1 = vcmp.ge.f32.partialorder %v1009_v17, 0.0  ;;  %v1137_v59 = vmul.f32 0.2, %v1009_v17  ;;  %v969_v38 = vpop.permute.xlu1 %968 }
 0x15e   :  { %v1042_v41 = vadd.f32 %v969_v38, %v594_v18  ;;  %v964_v60 = vpop.permute.xlu0 %963  ;;  %v1202_v42 = vsel %vm1074_vm0, %v1010_v52, %v1138_v8  ;;  %vm1536_vm0 = vcmask 261120  }
 0x15f   :  { %v1041_v16 = vadd.f32 %v964_v60, %v593_v37  ;;  %v1201_v45 = vsel %vm1073_vm1, %v1009_v17, %v1137_v59  ;;  %v548_v60 = vmul.f32 %v1685_v34, %v2224_v31  ;;  %vm1527_vm1 = vcmask 257024  }
 0x160   :  { %vm1106_vm2 = vcmp.ge.f32.partialorder %v1042_v41, 0.0  ;;  %v1170_v19 = vmul.f32 0.2, %v1042_v41  ;;  %v1251_v43 = vpack.c.bf16 %v1202_v42, %v1201_v45 }
 0x161   :  { %vm1105_vm3 = vcmp.ge.f32.partialorder %v1041_v16, 0.0  ;;  %v1169_v50 = vmul.f32 0.2, %v1041_v16  ;;  %v729_v30 = vpop.permute.xlu1 %728 }
 0x162   :  { %v994_v23 = vadd.f32 %v729_v30, %v546_v15  ;;  %v724_v54 = vpop.permute.xlu0 %723  ;;  %1825 = vmatprep.subr.bf16.mxu0 %v1251_v43  ;;  %v1234_v20 = vsel %vm1106_vm2, %v1042_v41, %v1170_v19  ;;  %v547_v19 = vmul.f32 %v1684_v55, %v2226_v32  ;;  %v1748_v43 = vunpack.c.l.bf16 %v1804_v56 }
 0x163   :  { %v993_v6 = vadd.f32 %v724_v54, %v545_v44  ;;  %v1233_v53 = vsel %vm1105_vm3, %v1041_v16, %v1169_v50  ;;  %v1749_v16 = vunpack.c.h.bf16 %v1804_v56  ;;  %vm1561_vm2 = vcmask 7168  }
 0x164   :  { %vm1058_vm4 = vcmp.ge.f32.partialorder %v994_v23, 0.0  ;;  %v1122_v27 = vmul.f32 0.2, %v994_v23  ;;  %v1267_v35 = vpack.c.bf16 %v1234_v20, %v1233_v53 }
 0x165   :  { %vm1057_vm5 = vcmp.ge.f32.partialorder %v993_v6, 0.0  ;;  %v1121_v39 = vmul.f32 0.2, %v993_v6  ;;  %v889_v40 = vpop.permute.xlu1 %888 }
 0x166   :  { %v1026_v9 = vadd.f32 %v889_v40, %v578_v29  ;;  %v884_v28 = vpop.permute.xlu0 %883  ;;  %1865 = vmatprep.subr.bf16.mxu1 %v1267_v35  ;;  %v1186_v36 = vsel %vm1058_vm4, %v994_v23, %v1122_v27 }
 0x167   :  { %v1025_v57 = vadd.f32 %v884_v28, %v577_v24  ;;  %v1185_v58 = vsel %vm1057_vm5, %v993_v6, %v1121_v39 }
 0x168   :  { %vm1090_vm6 = vcmp.ge.f32.partialorder %v1026_v9, 0.0  ;;  %v1154_v61 = vmul.f32 0.2, %v1026_v9  ;;  %v1243_v62 = vpack.c.bf16 %v1186_v36, %v1185_v58  ;;  %v1896_v58 = vld [vmem:[%s2701_s0] ss:$16 sps:$4 sm:$0xff]  }
 0x169   :  { %vm1089_vm7 = vcmp.ge.f32.partialorder %v1025_v57, 0.0  ;;  %v1153_v2 = vmul.f32 0.2, %v1025_v57  ;;  %v531_v5 = vpop.permute.xlu1 %530 }
 0x16a   :  { %v526_v10 = vpop.permute.xlu0 %525  ;;  %1826 = vmatpush3.bf16.msra.mxu0 %v1243_v62  ;;  %v1218_v13 = vsel %vm1090_vm6, %v1026_v9, %v1154_v61  ;;  %v596_v18 = vmul.f32 %v1781_v33, %v531_v5  ;;  %v1902_v62 = vld [vmem:[%s2701_s0 + $0x24] ss:$16 sps:$4 sm:$0xff]   ;;  %v1899_v5 = vld [vmem:[%s2701_s0 + $0x8] ss:$16 sps:$4 sm:$0xff]  }
 0x16b   :  { %v1217_v47 = vsel %vm1089_vm7, %v1025_v57, %v1153_v2  ;;  %v595_v37 = vmul.f32 %v1780_v51, %v526_v10  ;;  %v1905_v10 = vld [vmem:[%s2701_s0 + $0x2c] ss:$16 sps:$4 sm:$0xff]  }
 0x16c   :  { %v1259_v48 = vpack.c.bf16 %v1218_v13, %v1217_v47  ;;  %v1904_v13 = vld [vmem:[%s2701_s0 + $0x20] ss:$16 sps:$4 sm:$0xff]   ;;  %v1908_v47 = vld [vmem:[%s2701_s0 + $0x44] ss:$16 sps:$4 sm:$0xff]  }
 0x16d   :  { %v451_v11 = vpop.permute.xlu1 %450 }
 0x16e   :  { %v446_v12 = vpop.permute.xlu0 %445  ;;  %1866 = vmatpush3.bf16.msra.mxu1 %v1259_v48  ;;  %v580_v6 = vmul.f32 %v1749_v16, %v451_v11  ;;  %v1911_v48 = vld [vmem:[%s2701_s0 + $0x4c] ss:$16 sps:$4 sm:$0xff]   ;;  %v1913_v11 = vld [vmem:[%s2701_s0 + $0x48] ss:$16 sps:$4 sm:$0xff]  }
 0x16f   :  { %v579_v29 = vmul.f32 %v1748_v43, %v446_v12  ;;  %v1917_v12 = vld [vmem:[%s2701_s0 + $0x6c] ss:$16 sps:$4 sm:$0xff]  }
 0x171   :  { %v819_v7 = vpop.permute.xlu1 %818 }
 0x172   :  { %v1012_v52 = vadd.f32 %v819_v7, %v564_v26  ;;  %v814_v4 = vpop.permute.xlu0 %813  ;;  %v1919_v26 = vld [vmem:[%s2701_s0 + $0x68] ss:$16 sps:$4 sm:$0xff]  }
 0x173   :  { %v1011_v17 = vadd.f32 %v814_v4, %v563_v3 }
 0x174   :  { %vm1076_vm8 = vcmp.ge.f32.partialorder %v1012_v52, 0.0  ;;  %v1140_v8 = vmul.f32 0.2, %v1012_v52 }
 0x175   :  { %vm1075_vm9 = vcmp.ge.f32.partialorder %v1011_v17, 0.0  ;;  %v1139_v63 = vmul.f32 0.2, %v1011_v17  ;;  %v979_v59 = vpop.permute.xlu1 %978 }
 0x176   :  { %v1044_v38 = vadd.f32 %v979_v59, %v596_v18  ;;  %v974_v0 = vpop.permute.xlu0 %973  ;;  %v1204_v41 = vsel %vm1076_vm8, %v1012_v52, %v1140_v8 }
 0x177   :  { %v1043_v42 = vadd.f32 %v974_v0, %v595_v37  ;;  %v1203_v15 = vsel %vm1075_vm9, %v1011_v17, %v1139_v63 }
 0x178   :  { %vm1108_vm10 = vcmp.ge.f32.partialorder %v1044_v38, 0.0  ;;  %v1172_v45 = vmul.f32 0.2, %v1044_v38  ;;  %v1252_v46 = vpack.c.bf16 %v1204_v41, %v1203_v15 }
 0x179   :  { %vm1107_vm11 = vcmp.ge.f32.partialorder %v1043_v42, 0.0  ;;  %v1171_v44 = vmul.f32 0.2, %v1043_v42  ;;  %v739_v49 = vpop.permute.xlu1 %738 }
 0x17a   :  { %v996_v50 = vadd.f32 %v739_v49, %v548_v60  ;;  %v734_v30 = vpop.permute.xlu0 %733  ;;  %1827 = vmatprep.subr.bf16.mxu0 %v1252_v46  ;;  %v1236_v23 = vsel %vm1108_vm10, %v1044_v38, %v1172_v45 }
 0x17b   :  { %v995_v54 = vadd.f32 %v734_v30, %v547_v19  ;;  %v1235_v20 = vsel %vm1107_vm11, %v1043_v42, %v1171_v44 }
 0x17c   :  { %vm1060_vm12 = vcmp.ge.f32.partialorder %v996_v50, 0.0  ;;  %v1124_v31 = vmul.f32 0.2, %v996_v50  ;;  %v1268_v53 = vpack.c.bf16 %v1236_v23, %v1235_v20 }
 0x17d   :  { %vm1059_vm13 = vcmp.ge.f32.partialorder %v995_v54, 0.0  ;;  %v1123_v27 = vmul.f32 0.2, %v995_v54  ;;  %v899_v35 = vpop.permute.xlu1 %898 }
 0x17e   :  { %v1028_v24 = vadd.f32 %v899_v35, %v580_v6  ;;  %v894_v32 = vpop.permute.xlu0 %893  ;;  %1867 = vmatprep.subr.bf16.mxu1 %v1268_v53  ;;  %v1188_v39 = vsel %vm1060_vm12, %v996_v50, %v1124_v31 }
 0x17f   :  { %v1027_v40 = vadd.f32 %v894_v32, %v579_v29  ;;  %v1187_v9 = vsel %vm1059_vm13, %v995_v54, %v1123_v27 }
 0x180   :  { %vm1092_vm14 = vcmp.ge.f32.partialorder %v1028_v24, 0.0  ;;  %v1156_v28 = vmul.f32 0.2, %v1028_v24  ;;  %v1244_v36 = vpack.c.bf16 %v1188_v39, %v1187_v9 }
 0x181   :  { %vm1091_vm15 = vcmp.ge.f32.partialorder %v1027_v40, 0.0  ;;  %v1155_v57 = vmul.f32 0.2, %v1027_v40 }
 0x182   :  { %1828 = vmatpush3.bf16.msra.mxu0 %v1244_v36  ;;  %v1220_v61 = vsel %vm1092_vm14, %v1028_v24, %v1156_v28 }
 0x183   :  { %v1219_v1 = vsel %vm1091_vm15, %v1027_v40, %v1155_v57 }
 0x184   :  { %v1260_v2 = vpack.c.bf16 %v1220_v61, %v1219_v1 }
 0x185   :  { %1398 = vmatmul.mubr.bf16.vlgmr.msra.gmra.mrb[0].mxu0 %v1896_v58 }
 0x186   :  { %1868 = vmatpush3.bf16.msra.mxu1 %v1260_v2  ;;  %1405 = vmatprep.mubr.bf16.mxu0 %v1902_v62 }
 0x189   :  { %1463 = vmatmul.mubr.bf16.vlgmr.msra.gmra.mrb[0].mxu1 %v1899_v5 }
 0x18a   :  { %1470 = vmatprep.mubr.bf16.mxu1 %v1905_v10 }
 0x18d   :  { %1406 = vmatmul.mubr.bf16.gmra.mrb[4].mxu0 %v1904_v13 }
 0x18e   :  { %1413 = vmatprep.mubr.bf16.mxu0 %v1908_v47 }
 0x191   :  { %1471 = vmatmul.mubr.bf16.gmra.mrb[4].mxu1 %v1907_v14 }
 0x192   :  { %1478 = vmatprep.mubr.bf16.mxu1 %v1911_v48 }
 0x195   :  { %1414 = vmatmul.mubr.bf16.gmra.mrb[8].mxu0 %v1910_v21 }
 0x196   :  { %1421 = vmatprep.mubr.bf16.mxu0 %v1914_v22 }
 0x199   :  { %1479 = vmatmul.mubr.bf16.gmra.mrb[8].mxu1 %v1913_v11 }
 0x19a   :  { %1486 = vmatprep.mubr.bf16.mxu1 %v1917_v12 }
 0x19d   :  { %1422 = vmatmul.mubr.bf16.gmra.mrb[12].mxu0 %v1916_v25 }
 0x1a1   :  { %1487 = vmatmul.mubr.bf16.gmra.mrb[12].mxu1 %v1919_v26 }
 0x258   :  { %v1829_v33 = vpop.f32.mrb[0].mxu0 }
 0x259   :  { %v1830_v3 = vpop.f32.mrb[1].mxu0 }
 0x25a   :  { %v1831_v51 = vadd.f32 %v1830_v3, %v1829_v33  ;;  %v1832_v7 = vpop.f32.mrb[2].mxu0 }
 0x25b   :  { %v1833_v52 = vpop.f32.mrb[3].mxu0 }
 0x25c   :  { %v1834_v4 = vadd.f32 %v1833_v52, %v1832_v7  ;;  %v1869_v34 = vpop.f32.mrb[0].mxu1 }
 0x25d   :  { %v1870_v17 = vpop.f32.mrb[1].mxu1 }
 0x25e   :  { %v1871_v18 = vadd.f32 %v1870_v17, %v1869_v34  ;;  %v1872_v8 = vpop.f32.mrb[2].mxu1 }
 0x25f   :  { %v1873_v55 = vpop.f32.mrb[3].mxu1 }
 0x260   :  { %v1465_v37 = vadd.f32 %v1871_v18, %v1831_v51  ;;  %v1874_v56 = vadd.f32 %v1873_v55, %v1872_v8  ;;  %v1835_v63 = vpop.f32.mrb[4].mxu0 }
 0x261   :  { %v1836_v59 = vpop.f32.mrb[5].mxu0 }
 0x262   :  { %v1646_v38 = vpack.c.bf16 %v1465_v37, %v1465_v37  ;;  %v1468_v0 = vadd.f32 %v1874_v56, %v1834_v4  ;;  %v1837_v41 = vadd.f32 %v1836_v59, %v1835_v63  ;;  %v1838_v60 = vpop.f32.mrb[6].mxu0  ;;  %v1537_v42 = vsel %vm1536_vm0, %v1465_v37, 0.0 }
 0x263   :  { %1538 = vadd.xlane.f32.xlu0 %v1537_v42  ;;  %v1839_v15 = vpop.f32.mrb[7].mxu0  ;;  %v1570_v16 = vmul.f32 %v1465_v37, %v1465_v37 }
 0x264   :  { %1528 = vst.msk [vmem:[%s2702_s4] sm:$0xf] %vm1527_vm1, %v1646_v38  ;;  %v1647_v45 = vpack.c.bf16 %v1468_v0, %v1468_v0  ;;  %v1840_v46 = vadd.f32 %v1839_v15, %v1838_v60  ;;  %v1875_v19 = vpop.f32.mrb[4].mxu1  ;;  %v1540_v43 = vsel %vm1536_vm0, %v1468_v0, 0.0  ;;  %v1571_v44 = vmul.f32 %v1468_v0, %v1468_v0 }
 0x265   :  { %v1876_v49 = vpop.f32.mrb[5].mxu1  ;;  %1541 = vadd.xlane.f32.xlu1 %v1540_v43  ;;  %v1578_v31 = vsel %vm1536_vm0, %v1570_v16, 0.0 }
 0x266   :  { %1529 = vst.msk [vmem:[%s2702_s4 + $0x4] sm:$0xf] %vm1527_vm1, %v1647_v45  ;;  %v1877_v50 = vadd.f32 %v1876_v49, %v1875_v19  ;;  %v1878_v30 = vpop.f32.mrb[6].mxu1  ;;  %v1581_v23 = vsel %vm1536_vm0, %v1571_v44, 0.0 }
 0x267   :  { %v1879_v54 = vpop.f32.mrb[7].mxu1  ;;  %1582 = vadd.xlane.f32.xlu0 %v1581_v23 }
 0x268   :  { %v1473_v20 = vadd.f32 %v1877_v50, %v1837_v41  ;;  %v1880_v6 = vadd.f32 %v1879_v54, %v1878_v30  ;;  %v1841_v53 = vpop.f32.mrb[8].mxu0 }
 0x269   :  { %1579 = vadd.xlane.f32.xlu1 %v1578_v31  ;;  %v1842_v29 = vpop.f32.mrb[9].mxu0 }
 0x26a   :  { %v1648_v27 = vpack.c.bf16 %v1473_v20, %v1473_v20  ;;  %v1476_v35 = vadd.f32 %v1880_v6, %v1840_v46  ;;  %v1543_v24 = vsel %vm1536_vm0, %v1473_v20, 0.0  ;;  %v1843_v32 = vadd.f32 %v1842_v29, %v1841_v53  ;;  %v1844_v39 = vpop.f32.mrb[10].mxu0 }
 0x26b   :  { %1544 = vadd.xlane.f32.xlu0 %v1543_v24  ;;  %v1572_v40 = vmul.f32 %v1473_v20, %v1473_v20  ;;  %v1845_v9 = vpop.f32.mrb[11].mxu0 }
 0x26c   :  { %1530 = vst.msk [vmem:[%s2702_s4 + $0x8] sm:$0xf] %vm1527_vm1, %v1648_v27  ;;  %v1649_v28 = vpack.c.bf16 %v1476_v35, %v1476_v35  ;;  %v1881_v36 = vpop.f32.mrb[8].mxu1  ;;  %v1846_v57 = vadd.f32 %v1845_v9, %v1844_v39  ;;  %v1573_v62 = vmul.f32 %v1476_v35, %v1476_v35  ;;  %v1546_v5 = vsel %vm1536_vm0, %v1476_v35, 0.0 }
 0x26d   :  { %v1882_v58 = vpop.f32.mrb[9].mxu1  ;;  %v1584_v61 = vsel %vm1536_vm0, %v1572_v40, 0.0 }
 0x26e   :  { %1531 = vst.msk [vmem:[%s2702_s4 + $0xc] sm:$0xf] %vm1527_vm1, %v1649_v28  ;;  %v1883_v1 = vadd.f32 %v1882_v58, %v1881_v36  ;;  %1585 = vadd.xlane.f32.xlu1 %v1584_v61  ;;  %v1884_v2 = vpop.f32.mrb[10].mxu1  ;;  %v1587_v48 = vsel %vm1536_vm0, %v1573_v62, 0.0 }
 0x26f   :  { %v1885_v10 = vpop.f32.mrb[11].mxu1  ;;  %1547 = vadd.xlane.f32.xlu0 %v1546_v5 }
 0x270   :  { %v1481_v13 = vadd.f32 %v1883_v1, %v1843_v32  ;;  %v1886_v47 = vadd.f32 %v1885_v10, %v1884_v2  ;;  %v1847_v14 = vpop.f32.mrb[12].mxu0 }
 0x271   :  { %v1848_v21 = vpop.f32.mrb[13].mxu0 }
 0x272   :  { %v1650_v22 = vpack.c.bf16 %v1481_v13, %v1481_v13  ;;  %v1484_v11 = vadd.f32 %v1886_v47, %v1846_v57  ;;  %v1549_v12 = vsel %vm1536_vm0, %v1481_v13, 0.0  ;;  %v1849_v25 = vadd.f32 %v1848_v21, %v1847_v14  ;;  %v1850_v26 = vpop.f32.mrb[14].mxu0 }
 0x273   :  { %1550 = vadd.xlane.f32.xlu1 %v1549_v12  ;;  %1588 = vadd.xlane.f32.xlu0 %v1587_v48  ;;  %v1851_v33 = vpop.f32.mrb[15].mxu0  ;;  %v1574_v3 = vmul.f32 %v1481_v13, %v1481_v13 }
 0x274   :  { %1532 = vst.msk [vmem:[%s2702_s4 + $0x10] sm:$0xf] %vm1527_vm1, %v1650_v22  ;;  %v1651_v51 = vpack.c.bf16 %v1484_v11, %v1484_v11  ;;  %v1887_v7 = vpop.f32.mrb[12].mxu1  ;;  %v1852_v52 = vadd.f32 %v1851_v33, %v1850_v26  ;;  %v1575_v17 = vmul.f32 %v1484_v11, %v1484_v11  ;;  %v1552_v55 = vsel %vm1536_vm0, %v1484_v11, 0.0 }
 0x275   :  { %v1888_v4 = vpop.f32.mrb[13].mxu1  ;;  %v1590_v34 = vsel %vm1536_vm0, %v1574_v3, 0.0 }
 0x276   :  { %1533 = vst.msk [vmem:[%s2702_s4 + $0x14] sm:$0xf] %vm1527_vm1, %v1651_v51  ;;  %v1889_v18 = vadd.f32 %v1888_v4, %v1887_v7  ;;  %v1890_v8 = vpop.f32.mrb[14].mxu1  ;;  %v1593_v59 = vsel %vm1536_vm0, %v1575_v17, 0.0 }
 0x277   :  { %v1891_v37 = vpop.f32.mrb[15].mxu1  ;;  %1591 = vadd.xlane.f32.xlu1 %v1590_v34  ;;  %1553 = vadd.xlane.f32.xlu0 %v1552_v55 }
 0x278   :  { %v1489_v56 = vadd.f32 %v1889_v18, %v1849_v25  ;;  %v1892_v63 = vadd.f32 %v1891_v37, %v1890_v8 }
 0x27a   :  { %v1652_v38 = vpack.c.bf16 %v1489_v56, %v1489_v56  ;;  %v1492_v0 = vadd.f32 %v1892_v63, %v1852_v52  ;;  %v1555_v41 = vsel %vm1536_vm0, %v1489_v56, 0.0  ;;  %v1576_v60 = vmul.f32 %v1489_v56, %v1489_v56 }
 0x27b   :  { %1556 = vadd.xlane.f32.xlu1 %v1555_v41  ;;  %1594 = vadd.xlane.f32.xlu0 %v1593_v59 }
 0x27c   :  { %1534 = vst.msk [vmem:[%s2702_s4 + $0x18] sm:$0xf] %vm1527_vm1, %v1652_v38  ;;  %v1653_v42 = vpack.c.bf16 %v1492_v0, %v1492_v0  ;;  %v1596_v15 = vsel %vm1536_vm0, %v1576_v60, 0.0  ;;  %v1558_v16 = vsel %vm1536_vm0, %v1492_v0, 0.0  ;;  %v1577_v45 = vmul.f32 %v1492_v0, %v1492_v0 }
 0x27e   :  { %1535 = vst.msk [vmem:[%s2702_s4 + $0x1c] sm:$0xf] %vm1527_vm1, %v1653_v42  ;;  %v1599_v46 = vsel %vm1536_vm0, %v1577_v45, 0.0 }
 0x27f   :  { %1597 = vadd.xlane.f32.xlu1 %v1596_v15  ;;  %1559 = vadd.xlane.f32.xlu0 %v1558_v16 }
 0x283   :  { %1600 = vadd.xlane.f32.xlu0 %v1599_v46 }
 0x2f0   :  { %v1539_v19 = vpop.xlane.xlu0 %1538 }
 0x2f1   :  { %1562 = vst.msk [vmem:[%s2703_s5] sm:$0xff] %vm1561_vm2, %v1539_v19 }
 0x2f2   :  { %v1542_v43 = vpop.xlane.xlu1 %1541 }
 0x2f3   :  { %1563 = vst.msk [vmem:[%s2703_s5 + $0x8] sm:$0xff] %vm1561_vm2, %v1542_v43 }
 0x2f4   :  { %v1583_v44 = vpop.xlane.xlu0 %1582 }
 0x2f5   :  { %1603 = vst.msk [vmem:[%s2704_s6 + $0x8] sm:$0xff] %vm1561_vm2, %v1583_v44 }
 0x2f6   :  { %v1580_v49 = vpop.xlane.xlu1 %1579 }
 0x2f7   :  { %1602 = vst.msk [vmem:[%s2704_s6] sm:$0xff] %vm1561_vm2, %v1580_v49 }
 0x2f8   :  { %v1545_v50 = vpop.xlane.xlu0 %1544 }
 0x2f9   :  { %1564 = vst.msk [vmem:[%s2703_s5 + $0x10] sm:$0xff] %vm1561_vm2, %v1545_v50 }
 0x2fb   :  { %v1586_v30 = vpop.xlane.xlu1 %1585 }
 0x2fc   :  { %1604 = vst.msk [vmem:[%s2704_s6 + $0x10] sm:$0xff] %vm1561_vm2, %v1586_v30  ;;  %v1548_v23 = vpop.xlane.xlu0 %1547 }
 0x2fd   :  { %1565 = vst.msk [vmem:[%s2703_s5 + $0x18] sm:$0xff] %vm1561_vm2, %v1548_v23 }
 0x300   :  { %v1551_v54 = vpop.xlane.xlu1 %1550  ;;  %v1589_v20 = vpop.xlane.xlu0 %1588 }
 0x301   :  { %1566 = vst.msk [vmem:[%s2703_s5 + $0x20] sm:$0xff] %vm1561_vm2, %v1551_v54  ;;  %1605 = vst.msk [vmem:[%s2704_s6 + $0x18] sm:$0xff] %vm1561_vm2, %v1589_v20 }
 0x304   :  { %v1592_v6 = vpop.xlane.xlu1 %1591  ;;  %v1554_v31 = vpop.xlane.xlu0 %1553 }
 0x305   :  { %1606 = vst.msk [vmem:[%s2704_s6 + $0x20] sm:$0xff] %vm1561_vm2, %v1592_v6  ;;  %1567 = vst.msk [vmem:[%s2703_s5 + $0x28] sm:$0xff] %vm1561_vm2, %v1554_v31 }
 0x308   :  { %v1557_v53 = vpop.xlane.xlu1 %1556  ;;  %v1595_v29 = vpop.xlane.xlu0 %1594 }
 0x309   :  { %1568 = vst.msk [vmem:[%s2703_s5 + $0x30] sm:$0xff] %vm1561_vm2, %v1557_v53  ;;  %1607 = vst.msk [vmem:[%s2704_s6 + $0x28] sm:$0xff] %vm1561_vm2, %v1595_v29 }
 0x30c   :  { %v1598_v27 = vpop.xlane.xlu1 %1597  ;;  %v1560_v35 = vpop.xlane.xlu0 %1559 }
 0x30d   :  { %1608 = vst.msk [vmem:[%s2704_s6 + $0x30] sm:$0xff] %vm1561_vm2, %v1598_v27  ;;  %1569 = vst.msk [vmem:[%s2703_s5 + $0x38] sm:$0xff] %vm1561_vm2, %v1560_v35 }
 0x310   :  { %v1601_v24 = vpop.xlane.xlu0 %1600 }
 0x311   :  { %1609 = vst.msk [vmem:[%s2704_s6 + $0x38] sm:$0xff] %vm1561_vm2, %v1601_v24 }

</bundles_post_ra>
